<compile_context>
chip_gen: v6e
topology: v6e:2x2x1
jax: 0.10.0
libtpu: 0.0.40
codegen_flags: <defaults>
</compile_context>

<pallas_src>
import math
import functools

import jax
import jax.numpy as jnp
from jax import lax
from jax.experimental import pallas as pl
from jax.experimental.pallas import tpu as pltpu


# ---------------------------------------------------------------------------
# Kernel
# ---------------------------------------------------------------------------
def _cnn_attention_kernel(x_ref,                     # (Bb, L+4)  f32
                          a1_ref, b1_ref,            # (L+4, L*C1) bf16, (1, L*C1) f32
                          pe1_ref, po1_ref,          # (L*C1, L2*C1) bf16
                          a2_ref, b2_ref,            # (L2*C1, L2*H) bf16, (1, L2*H) f32
                          pe2_ref, po2_ref,          # (L2*H, T*H) bf16
                          pos_ref,                   # (1, T*H) f32
                          wq_ref, bq_ref,            # (H, H) bf16, (1, H) f32
                          wk_ref, bk_ref,
                          wv_ref, bv_ref,
                          wo_ref, bo_ref,            # out_proj_w.T, bias
                          mask_ref,                  # (Bb*T, Bb*T) f32 additive mask
                          qavg_ref,                  # (Bb, Bb*T) bf16 query-mean matrix
                          o_ref,                     # (Bb, H) f32
                          *, num_heads):
    f32, bf16 = jnp.float32, jnp.bfloat16
    Bb = x_ref.shape[0]
    H = wq_ref.shape[0]
    T = pos_ref.shape[1] // H
    hd = H // num_heads

    # ---- conv1 + bias + ReLU (lane layout: rows = sample, lanes = (l, c)) --
    x = x_ref[...].astype(bf16)                                   # (Bb, L+4)
    h1 = jnp.dot(x, a1_ref[...], preferred_element_type=f32) + b1_ref[...]
    h1 = jnp.maximum(h1, 0.0).astype(bf16)                        # (Bb, L*C1)

    # ---- maxpool1 via precomputed 0/1 lane selectors (exact) ---------------
    p1 = jnp.maximum(
        jnp.dot(h1, pe1_ref[...], preferred_element_type=f32),
        jnp.dot(h1, po1_ref[...], preferred_element_type=f32)).astype(bf16)

    # ---- conv2 + bias + ReLU (single banded matmul, padding in the band) ---
    h2 = jnp.dot(p1, a2_ref[...], preferred_element_type=f32) + b2_ref[...]
    h2 = jnp.maximum(h2, 0.0).astype(bf16)                        # (Bb, L2*H)

    # ---- maxpool2 + positional encoding (f32 elementwise) ------------------
    seq_lane = jnp.maximum(
        jnp.dot(h2, pe2_ref[...], preferred_element_type=f32),
        jnp.dot(h2, po2_ref[...], preferred_element_type=f32)) + pos_ref[...]
    # (Bb, T*H)

    # ---- relayout (Bb, T*H) -> (T*Bb, H); rows ordered (t, b) --------------
    seq = jnp.concatenate(
        [seq_lane[:, t * H:(t + 1) * H] for t in range(T)], axis=0).astype(bf16)

    # ---- batch-blocked multi-head self-attention, mean over time fused -----
    scale = 1.0 / math.sqrt(hd)
    q = ((jnp.dot(seq, wq_ref[...], preferred_element_type=f32)
          + bq_ref[...]) * scale).astype(bf16)                    # (T*Bb, H)
    k = (jnp.dot(seq, wk_ref[...], preferred_element_type=f32)
         + bk_ref[...]).astype(bf16)
    v = (jnp.dot(seq, wv_ref[...], preferred_element_type=f32)
         + bv_ref[...]).astype(bf16)

    mask = mask_ref[...]                                          # f32 additive
    qavg = qavg_ref[...]                                          # bf16
    nt = (((1,), (1,)), ((), ()))                                 # A @ B^T
    ctx_heads = []
    for hh in range(num_heads):
        sl = slice(hh * hd, (hh + 1) * hd)
        s = lax.dot_general(q[:, sl], k[:, sl], nt,
                            preferred_element_type=f32) + mask    # (T*Bb, T*Bb)
        m = jnp.max(s, axis=-1, keepdims=True)
        e = jnp.exp(s - m)
        p = e * pl.reciprocal(jnp.sum(e, axis=-1, keepdims=True), approx=True)
        # mean over queries commutes with the (linear) value matmul and the
        # output projection -> reduce per-sample first via the averaging matrix.
        pbar = jnp.dot(qavg, p.astype(bf16),
                       preferred_element_type=f32)                # (Bb, T*Bb)
        ctx_heads.append(jnp.dot(pbar.astype(bf16), v[:, sl],
                                 preferred_element_type=f32))     # (Bb, hd)
    ctx = jnp.concatenate(ctx_heads, axis=-1).astype(bf16)        # (Bb, H)
    o_ref[...] = (jnp.dot(ctx, wo_ref[...], preferred_element_type=f32)
                  + bo_ref[...])


# ---------------------------------------------------------------------------
# One-time parameter preparation (cache this; it is pure layout/weight prep)
# ---------------------------------------------------------------------------
def prepare_params(params, num_heads, L, block_b):
    f32, bf16 = jnp.float32, jnp.bfloat16
    w1 = jnp.asarray(params['conv1_w'], f32)          # (C1, 1, 5)
    b1 = jnp.asarray(params['conv1_b'], f32)
    w2 = jnp.asarray(params['conv2_w'], f32)          # (H, C1, 5)
    b2 = jnp.asarray(params['conv2_b'], f32)
    C1, H = w1.shape[0], w2.shape[0]
    K = w1.shape[2]
    pad = K // 2
    assert L % 4 == 0 and H % num_heads == 0
    L2, T = L // 2, L // 4
    Lp = L + 2 * pad

    # conv1 as one banded matmul: (Bb, Lp) @ (Lp, L*C1)
    w1k = w1[:, 0, :]                                  # (C1, K)
    j = jnp.arange(Lp)[:, None, None]
    l = jnp.arange(L)[None, :, None]
    c = jnp.arange(C1)[None, None, :]
    k = j - l
    a1 = jnp.where((k >= 0) & (k < K), w1k[c, jnp.clip(k, 0, K - 1)], 0.0)
    a1 = a1.reshape(Lp, L * C1)

    # maxpool1 even/odd lane selectors: (L*C1, L2*C1)
    l = jnp.arange(L)[:, None, None, None]
    c = jnp.arange(C1)[None, :, None, None]
    m = jnp.arange(L2)[None, None, :, None]
    c2 = jnp.arange(C1)[None, None, None, :]
    pe1 = ((l == 2 * m) & (c == c2)).astype(f32).reshape(L * C1, L2 * C1)
    po1 = ((l == 2 * m + 1) & (c == c2)).astype(f32).reshape(L * C1, L2 * C1)

    # conv2 as one banded matmul (zero padding encoded in the band)
    j = jnp.arange(L2)[:, None, None, None]
    c = jnp.arange(C1)[None, :, None, None]
    l = jnp.arange(L2)[None, None, :, None]
    o = jnp.arange(H)[None, None, None, :]
    k = j - l + pad
    a2 = jnp.where((k >= 0) & (k < K), w2[o, c, jnp.clip(k, 0, K - 1)], 0.0)
    a2 = a2.reshape(L2 * C1, L2 * H)

    # maxpool2 even/odd lane selectors: (L2*H, T*H)
    l = jnp.arange(L2)[:, None, None, None]
    c = jnp.arange(H)[None, :, None, None]
    m = jnp.arange(T)[None, None, :, None]
    c2 = jnp.arange(H)[None, None, None, :]
    pe2 = ((l == 2 * m) & (c == c2)).astype(f32).reshape(L2 * H, T * H)
    po2 = ((l == 2 * m + 1) & (c == c2)).astype(f32).reshape(L2 * H, T * H)

    wq, wk, wv = jnp.split(jnp.asarray(params['in_proj_w'], f32), 3, axis=0)
    bq, bk, bv = jnp.split(jnp.asarray(params['in_proj_b'], f32), 3)
    wo = jnp.asarray(params['out_proj_w'], f32)
    bo = jnp.asarray(params['out_proj_b'], f32)
    pos = jnp.asarray(params['pos_enc'], f32)[:T, :]

    # block-diagonal additive attention mask + query-mean matrix
    # (attention rows are ordered (t, b): row = t*block_b + b)
    N = block_b * T
    r = jnp.arange(N)
    same = (r[:, None] % block_b) == (r[None, :] % block_b)
    mask = jnp.where(same, 0.0, -1e30).astype(f32)
    qavg = jnp.where((r[None, :] % block_b) == jnp.arange(block_b)[:, None],
                     1.0 / T, 0.0).astype(f32)

    return dict(
        a1=a1.astype(bf16), b1=jnp.tile(b1, (L,)).reshape(1, -1),
        pe1=pe1.astype(bf16), po1=po1.astype(bf16),
        a2=a2.astype(bf16), b2=jnp.tile(b2, (L2,)).reshape(1, -1),
        pe2=pe2.astype(bf16), po2=po2.astype(bf16),
        pos=pos.reshape(1, T * H),
        wq=wq.T.astype(bf16), bq=bq.reshape(1, H),
        wk=wk.T.astype(bf16), bk=bk.reshape(1, H),
        wv=wv.T.astype(bf16), bv=bv.reshape(1, H),
        wo=wo.T.astype(bf16), bo=bo.reshape(1, H),
        mask=mask, qavg=qavg.astype(bf16),
    )


# ---------------------------------------------------------------------------
# Wrapper
# ---------------------------------------------------------------------------
def cnn_attention(x, prep, *, num_heads, block_b=8):
    """x: (B, 1, L) float32 — same NCL layout the PyTorch module takes."""
    B, cin, L = x.shape
    assert cin == 1 and L % 4 == 0
    H = prep['wq'].shape[0]
    T = L // 4
    Lp = prep['a1'].shape[0]
    assert prep['pos'].shape[1] == T * H
    assert prep['qavg'].shape[0] == block_b and prep['mask'].shape[0] == block_b * T

    Bb = block_b
    B_pad = ((B + Bb - 1) // Bb) * Bb
    pad = (Lp - L) // 2
    xp = jnp.pad(x[:, 0, :].astype(jnp.float32), ((0, B_pad - B), (pad, pad)))

    names = ['a1', 'b1', 'pe1', 'po1', 'a2', 'b2', 'pe2', 'po2', 'pos',
             'wq', 'bq', 'wk', 'bk', 'wv', 'bv', 'wo', 'bo', 'mask', 'qavg']
    ops = [prep[n] for n in names]

    kernel = functools.partial(_cnn_attention_kernel, num_heads=num_heads)
    out = pl.pallas_call(
        kernel,
        out_shape=jax.ShapeDtypeStruct((B_pad, H), jnp.float32),
        grid=(B_pad // Bb,),
        in_specs=[pl.BlockSpec((Bb, Lp), lambda i: (i, 0))]
                 + [pl.BlockSpec(a.shape, lambda i: (0, 0)) for a in ops],
        out_specs=pl.BlockSpec((Bb, H), lambda i: (i, 0)),
        compiler_params=pltpu.CompilerParams(
            dimension_semantics=("parallel",)),
    )(xp, *ops)
    return out[:B]


# ---------------------------------------------------------------------------
# Pure-JAX reference (correctness check only)
# ---------------------------------------------------------------------------
def sinusoidal_pos_enc(d_model, max_len=5000):
    position = jnp.arange(max_len, dtype=jnp.float32)[:, None]
    div_term = jnp.exp(jnp.arange(0, d_model, 2, dtype=jnp.float32)
                       * (-math.log(10000.0) / d_model))
    pe = jnp.zeros((max_len, d_model), jnp.float32)
    pe = pe.at[:, 0::2].set(jnp.sin(position * div_term))
    pe = pe.at[:, 1::2].set(jnp.cos(position * div_term))
    return pe


def reference_forward(x, params, num_heads):
    B, _, L = x.shape
    w1, b1 = params['conv1_w'], params['conv1_b']
    w2, b2 = params['conv2_w'], params['conv2_b']
    dn = ('NCH', 'OIH', 'NCH')
    h = lax.conv_general_dilated(x, w1, (1,), [(2, 2)], dimension_numbers=dn)
    h = jax.nn.relu(h + b1[None, :, None])
    h = h.reshape(B, w1.shape[0], L // 2, 2).max(axis=-1)
    h = lax.conv_general_dilated(h, w2, (1,), [(2, 2)], dimension_numbers=dn)
    h = jax.nn.relu(h + b2[None, :, None])
    h = h.reshape(B, w2.shape[0], L // 4, 2).max(axis=-1)
    seq = jnp.transpose(h, (0, 2, 1))                    # (B, T, H)
    T, H = seq.shape[1], seq.shape[2]
    seq = seq + params['pos_enc'][:T]
    wq, wk, wv = jnp.split(params['in_proj_w'], 3, axis=0)
    bq, bk, bv = jnp.split(params['in_proj_b'], 3)
    hd = H // num_heads
    q = (seq @ wq.T + bq) / math.sqrt(hd)
    k = seq @ wk.T + bk
    v = seq @ wv.T + bv

    def split_heads(t):
        return t.reshape(B, T, num_heads, hd).transpose(0, 2, 1, 3)

    s = jnp.einsum('bhqd,bhkd->bhqk', split_heads(q), split_heads(k))
    p = jax.nn.softmax(s, axis=-1)
    ctx = jnp.einsum('bhqk,bhkd->bhqd', p, split_heads(v))
    ctx = ctx.transpose(0, 2, 1, 3).reshape(B, T, H)
    attn = ctx @ params['out_proj_w'].T + params['out_proj_b']
    return attn.mean(axis=1)


# ---------------------------------------------------------------------------
if __name__ == "__main__":
    B, L = 16, 32                      # (B, 1, L) -> seq_len = L // 4 = 8
    d_model, num_heads = 32, 4
    C1 = 16
    block_b = 8                        # 8 samples / grid step -> 2 parallel steps

    key = jax.random.PRNGKey(0)
    ks = jax.random.split(key, 10)

    def u(k, shape, fan_in):
        bound = 1.0 / math.sqrt(fan_in)
        return jax.random.uniform(k, shape, jnp.float32, -bound, bound)

    params = dict(
        conv1_w=u(ks[0], (C1, 1, 5), 1 * 5),
        conv1_b=u(ks[1], (C1,), 1 * 5),
        conv2_w=u(ks[2], (d_model, C1, 5), C1 * 5),
        conv2_b=u(ks[3], (d_model,), C1 * 5),
        in_proj_w=u(ks[4], (3 * d_model, d_model), d_model),
        in_proj_b=u(ks[5], (3 * d_model,), d_model),
        out_proj_w=u(ks[6], (d_model, d_model), d_model),
        out_proj_b=u(ks[7], (d_model,), d_model),
        pos_enc=sinusoidal_pos_enc(d_model),
    )
    x = jax.random.normal(ks[8], (B, 1, L), jnp.float32)

    prep = prepare_params(params, num_heads, L, block_b)   # one-time prep (cacheable)
    out = jax.block_until_ready(
        cnn_attention(x, prep, num_heads=num_heads, block_b=block_b))
    ref = reference_forward(x, params, num_heads)

    assert out.shape == (B, d_model)
    if not jnp.allclose(out, ref, rtol=2e-2, atol=2e-2):
        err = float(jnp.max(jnp.abs(out - ref)))
        raise AssertionError(f"Pallas kernel does not match reference (max abs err {err})")
    print("KERNEL_OK")
</pallas_src>

<mosaic_0001>
module attributes {stable_mosaic.version = 11 : i64} {
  func.func @_cnn_attention_kernel(%arg0: i32, %arg1: memref<8x36xf32, #tpu.memory_space<vmem>>, %arg2: memref<36x512xbf16, #tpu.memory_space<vmem>>, %arg3: memref<1x512xf32, #tpu.memory_space<vmem>>, %arg4: memref<512x256xbf16, #tpu.memory_space<vmem>>, %arg5: memref<512x256xbf16, #tpu.memory_space<vmem>>, %arg6: memref<256x512xbf16, #tpu.memory_space<vmem>>, %arg7: memref<1x512xf32, #tpu.memory_space<vmem>>, %arg8: memref<512x256xbf16, #tpu.memory_space<vmem>>, %arg9: memref<512x256xbf16, #tpu.memory_space<vmem>>, %arg10: memref<1x256xf32, #tpu.memory_space<vmem>>, %arg11: memref<32x32xbf16, #tpu.memory_space<vmem>>, %arg12: memref<1x32xf32, #tpu.memory_space<vmem>>, %arg13: memref<32x32xbf16, #tpu.memory_space<vmem>>, %arg14: memref<1x32xf32, #tpu.memory_space<vmem>>, %arg15: memref<32x32xbf16, #tpu.memory_space<vmem>>, %arg16: memref<1x32xf32, #tpu.memory_space<vmem>>, %arg17: memref<32x32xbf16, #tpu.memory_space<vmem>>, %arg18: memref<1x32xf32, #tpu.memory_space<vmem>>, %arg19: memref<64x64xf32, #tpu.memory_space<vmem>>, %arg20: memref<8x64xbf16, #tpu.memory_space<vmem>>, %arg21: memref<8x32xf32, #tpu.memory_space<vmem>>) attributes {dimension_semantics = [#tpu.dimension_semantics<parallel>], iteration_bounds = array<i64: 2>, scalar_prefetch = 0 : i64, scratch_operands = 0 : i64, tpu.core_type = #tpu.core_type<tc>, window_params = [{transform_indices = @transform_0, window_bounds = array<i64: 8, 36>}, {pipeline_mode = #tpu.pipeline_mode<synchronous>, transform_indices = @transform_1, window_bounds = array<i64: 36, 512>}, {pipeline_mode = #tpu.pipeline_mode<synchronous>, transform_indices = @transform_2, window_bounds = array<i64: 1, 512>}, {pipeline_mode = #tpu.pipeline_mode<synchronous>, transform_indices = @transform_3, window_bounds = array<i64: 512, 256>}, {pipeline_mode = #tpu.pipeline_mode<synchronous>, transform_indices = @transform_4, window_bounds = array<i64: 512, 256>}, {pipeline_mode = #tpu.pipeline_mode<synchronous>, transform_indices = @transform_5, window_bounds = array<i64: 256, 512>}, {pipeline_mode = #tpu.pipeline_mode<synchronous>, transform_indices = @transform_6, window_bounds = array<i64: 1, 512>}, {pipeline_mode = #tpu.pipeline_mode<synchronous>, transform_indices = @transform_7, window_bounds = array<i64: 512, 256>}, {pipeline_mode = #tpu.pipeline_mode<synchronous>, transform_indices = @transform_8, window_bounds = array<i64: 512, 256>}, {pipeline_mode = #tpu.pipeline_mode<synchronous>, transform_indices = @transform_9, window_bounds = array<i64: 1, 256>}, {pipeline_mode = #tpu.pipeline_mode<synchronous>, transform_indices = @transform_10, window_bounds = array<i64: 32, 32>}, {pipeline_mode = #tpu.pipeline_mode<synchronous>, transform_indices = @transform_11, window_bounds = array<i64: 1, 32>}, {pipeline_mode = #tpu.pipeline_mode<synchronous>, transform_indices = @transform_12, window_bounds = array<i64: 32, 32>}, {pipeline_mode = #tpu.pipeline_mode<synchronous>, transform_indices = @transform_13, window_bounds = array<i64: 1, 32>}, {pipeline_mode = #tpu.pipeline_mode<synchronous>, transform_indices = @transform_14, window_bounds = array<i64: 32, 32>}, {pipeline_mode = #tpu.pipeline_mode<synchronous>, transform_indices = @transform_15, window_bounds = array<i64: 1, 32>}, {pipeline_mode = #tpu.pipeline_mode<synchronous>, transform_indices = @transform_16, window_bounds = array<i64: 32, 32>}, {pipeline_mode = #tpu.pipeline_mode<synchronous>, transform_indices = @transform_17, window_bounds = array<i64: 1, 32>}, {pipeline_mode = #tpu.pipeline_mode<synchronous>, transform_indices = @transform_18, window_bounds = array<i64: 64, 64>}, {pipeline_mode = #tpu.pipeline_mode<synchronous>, transform_indices = @transform_19, window_bounds = array<i64: 8, 64>}, {transform_indices = @transform_20, window_bounds = array<i64: 8, 32>}]} {
    %c0 = arith.constant 0 : index
    %c0_0 = arith.constant 0 : index
    %0 = vector.load %arg1[%c0, %c0_0] : memref<8x36xf32, #tpu.memory_space<vmem>>, vector<8x36xf32>
    %1 = arith.truncf %0 : vector<8x36xf32> to vector<8x36xbf16>
    %c0_1 = arith.constant 0 : index
    %c0_2 = arith.constant 0 : index
    %2 = vector.load %arg2[%c0_1, %c0_2] : memref<36x512xbf16, #tpu.memory_space<vmem>>, vector<36x512xbf16>
    %cst = arith.constant dense<0.000000e+00> : vector<8x512xf32>
    %3 = tpu.matmul %1, %2, %cst {dimension_numbers = #tpu.dot_dimension_numbers<[1], [0], [0], [1], [0, 0, 1, 1], [], []>} : vector<8x36xbf16>, vector<36x512xbf16>, vector<8x512xf32> -> vector<8x512xf32>
    %c0_3 = arith.constant 0 : index
    %c0_4 = arith.constant 0 : index
    %4 = vector.load %arg3[%c0_3, %c0_4] : memref<1x512xf32, #tpu.memory_space<vmem>>, vector<1x512xf32>
    %5 = vector.broadcast %4 : vector<1x512xf32> to vector<8x512xf32>
    %6 = arith.addf %3, %5 : vector<8x512xf32>
    %cst_5 = arith.constant 0.000000e+00 : f32
    %7 = vector.broadcast %cst_5 : f32 to vector<8x512xf32>
    %8 = arith.maximumf %6, %7 : vector<8x512xf32>
    %9 = arith.truncf %8 : vector<8x512xf32> to vector<8x512xbf16>
    %c0_6 = arith.constant 0 : index
    %c0_7 = arith.constant 0 : index
    %10 = vector.load %arg4[%c0_6, %c0_7] : memref<512x256xbf16, #tpu.memory_space<vmem>>, vector<512x256xbf16>
    %cst_8 = arith.constant dense<0.000000e+00> : vector<8x256xf32>
    %11 = tpu.matmul %9, %10, %cst_8 {dimension_numbers = #tpu.dot_dimension_numbers<[1], [0], [0], [1], [0, 0, 1, 1], [], []>} : vector<8x512xbf16>, vector<512x256xbf16>, vector<8x256xf32> -> vector<8x256xf32>
    %c0_9 = arith.constant 0 : index
    %c0_10 = arith.constant 0 : index
    %12 = vector.load %arg5[%c0_9, %c0_10] : memref<512x256xbf16, #tpu.memory_space<vmem>>, vector<512x256xbf16>
    %cst_11 = arith.constant dense<0.000000e+00> : vector<8x256xf32>
    %13 = tpu.matmul %9, %12, %cst_11 {dimension_numbers = #tpu.dot_dimension_numbers<[1], [0], [0], [1], [0, 0, 1, 1], [], []>} : vector<8x512xbf16>, vector<512x256xbf16>, vector<8x256xf32> -> vector<8x256xf32>
    %14 = arith.maximumf %11, %13 : vector<8x256xf32>
    %15 = arith.truncf %14 : vector<8x256xf32> to vector<8x256xbf16>
    %c0_12 = arith.constant 0 : index
    %c0_13 = arith.constant 0 : index
    %16 = vector.load %arg6[%c0_12, %c0_13] : memref<256x512xbf16, #tpu.memory_space<vmem>>, vector<256x512xbf16>
    %cst_14 = arith.constant dense<0.000000e+00> : vector<8x512xf32>
    %17 = tpu.matmul %15, %16, %cst_14 {dimension_numbers = #tpu.dot_dimension_numbers<[1], [0], [0], [1], [0, 0, 1, 1], [], []>} : vector<8x256xbf16>, vector<256x512xbf16>, vector<8x512xf32> -> vector<8x512xf32>
    %c0_15 = arith.constant 0 : index
    %c0_16 = arith.constant 0 : index
    %18 = vector.load %arg7[%c0_15, %c0_16] : memref<1x512xf32, #tpu.memory_space<vmem>>, vector<1x512xf32>
    %19 = vector.broadcast %18 : vector<1x512xf32> to vector<8x512xf32>
    %20 = arith.addf %17, %19 : vector<8x512xf32>
    %cst_17 = arith.constant 0.000000e+00 : f32
    %21 = vector.broadcast %cst_17 : f32 to vector<8x512xf32>
    %22 = arith.maximumf %20, %21 : vector<8x512xf32>
    %23 = arith.truncf %22 : vector<8x512xf32> to vector<8x512xbf16>
    %c0_18 = arith.constant 0 : index
    %c0_19 = arith.constant 0 : index
    %24 = vector.load %arg8[%c0_18, %c0_19] : memref<512x256xbf16, #tpu.memory_space<vmem>>, vector<512x256xbf16>
    %cst_20 = arith.constant dense<0.000000e+00> : vector<8x256xf32>
    %25 = tpu.matmul %23, %24, %cst_20 {dimension_numbers = #tpu.dot_dimension_numbers<[1], [0], [0], [1], [0, 0, 1, 1], [], []>} : vector<8x512xbf16>, vector<512x256xbf16>, vector<8x256xf32> -> vector<8x256xf32>
    %c0_21 = arith.constant 0 : index
    %c0_22 = arith.constant 0 : index
    %26 = vector.load %arg9[%c0_21, %c0_22] : memref<512x256xbf16, #tpu.memory_space<vmem>>, vector<512x256xbf16>
    %cst_23 = arith.constant dense<0.000000e+00> : vector<8x256xf32>
    %27 = tpu.matmul %23, %26, %cst_23 {dimension_numbers = #tpu.dot_dimension_numbers<[1], [0], [0], [1], [0, 0, 1, 1], [], []>} : vector<8x512xbf16>, vector<512x256xbf16>, vector<8x256xf32> -> vector<8x256xf32>
    %28 = arith.maximumf %25, %27 : vector<8x256xf32>
    %c0_24 = arith.constant 0 : index
    %c0_25 = arith.constant 0 : index
    %29 = vector.load %arg10[%c0_24, %c0_25] : memref<1x256xf32, #tpu.memory_space<vmem>>, vector<1x256xf32>
    %30 = vector.broadcast %29 : vector<1x256xf32> to vector<8x256xf32>
    %31 = arith.addf %28, %30 : vector<8x256xf32>
    %32 = vector.extract_strided_slice %31 {offsets = [0, 0], sizes = [8, 32], strides = [1, 1]} : vector<8x256xf32> to vector<8x32xf32>
    %33 = vector.extract_strided_slice %31 {offsets = [0, 32], sizes = [8, 32], strides = [1, 1]} : vector<8x256xf32> to vector<8x32xf32>
    %34 = vector.extract_strided_slice %31 {offsets = [0, 64], sizes = [8, 32], strides = [1, 1]} : vector<8x256xf32> to vector<8x32xf32>
    %35 = vector.extract_strided_slice %31 {offsets = [0, 96], sizes = [8, 32], strides = [1, 1]} : vector<8x256xf32> to vector<8x32xf32>
    %36 = vector.extract_strided_slice %31 {offsets = [0, 128], sizes = [8, 32], strides = [1, 1]} : vector<8x256xf32> to vector<8x32xf32>
    %37 = vector.extract_strided_slice %31 {offsets = [0, 160], sizes = [8, 32], strides = [1, 1]} : vector<8x256xf32> to vector<8x32xf32>
    %38 = vector.extract_strided_slice %31 {offsets = [0, 192], sizes = [8, 32], strides = [1, 1]} : vector<8x256xf32> to vector<8x32xf32>
    %39 = vector.extract_strided_slice %31 {offsets = [0, 224], sizes = [8, 32], strides = [1, 1]} : vector<8x256xf32> to vector<8x32xf32>
    %40 = tpu.concatenate %32, %33, %34, %35, %36, %37, %38, %39 in 0 : vector<8x32xf32>, vector<8x32xf32>, vector<8x32xf32>, vector<8x32xf32>, vector<8x32xf32>, vector<8x32xf32>, vector<8x32xf32>, vector<8x32xf32> -> vector<64x32xf32>
    %41 = arith.truncf %40 : vector<64x32xf32> to vector<64x32xbf16>
    %c0_26 = arith.constant 0 : index
    %c0_27 = arith.constant 0 : index
    %42 = vector.load %arg11[%c0_26, %c0_27] : memref<32x32xbf16, #tpu.memory_space<vmem>>, vector<32x32xbf16>
    %cst_28 = arith.constant dense<0.000000e+00> : vector<64x32xf32>
    %43 = tpu.matmul %41, %42, %cst_28 {dimension_numbers = #tpu.dot_dimension_numbers<[1], [0], [0], [1], [0, 0, 1, 1], [], []>} : vector<64x32xbf16>, vector<32x32xbf16>, vector<64x32xf32> -> vector<64x32xf32>
    %c0_29 = arith.constant 0 : index
    %c0_30 = arith.constant 0 : index
    %44 = vector.load %arg12[%c0_29, %c0_30] : memref<1x32xf32, #tpu.memory_space<vmem>>, vector<1x32xf32>
    %45 = vector.broadcast %44 : vector<1x32xf32> to vector<64x32xf32>
    %46 = arith.addf %43, %45 : vector<64x32xf32>
    %cst_31 = arith.constant 0.353553385 : f32
    %47 = vector.broadcast %cst_31 : f32 to vector<64x32xf32>
    %48 = arith.mulf %46, %47 : vector<64x32xf32>
    %49 = arith.truncf %48 : vector<64x32xf32> to vector<64x32xbf16>
    %c0_32 = arith.constant 0 : index
    %c0_33 = arith.constant 0 : index
    %50 = vector.load %arg13[%c0_32, %c0_33] : memref<32x32xbf16, #tpu.memory_space<vmem>>, vector<32x32xbf16>
    %cst_34 = arith.constant dense<0.000000e+00> : vector<64x32xf32>
    %51 = tpu.matmul %41, %50, %cst_34 {dimension_numbers = #tpu.dot_dimension_numbers<[1], [0], [0], [1], [0, 0, 1, 1], [], []>} : vector<64x32xbf16>, vector<32x32xbf16>, vector<64x32xf32> -> vector<64x32xf32>
    %c0_35 = arith.constant 0 : index
    %c0_36 = arith.constant 0 : index
    %52 = vector.load %arg14[%c0_35, %c0_36] : memref<1x32xf32, #tpu.memory_space<vmem>>, vector<1x32xf32>
    %53 = vector.broadcast %52 : vector<1x32xf32> to vector<64x32xf32>
    %54 = arith.addf %51, %53 : vector<64x32xf32>
    %55 = arith.truncf %54 : vector<64x32xf32> to vector<64x32xbf16>
    %c0_37 = arith.constant 0 : index
    %c0_38 = arith.constant 0 : index
    %56 = vector.load %arg15[%c0_37, %c0_38] : memref<32x32xbf16, #tpu.memory_space<vmem>>, vector<32x32xbf16>
    %cst_39 = arith.constant dense<0.000000e+00> : vector<64x32xf32>
    %57 = tpu.matmul %41, %56, %cst_39 {dimension_numbers = #tpu.dot_dimension_numbers<[1], [0], [0], [1], [0, 0, 1, 1], [], []>} : vector<64x32xbf16>, vector<32x32xbf16>, vector<64x32xf32> -> vector<64x32xf32>
    %c0_40 = arith.constant 0 : index
    %c0_41 = arith.constant 0 : index
    %58 = vector.load %arg16[%c0_40, %c0_41] : memref<1x32xf32, #tpu.memory_space<vmem>>, vector<1x32xf32>
    %59 = vector.broadcast %58 : vector<1x32xf32> to vector<64x32xf32>
    %60 = arith.addf %57, %59 : vector<64x32xf32>
    %61 = arith.truncf %60 : vector<64x32xf32> to vector<64x32xbf16>
    %c0_42 = arith.constant 0 : index
    %c0_43 = arith.constant 0 : index
    %62 = vector.load %arg19[%c0_42, %c0_43] : memref<64x64xf32, #tpu.memory_space<vmem>>, vector<64x64xf32>
    %c0_44 = arith.constant 0 : index
    %c0_45 = arith.constant 0 : index
    %63 = vector.load %arg20[%c0_44, %c0_45] : memref<8x64xbf16, #tpu.memory_space<vmem>>, vector<8x64xbf16>
    %64 = vector.extract_strided_slice %49 {offsets = [0, 0], sizes = [64, 8], strides = [1, 1]} : vector<64x32xbf16> to vector<64x8xbf16>
    %65 = vector.extract_strided_slice %55 {offsets = [0, 0], sizes = [64, 8], strides = [1, 1]} : vector<64x32xbf16> to vector<64x8xbf16>
    %cst_46 = arith.constant dense<0.000000e+00> : vector<64x64xf32>
    %66 = tpu.matmul %64, %65, %cst_46 {dimension_numbers = #tpu.dot_dimension_numbers<[1], [1], [0], [0], [0, 0, 1, 0], [], []>} : vector<64x8xbf16>, vector<64x8xbf16>, vector<64x64xf32> -> vector<64x64xf32>
    %67 = arith.addf %66, %62 : vector<64x64xf32>
    %cst_47 = arith.constant dense<0xFF800000> : vector<64xf32>
    %68 = vector.multi_reduction <maximumf>, %67, %cst_47 [1] : vector<64x64xf32> to vector<64xf32>
    %69 = vector.shape_cast %68 : vector<64xf32> to vector<64x1xf32>
    %70 = vector.broadcast %69 : vector<64x1xf32> to vector<64x64xf32>
    %71 = arith.subf %67, %70 : vector<64x64xf32>
    %72 = math.exp %71 : vector<64x64xf32>
    %cst_48 = arith.constant dense<0.000000e+00> : vector<64xf32>
    %73 = vector.multi_reduction <add>, %72, %cst_48 [1] : vector<64x64xf32> to vector<64xf32>
    %74 = vector.shape_cast %73 : vector<64xf32> to vector<64x1xf32>
    %75 = tpu.reciprocal %74 {approx = true} : vector<64x1xf32> -> vector<64x1xf32>
    %76 = vector.broadcast %75 : vector<64x1xf32> to vector<64x64xf32>
    %77 = arith.mulf %72, %76 : vector<64x64xf32>
    %78 = arith.truncf %77 : vector<64x64xf32> to vector<64x64xbf16>
    %cst_49 = arith.constant dense<0.000000e+00> : vector<8x64xf32>
    %79 = tpu.matmul %63, %78, %cst_49 {dimension_numbers = #tpu.dot_dimension_numbers<[1], [0], [0], [1], [0, 0, 1, 1], [], []>} : vector<8x64xbf16>, vector<64x64xbf16>, vector<8x64xf32> -> vector<8x64xf32>
    %80 = arith.truncf %79 : vector<8x64xf32> to vector<8x64xbf16>
    %81 = vector.extract_strided_slice %61 {offsets = [0, 0], sizes = [64, 8], strides = [1, 1]} : vector<64x32xbf16> to vector<64x8xbf16>
    %cst_50 = arith.constant dense<0.000000e+00> : vector<8x8xf32>
    %82 = tpu.matmul %80, %81, %cst_50 {dimension_numbers = #tpu.dot_dimension_numbers<[1], [0], [0], [1], [0, 0, 1, 1], [], []>} : vector<8x64xbf16>, vector<64x8xbf16>, vector<8x8xf32> -> vector<8x8xf32>
    %83 = vector.extract_strided_slice %49 {offsets = [0, 8], sizes = [64, 8], strides = [1, 1]} : vector<64x32xbf16> to vector<64x8xbf16>
    %84 = vector.extract_strided_slice %55 {offsets = [0, 8], sizes = [64, 8], strides = [1, 1]} : vector<64x32xbf16> to vector<64x8xbf16>
    %cst_51 = arith.constant dense<0.000000e+00> : vector<64x64xf32>
    %85 = tpu.matmul %83, %84, %cst_51 {dimension_numbers = #tpu.dot_dimension_numbers<[1], [1], [0], [0], [0, 0, 1, 0], [], []>} : vector<64x8xbf16>, vector<64x8xbf16>, vector<64x64xf32> -> vector<64x64xf32>
    %86 = arith.addf %85, %62 : vector<64x64xf32>
    %cst_52 = arith.constant dense<0xFF800000> : vector<64xf32>
    %87 = vector.multi_reduction <maximumf>, %86, %cst_52 [1] : vector<64x64xf32> to vector<64xf32>
    %88 = vector.shape_cast %87 : vector<64xf32> to vector<64x1xf32>
    %89 = vector.broadcast %88 : vector<64x1xf32> to vector<64x64xf32>
    %90 = arith.subf %86, %89 : vector<64x64xf32>
    %91 = math.exp %90 : vector<64x64xf32>
    %cst_53 = arith.constant dense<0.000000e+00> : vector<64xf32>
    %92 = vector.multi_reduction <add>, %91, %cst_53 [1] : vector<64x64xf32> to vector<64xf32>
    %93 = vector.shape_cast %92 : vector<64xf32> to vector<64x1xf32>
    %94 = tpu.reciprocal %93 {approx = true} : vector<64x1xf32> -> vector<64x1xf32>
    %95 = vector.broadcast %94 : vector<64x1xf32> to vector<64x64xf32>
    %96 = arith.mulf %91, %95 : vector<64x64xf32>
    %97 = arith.truncf %96 : vector<64x64xf32> to vector<64x64xbf16>
    %cst_54 = arith.constant dense<0.000000e+00> : vector<8x64xf32>
    %98 = tpu.matmul %63, %97, %cst_54 {dimension_numbers = #tpu.dot_dimension_numbers<[1], [0], [0], [1], [0, 0, 1, 1], [], []>} : vector<8x64xbf16>, vector<64x64xbf16>, vector<8x64xf32> -> vector<8x64xf32>
    %99 = arith.truncf %98 : vector<8x64xf32> to vector<8x64xbf16>
    %100 = vector.extract_strided_slice %61 {offsets = [0, 8], sizes = [64, 8], strides = [1, 1]} : vector<64x32xbf16> to vector<64x8xbf16>
    %cst_55 = arith.constant dense<0.000000e+00> : vector<8x8xf32>
    %101 = tpu.matmul %99, %100, %cst_55 {dimension_numbers = #tpu.dot_dimension_numbers<[1], [0], [0], [1], [0, 0, 1, 1], [], []>} : vector<8x64xbf16>, vector<64x8xbf16>, vector<8x8xf32> -> vector<8x8xf32>
    %102 = vector.extract_strided_slice %49 {offsets = [0, 16], sizes = [64, 8], strides = [1, 1]} : vector<64x32xbf16> to vector<64x8xbf16>
    %103 = vector.extract_strided_slice %55 {offsets = [0, 16], sizes = [64, 8], strides = [1, 1]} : vector<64x32xbf16> to vector<64x8xbf16>
    %cst_56 = arith.constant dense<0.000000e+00> : vector<64x64xf32>
    %104 = tpu.matmul %102, %103, %cst_56 {dimension_numbers = #tpu.dot_dimension_numbers<[1], [1], [0], [0], [0, 0, 1, 0], [], []>} : vector<64x8xbf16>, vector<64x8xbf16>, vector<64x64xf32> -> vector<64x64xf32>
    %105 = arith.addf %104, %62 : vector<64x64xf32>
    %cst_57 = arith.constant dense<0xFF800000> : vector<64xf32>
    %106 = vector.multi_reduction <maximumf>, %105, %cst_57 [1] : vector<64x64xf32> to vector<64xf32>
    %107 = vector.shape_cast %106 : vector<64xf32> to vector<64x1xf32>
    %108 = vector.broadcast %107 : vector<64x1xf32> to vector<64x64xf32>
    %109 = arith.subf %105, %108 : vector<64x64xf32>
    %110 = math.exp %109 : vector<64x64xf32>
    %cst_58 = arith.constant dense<0.000000e+00> : vector<64xf32>
    %111 = vector.multi_reduction <add>, %110, %cst_58 [1] : vector<64x64xf32> to vector<64xf32>
    %112 = vector.shape_cast %111 : vector<64xf32> to vector<64x1xf32>
    %113 = tpu.reciprocal %112 {approx = true} : vector<64x1xf32> -> vector<64x1xf32>
    %114 = vector.broadcast %113 : vector<64x1xf32> to vector<64x64xf32>
    %115 = arith.mulf %110, %114 : vector<64x64xf32>
    %116 = arith.truncf %115 : vector<64x64xf32> to vector<64x64xbf16>
    %cst_59 = arith.constant dense<0.000000e+00> : vector<8x64xf32>
    %117 = tpu.matmul %63, %116, %cst_59 {dimension_numbers = #tpu.dot_dimension_numbers<[1], [0], [0], [1], [0, 0, 1, 1], [], []>} : vector<8x64xbf16>, vector<64x64xbf16>, vector<8x64xf32> -> vector<8x64xf32>
    %118 = arith.truncf %117 : vector<8x64xf32> to vector<8x64xbf16>
    %119 = vector.extract_strided_slice %61 {offsets = [0, 16], sizes = [64, 8], strides = [1, 1]} : vector<64x32xbf16> to vector<64x8xbf16>
    %cst_60 = arith.constant dense<0.000000e+00> : vector<8x8xf32>
    %120 = tpu.matmul %118, %119, %cst_60 {dimension_numbers = #tpu.dot_dimension_numbers<[1], [0], [0], [1], [0, 0, 1, 1], [], []>} : vector<8x64xbf16>, vector<64x8xbf16>, vector<8x8xf32> -> vector<8x8xf32>
    %121 = vector.extract_strided_slice %49 {offsets = [0, 24], sizes = [64, 8], strides = [1, 1]} : vector<64x32xbf16> to vector<64x8xbf16>
    %122 = vector.extract_strided_slice %55 {offsets = [0, 24], sizes = [64, 8], strides = [1, 1]} : vector<64x32xbf16> to vector<64x8xbf16>
    %cst_61 = arith.constant dense<0.000000e+00> : vector<64x64xf32>
    %123 = tpu.matmul %121, %122, %cst_61 {dimension_numbers = #tpu.dot_dimension_numbers<[1], [1], [0], [0], [0, 0, 1, 0], [], []>} : vector<64x8xbf16>, vector<64x8xbf16>, vector<64x64xf32> -> vector<64x64xf32>
    %124 = arith.addf %123, %62 : vector<64x64xf32>
    %cst_62 = arith.constant dense<0xFF800000> : vector<64xf32>
    %125 = vector.multi_reduction <maximumf>, %124, %cst_62 [1] : vector<64x64xf32> to vector<64xf32>
    %126 = vector.shape_cast %125 : vector<64xf32> to vector<64x1xf32>
    %127 = vector.broadcast %126 : vector<64x1xf32> to vector<64x64xf32>
    %128 = arith.subf %124, %127 : vector<64x64xf32>
    %129 = math.exp %128 : vector<64x64xf32>
    %cst_63 = arith.constant dense<0.000000e+00> : vector<64xf32>
    %130 = vector.multi_reduction <add>, %129, %cst_63 [1] : vector<64x64xf32> to vector<64xf32>
    %131 = vector.shape_cast %130 : vector<64xf32> to vector<64x1xf32>
    %132 = tpu.reciprocal %131 {approx = true} : vector<64x1xf32> -> vector<64x1xf32>
    %133 = vector.broadcast %132 : vector<64x1xf32> to vector<64x64xf32>
    %134 = arith.mulf %129, %133 : vector<64x64xf32>
    %135 = arith.truncf %134 : vector<64x64xf32> to vector<64x64xbf16>
    %cst_64 = arith.constant dense<0.000000e+00> : vector<8x64xf32>
    %136 = tpu.matmul %63, %135, %cst_64 {dimension_numbers = #tpu.dot_dimension_numbers<[1], [0], [0], [1], [0, 0, 1, 1], [], []>} : vector<8x64xbf16>, vector<64x64xbf16>, vector<8x64xf32> -> vector<8x64xf32>
    %137 = arith.truncf %136 : vector<8x64xf32> to vector<8x64xbf16>
    %138 = vector.extract_strided_slice %61 {offsets = [0, 24], sizes = [64, 8], strides = [1, 1]} : vector<64x32xbf16> to vector<64x8xbf16>
    %cst_65 = arith.constant dense<0.000000e+00> : vector<8x8xf32>
    %139 = tpu.matmul %137, %138, %cst_65 {dimension_numbers = #tpu.dot_dimension_numbers<[1], [0], [0], [1], [0, 0, 1, 1], [], []>} : vector<8x64xbf16>, vector<64x8xbf16>, vector<8x8xf32> -> vector<8x8xf32>
    %140 = tpu.concatenate %82, %101, %120, %139 in 1 : vector<8x8xf32>, vector<8x8xf32>, vector<8x8xf32>, vector<8x8xf32> -> vector<8x32xf32>
    %141 = arith.truncf %140 : vector<8x32xf32> to vector<8x32xbf16>
    %c0_66 = arith.constant 0 : index
    %c0_67 = arith.constant 0 : index
    %142 = vector.load %arg17[%c0_66, %c0_67] : memref<32x32xbf16, #tpu.memory_space<vmem>>, vector<32x32xbf16>
    %cst_68 = arith.constant dense<0.000000e+00> : vector<8x32xf32>
    %143 = tpu.matmul %141, %142, %cst_68 {dimension_numbers = #tpu.dot_dimension_numbers<[1], [0], [0], [1], [0, 0, 1, 1], [], []>} : vector<8x32xbf16>, vector<32x32xbf16>, vector<8x32xf32> -> vector<8x32xf32>
    %c0_69 = arith.constant 0 : index
    %c0_70 = arith.constant 0 : index
    %144 = vector.load %arg18[%c0_69, %c0_70] : memref<1x32xf32, #tpu.memory_space<vmem>>, vector<1x32xf32>
    %145 = vector.broadcast %144 : vector<1x32xf32> to vector<8x32xf32>
    %146 = arith.addf %143, %145 : vector<8x32xf32>
    %c0_71 = arith.constant 0 : index
    %c0_72 = arith.constant 0 : index
    %147 = vector.load %arg21[%c0_71, %c0_72] : memref<8x32xf32, #tpu.memory_space<vmem>>, vector<8x32xf32>
    tpu.vector_store %arg21[%c0_71, %c0_72], %146 {strides = array<i32>} : memref<8x32xf32, #tpu.memory_space<vmem>>, vector<8x32xf32>,
    return
  }
  func.func @transform_0(%arg0: i32) -> (i32, i32) {
    %c0_i32 = arith.constant 0 : i32
    %c0_i32_0 = arith.constant 0 : i32
    return %arg0, %c0_i32 : i32, i32
  }
  func.func @transform_1(%arg0: i32) -> (i32, i32) {
    %c0_i32 = arith.constant 0 : i32
    %c0_i32_0 = arith.constant 0 : i32
    %c0_i32_1 = arith.constant 0 : i32
    return %c0_i32, %c0_i32_0 : i32, i32
  }
  func.func @transform_2(%arg0: i32) -> (i32, i32) {
    %c0_i32 = arith.constant 0 : i32
    %c0_i32_0 = arith.constant 0 : i32
    %c0_i32_1 = arith.constant 0 : i32
    return %c0_i32, %c0_i32_0 : i32, i32
  }
  func.func @transform_3(%arg0: i32) -> (i32, i32) {
    %c0_i32 = arith.constant 0 : i32
    %c0_i32_0 = arith.constant 0 : i32
    %c0_i32_1 = arith.constant 0 : i32
    return %c0_i32, %c0_i32_0 : i32, i32
  }
  func.func @transform_4(%arg0: i32) -> (i32, i32) {
    %c0_i32 = arith.constant 0 : i32
    %c0_i32_0 = arith.constant 0 : i32
    %c0_i32_1 = arith.constant 0 : i32
    return %c0_i32, %c0_i32_0 : i32, i32
  }
  func.func @transform_5(%arg0: i32) -> (i32, i32) {
    %c0_i32 = arith.constant 0 : i32
    %c0_i32_0 = arith.constant 0 : i32
    %c0_i32_1 = arith.constant 0 : i32
    return %c0_i32, %c0_i32_0 : i32, i32
  }
  func.func @transform_6(%arg0: i32) -> (i32, i32) {
    %c0_i32 = arith.constant 0 : i32
    %c0_i32_0 = arith.constant 0 : i32
    %c0_i32_1 = arith.constant 0 : i32
    return %c0_i32, %c0_i32_0 : i32, i32
  }
  func.func @transform_7(%arg0: i32) -> (i32, i32) {
    %c0_i32 = arith.constant 0 : i32
    %c0_i32_0 = arith.constant 0 : i32
    %c0_i32_1 = arith.constant 0 : i32
    return %c0_i32, %c0_i32_0 : i32, i32
  }
  func.func @transform_8(%arg0: i32) -> (i32, i32) {
    %c0_i32 = arith.constant 0 : i32
    %c0_i32_0 = arith.constant 0 : i32
    %c0_i32_1 = arith.constant 0 : i32
    return %c0_i32, %c0_i32_0 : i32, i32
  }
  func.func @transform_9(%arg0: i32) -> (i32, i32) {
    %c0_i32 = arith.constant 0 : i32
    %c0_i32_0 = arith.constant 0 : i32
    %c0_i32_1 = arith.constant 0 : i32
    return %c0_i32, %c0_i32_0 : i32, i32
  }
  func.func @transform_10(%arg0: i32) -> (i32, i32) {
    %c0_i32 = arith.constant 0 : i32
    %c0_i32_0 = arith.constant 0 : i32
    %c0_i32_1 = arith.constant 0 : i32
    return %c0_i32, %c0_i32_0 : i32, i32
  }
  func.func @transform_11(%arg0: i32) -> (i32, i32) {
    %c0_i32 = arith.constant 0 : i32
    %c0_i32_0 = arith.constant 0 : i32
    %c0_i32_1 = arith.constant 0 : i32
    return %c0_i32, %c0_i32_0 : i32, i32
  }
  func.func @transform_12(%arg0: i32) -> (i32, i32) {
    %c0_i32 = arith.constant 0 : i32
    %c0_i32_0 = arith.constant 0 : i32
    %c0_i32_1 = arith.constant 0 : i32
    return %c0_i32, %c0_i32_0 : i32, i32
  }
  func.func @transform_13(%arg0: i32) -> (i32, i32) {
    %c0_i32 = arith.constant 0 : i32
    %c0_i32_0 = arith.constant 0 : i32
    %c0_i32_1 = arith.constant 0 : i32
    return %c0_i32, %c0_i32_0 : i32, i32
  }
  func.func @transform_14(%arg0: i32) -> (i32, i32) {
    %c0_i32 = arith.constant 0 : i32
    %c0_i32_0 = arith.constant 0 : i32
    %c0_i32_1 = arith.constant 0 : i32
    return %c0_i32, %c0_i32_0 : i32, i32
  }
  func.func @transform_15(%arg0: i32) -> (i32, i32) {
    %c0_i32 = arith.constant 0 : i32
    %c0_i32_0 = arith.constant 0 : i32
    %c0_i32_1 = arith.constant 0 : i32
    return %c0_i32, %c0_i32_0 : i32, i32
  }
  func.func @transform_16(%arg0: i32) -> (i32, i32) {
    %c0_i32 = arith.constant 0 : i32
    %c0_i32_0 = arith.constant 0 : i32
    %c0_i32_1 = arith.constant 0 : i32
    return %c0_i32, %c0_i32_0 : i32, i32
  }
  func.func @transform_17(%arg0: i32) -> (i32, i32) {
    %c0_i32 = arith.constant 0 : i32
    %c0_i32_0 = arith.constant 0 : i32
    %c0_i32_1 = arith.constant 0 : i32
    return %c0_i32, %c0_i32_0 : i32, i32
  }
  func.func @transform_18(%arg0: i32) -> (i32, i32) {
    %c0_i32 = arith.constant 0 : i32
    %c0_i32_0 = arith.constant 0 : i32
    %c0_i32_1 = arith.constant 0 : i32
    return %c0_i32, %c0_i32_0 : i32, i32
  }
  func.func @transform_19(%arg0: i32) -> (i32, i32) {
    %c0_i32 = arith.constant 0 : i32
    %c0_i32_0 = arith.constant 0 : i32
    %c0_i32_1 = arith.constant 0 : i32
    return %c0_i32, %c0_i32_0 : i32, i32
  }
  func.func @transform_20(%arg0: i32) -> (i32, i32) {
    %c0_i32 = arith.constant 0 : i32
    %c0_i32_0 = arith.constant 0 : i32
    return %arg0, %c0_i32 : i32, i32
  }
}

</mosaic_0001>

<bundles_post_ra>
// kernel: tpu_custom_call.1
= control target key start
LH: loop header
LB: loop body
LE: loop exit
PB: predicated region body
PF: predicated region fallthrough
CT: control target
= control target key end

     0   :  { %s8373_s0 = inlined_call_operand.hbm [shape: f32[16,36], index: 0, kind: input, shape index: {}]   ;;  %s8374_s1 = inlined_call_operand.hbm [shape: bf16[36,512], index: 1, kind: input, shape index: {}]   ;;  %s8375_s2 = inlined_call_operand.hbm [shape: f32[1,512], index: 2, kind: input, shape index: {}]   ;;  %s8376_s3 = inlined_call_operand.hbm [shape: bf16[512,256], index: 3, kind: input, shape index: {}]   ;;  %s8377_s4 = inlined_call_operand.hbm [shape: bf16[512,256], index: 4, kind: input, shape index: {}]   ;;  %s8378_s5 = inlined_call_operand.hbm [shape: bf16[256,512], index: 5, kind: input, shape index: {}]   ;;  %s8379_s6 = inlined_call_operand.hbm [shape: f32[1,512], index: 6, kind: input, shape index: {}]   ;;  %s8380_s7 = inlined_call_operand.hbm [shape: bf16[512,256], index: 7, kind: input, shape index: {}]   ;;  %s8381_s8 = inlined_call_operand.hbm [shape: bf16[512,256], index: 8, kind: input, shape index: {}]   ;;  %s8382_s9 = inlined_call_operand.hbm [shape: f32[1,256], index: 9, kind: input, shape index: {}]   ;;  %s8383_s10 = inlined_call_operand.vmem [shape: bf16[32,32], index: 10, kind: input, shape index: {}]   ;;  %s8384_s11 = inlined_call_operand.hbm [shape: f32[1,32], index: 11, kind: input, shape index: {}]   ;;  %s8385_s12 = inlined_call_operand.hbm [shape: bf16[32,32], index: 12, kind: input, shape index: {}]   ;;  %s8386_s13 = inlined_call_operand.vmem [shape: f32[1,32], index: 13, kind: input, shape index: {}]   ;;  %s8387_s14 = inlined_call_operand.hbm [shape: bf16[32,32], index: 14, kind: input, shape index: {}]   ;;  %s8388_s15 = inlined_call_operand.vmem [shape: f32[1,32], index: 15, kind: input, shape index: {}]   ;;  %s8389_s16 = inlined_call_operand.hbm [shape: bf16[32,32], index: 16, kind: input, shape index: {}]   ;;  %s8390_s17 = inlined_call_operand.vmem [shape: f32[1,32], index: 17, kind: input, shape index: {}]   ;;  %s8391_s18 = inlined_call_operand.hbm [shape: f32[64,64], index: 18, kind: input, shape index: {}]   ;;  %s8392_s19 = inlined_call_operand.vmem [shape: bf16[8,64], index: 19, kind: input, shape index: {}]   ;;  %s8393_s20 = inlined_call_operand.hbm [shape: f32[16,32], index: 20, kind: output, shape index: {}]  }
   0x1   :  { %8404 = sst [smem:[#allocation36_spill]] %s8373_s0 }
   0x2   :  { %8405 = sst [smem:[#allocation37_spill]] %s8374_s1 }
   0x3   :  { %8406 = sst [smem:[#allocation38_spill]] %s8375_s2 }
   0x4   :  { %8407 = sst [smem:[#allocation39_spill]] %s8376_s3 }
   0x5   :  { %8408 = sst [smem:[#allocation40_spill]] %s8377_s4 }
   0x6   :  { %8409 = sst [smem:[#allocation41_spill]] %s8378_s5 }
   0x7   :  { %8410 = sst [smem:[#allocation42_spill]] %s8379_s6 }
   0x8   :  { %8411 = sst [smem:[#allocation43_spill]] %s8380_s7 }
   0x9   :  { %8412 = sst [smem:[#allocation44_spill]] %s8381_s8 }
   0xa   :  { %8413 = sst [smem:[#allocation45_spill]] %s8382_s9 }
   0xb   :  { %8414 = sst [smem:[#allocation46_spill]] %s8384_s11 }
   0xc   :  { %8415 = sst [smem:[#allocation47_spill]] %s8386_s13 }
   0xd   :  { %8416 = sst [smem:[#allocation48_spill]] %s8388_s15 }
   0xe   :  { %8417 = sst [smem:[#allocation49_spill]] %s8390_s17 }
   0xf   :  { %8418 = sst [smem:[#allocation50_spill]] %s8392_s19 }
  0x10   :  { %8419 = sst [smem:[#allocation51_spill]] %s8393_s20 }
  0x11   :  { %25 = vsyncpa [#allocation3], 0 }
  0x12   :  { %27 = vsyncpa [#allocation3 + $0x1], 0 }
  0x13   :  { %28 = vsyncpa [#allocation6], 0 }
  0x14   :  { %29 = vsyncpa [#allocation9], 0 }
  0x15   :  { %30 = vsyncpa [#allocation12], 0 }
  0x16   :  { %31 = vsyncpa [#allocation15], 0 }
  0x17   :  { %32 = vsyncpa [#allocation18], 0 }
  0x18   :  { %33 = vsyncpa [#allocation21], 0 }
  0x19   :  { %34 = vsyncpa [#allocation24], 0 }
  0x1a   :  { %35 = vsyncpa [#allocation4], 0 }
  0x1b   :  { %37 = vsyncpa [#allocation4 + $0x1], 0  ;;  %s7405_s1 = smov 0   ;;  %s7407_s22 = smov 0  }
  0x1c   :  { %s7409_s23 = smov 0   ;;  %s7411_s24 = smov 0  }
  0x1d LB: > { %s7266_s2 = smov [#allocation5]   ;;  %s7426_s3 = sadd.s32 4294967295, %s7264_s24   ;;  %s7264_s24 = sphi %s7411_s24, %s8469_s24   ;;  %s7260_s23 = sphi %s7409_s23, %s8468_s23   ;;  %s7256_s22 = sphi %s7407_s22, %s8467_s22   ;;  %s7252_s1 = sphi %s7405_s1, %s8466_s1  }
  0x1e   : > { %s511_s25 = sshll.u32 %s7266_s2, 4  ;;  %p5206_p0 = scmp.ge.s32.totalorder %s7264_s24, 1  ;;  %s512_s25 = int_to_ptr.vmem [resolvable:$true] %s511_s25 }
  0x1f   : > { %p8400_p1 = scmp.eq.s32.totalorder %s7426_s3, 0  ;;  %p499_p2 = scmp.lt.s32.totalorder %s7264_s24, 3 }
  0x20   : > { %s7267_s27 = smov [#allocation8]   ;;  %s7268_s29 = smov [#allocation11]  }
  0x21   : > { %p7431_p3 = pnand %p5206_p0, %p499_p2  ;;  %s535_s28 = sshll.u32 %s7267_s27, 4  ;;  %s7444_s28 = int_to_ptr.vmem [resolvable:$true] %s535_s28 }
  0x22   : > { %s7446_s30 = sshll.u32 %s7268_s29, 4  ;;  %s6791_s21 = scalar_lea.vmem %s512_s25, 1280  ;;  %s562_s30 = int_to_ptr.vmem [resolvable:$true] %s7446_s30 }
  0x23   : > { %s8420_s26 = scalar_select %p7431_p3, 1, 0 }
  0x24   : > { %p6003_p5 = pneg %p7431_p3  ;;  %p6792_p8 = scmp.ne.s32.totalorder %s512_s25, %s6791_s21 }
  0x25   : > { %p6799_p11 = scmp.lt.s32.totalorder %s512_s25, %s512_s25  ;;  %p6800_p12 = scmp.lt.s32.totalorder %s6791_s21, %s6791_s21 }
  0x26   : > { %p7440_p6 = pnand %p6003_p5, %p8400_p1 }
  0x27   : > { %p6801_p13 = por %p6800_p12, %p6799_p11 }
  0x28   : > { %p7450_p7 = pneg %p7440_p6 }
  0x2a   : > { %p6794_p9 = pnand %p6792_p8, %p7450_p7 }
  0x2c   : > { %p6795_p10 = pneg %p6794_p9 }
  0x2e   : > { %p6802_p0 = pnand %p6801_p13, %p6795_p10 }
  0x30   : > { %6805 = shalt.err (!%p6802_p0)
}
  0x31   : > { %s7269_s2 = smov 256   ;;  %s7270_s27 = smov 16  }
  0x32   : > { %s8423_s17 = sld [smem:[#allocation37_spill]]  ;;  %s6817_s19 = scalar_lea.vmem %s7444_s28, 8192 }
  0x33   : > { %p6818_p2 = scmp.ne.s32.totalorder %s7444_s28, %s6817_s19  ;;  %p6825_p9 = scmp.lt.s32.totalorder %s7444_s28, %s7444_s28 }
  0x34   : > { %p6826_p10 = scmp.lt.s32.totalorder %s6817_s19, %s6817_s19 }
  0x35   : > { %p6820_p5 = pnand %p6818_p2, %p7450_p7 }
  0x36   : > { %p6827_p11 = por %p6826_p10, %p6825_p9 }
  0x37   : > { %p6821_p8 = pneg %p6820_p5 }
  0x38   : > { %6006 = dma.hbm_to_vmem [thread:$0]  (!%p7440_p6), %s8423_s17, 1280, %s512_s25, [#allocation6], %s7269_s2, %s7269_s2, %s7270_s27  }
  0x39   : > { %p6828_p12 = pnand %p6827_p11, %p6821_p8 }
  0x3b   : > { %6831 = shalt.err (!%p6828_p12)
}
  0x3c   : > { %s8396_s21 = smov 128   ;;  %s7272_s15 = smov 8  }
  0x3d   : > { %s8424_s25 = sld [smem:[#allocation39_spill]]  ;;  %s6843_s29 = scalar_lea.vmem %s562_s30, 8192 }
  0x3e   : > { %p6844_p13 = scmp.ne.s32.totalorder %s562_s30, %s6843_s29  ;;  %p6851_p5 = scmp.lt.s32.totalorder %s562_s30, %s562_s30 }
  0x3f   : > { %p6852_p8 = scmp.lt.s32.totalorder %s6843_s29, %s6843_s29 }
  0x40   : > { %p6846_p0 = pnand %p6844_p13, %p7450_p7 }
  0x41   : > { %p6853_p9 = por %p6852_p8, %p6851_p5 }
  0x42   : > { %p6847_p2 = pneg %p6846_p0 }
  0x43   : > { %6012 = dma.hbm_to_vmem [thread:$0]  (!%p7440_p6), %s8424_s25, 8192, %s7444_s28, [#allocation9], %s8396_s21, %s8396_s21, %s7272_s15  }
  0x44   : > { %p6854_p10 = pnand %p6853_p9, %p6847_p2 }
  0x46   : > { %6857 = shalt.err (!%p6854_p10)
}
  0x47   : > { %s8425_s5 = sld [smem:[#allocation41_spill]]  ;;  %s7273_s17 = smov [#allocation14]  }
  0x48   : > { %s585_s28 = sshll.u32 %s7273_s17, 4  ;;  %s7274_s20 = smov [#allocation17]   ;;  %s586_s28 = int_to_ptr.vmem [resolvable:$true] %s585_s28 }
  0x49   : > { %s612_s25 = sshll.u32 %s7274_s20, 4  ;;  %s6869_s21 = scalar_lea.vmem %s586_s28, 8192  ;;  %s613_s25 = int_to_ptr.vmem [resolvable:$true] %s612_s25 }
  0x4a   : > { %p6870_p11 = scmp.ne.s32.totalorder %s586_s28, %s6869_s21  ;;  %p6877_p0 = scmp.lt.s32.totalorder %s586_s28, %s586_s28 }
  0x4b   : > { %p6878_p2 = scmp.lt.s32.totalorder %s6869_s21, %s6869_s21 }
  0x4c   : > { %p6872_p12 = pnand %p6870_p11, %p7450_p7 }
  0x4d   : > { %6018 = dma.hbm_to_vmem [thread:$0]  (!%p7440_p6), %s8425_s5, 8192, %s562_s30, [#allocation12], %s7269_s2, %s7269_s2, %s7270_s27  }
  0x4e   : > { %p6873_p13 = pneg %p6872_p12  ;;  %p6879_p5 = por %p6878_p2, %p6877_p0 }
  0x50   : > { %p6880_p8 = pnand %p6879_p5, %p6873_p13 }
  0x52   : > { %6883 = shalt.err (!%p6880_p8)
}
  0x53   : > { %s8426_s13 = smov 128   ;;  %s8427_s7 = sld [smem:[#allocation43_spill]] }
  0x54   : > { %s6895_s27 = scalar_lea.vmem %s613_s25, 32  ;;  %p6903_p12 = scmp.lt.s32.totalorder %s613_s25, %s613_s25 }
  0x55   : > { %p6896_p9 = scmp.ne.s32.totalorder %s613_s25, %s6895_s27  ;;  %p6904_p0 = scmp.lt.s32.totalorder %s6895_s27, %s6895_s27 }
  0x57   : > { %p6898_p10 = pnand %p6896_p9, %p7450_p7  ;;  %p6905_p13 = por %p6904_p0, %p6903_p12 }
  0x59   : > { %6024 = dma.hbm_to_vmem [thread:$0]  (!%p7440_p6), %s8427_s7, 8192, %s586_s28, [#allocation15], %s8426_s13, %s8426_s13, %s7272_s15  }
  0x5a   : > { %p6899_p11 = pneg %p6898_p10 }
  0x5c   : > { %p6906_p2 = pnand %p6905_p13, %p6899_p11 }
  0x5e   : > { %6909 = shalt.err (!%p6906_p2)
}
  0x5f   : > { %s8428_s9 = sld [smem:[#allocation45_spill]]  ;;  %s7275_s19 = smov [#allocation20]  }
  0x60   : > { %s636_s17 = sshll.u32 %s7275_s19, 4  ;;  %s637_s17 = int_to_ptr.vmem [resolvable:$true] %s636_s17 }
  0x61   : > { %s6921_s28 = scalar_lea.vmem %s637_s17, 256  ;;  %p6929_p10 = scmp.lt.s32.totalorder %s637_s17, %s637_s17 }
  0x62   : > { %p6922_p5 = scmp.ne.s32.totalorder %s637_s17, %s6921_s28  ;;  %p6930_p4 = scmp.lt.s32.totalorder %s6921_s28, %s6921_s28 }
  0x64   : > { %p6924_p8 = pnand %p6922_p5, %p7450_p7  ;;  %p6931_p12 = por %p6930_p4, %p6929_p10 }
  0x65   : > { %6030 = dma.hbm_to_vmem [thread:$0]  (!%p7440_p6), %s8428_s9, 32, %s613_s25, [#allocation18]  }
  0x66   : > { %p6925_p9 = pneg %p6924_p8 }
  0x68   : > { %p6932_p11 = pnand %p6931_p12, %p6925_p9 }
  0x6a   : > { %6935 = shalt.err (!%p6932_p11)
}
  0x6b   : > { %s8398_s20 = smov 64   ;;  %s8399_s30 = smov 4  }
  0x6c   : > { %6036 = dma.hbm_to_vmem [thread:$0]  (!%p7440_p6), %s8385_s12, 256, %s637_s17, [#allocation21], %s8398_s20, %s8398_s20, %s8399_s30  }
  0x6d   : > { %s7278_s27 = smov [#allocation23]   ;;  %s7279_s29 = smov [#allocation7]  }
  0x6e   : > { %s668_s21 = sshll.u32 %s7278_s27, 4  ;;  %s525_s19 = sshll.u32 %s7279_s29, 4  ;;  %s669_s21 = int_to_ptr.vmem [resolvable:$true] %s668_s21  ;;  %s526_s19 = int_to_ptr.vmem [resolvable:$true] %s525_s19 }
  0x6f   : > { %s6947_s28 = scalar_lea.vmem %s669_s21, 256  ;;  %p6955_p2 = scmp.lt.s32.totalorder %s669_s21, %s669_s21 }
  0x70   : > { %p6948_p4 = scmp.ne.s32.totalorder %s669_s21, %s6947_s28  ;;  %p6956_p5 = scmp.lt.s32.totalorder %s6947_s28, %s6947_s28 }
  0x72   : > { %p6950_p0 = pnand %p6948_p4, %p7450_p7  ;;  %p6957_p8 = por %p6956_p5, %p6955_p2 }
  0x74   : > { %p6951_p13 = pneg %p6950_p0 }
  0x76   : > { %p6958_p9 = pnand %p6957_p8, %p6951_p13 }
  0x78   : > { %6961 = shalt.err (!%p6958_p9)
}
  0x79   : > { %6042 = dma.hbm_to_vmem [thread:$0]  (!%p7440_p6), %s8389_s16, 256, %s669_s21, [#allocation24], %s8398_s20, %s8398_s20, %s8399_s30  }
  0x7a   : > { %s6973_s2 = scalar_lea.vmem %s526_s19, 64  ;;  %p6981_p4 = scmp.lt.s32.totalorder %s526_s19, %s526_s19 }
  0x7b   : > { %p6974_p10 = scmp.ne.s32.totalorder %s526_s19, %s6973_s2  ;;  %p6982_p0 = scmp.lt.s32.totalorder %s6973_s2, %s6973_s2 }
  0x7d   : > { %p6976_p12 = pnand %p6974_p10, %p7450_p7  ;;  %p6983_p2 = por %p6982_p0, %p6981_p4 }
  0x7f   : > { %p6977_p11 = pneg %p6976_p12 }
  0x81   : > { %p6984_p13 = pnand %p6983_p2, %p6977_p11 }
  0x83   : > { %6987 = shalt.err (!%p6984_p13)
}
  0x84   : > { %s8429_s28 = sld [smem:[#allocation38_spill]]  ;;  %s7280_s17 = smov [#allocation10]  }
  0x85   : > { %s548_s25 = sshll.u32 %s7280_s17, 4  ;;  %s7281_s21 = smov [#allocation13]   ;;  %s549_s25 = int_to_ptr.vmem [resolvable:$true] %s548_s25 }
  0x86   : > { %s575_s20 = sshll.u32 %s7281_s21, 4  ;;  %s6999_s30 = scalar_lea.vmem %s549_s25, 8192  ;;  %s576_s20 = int_to_ptr.vmem [resolvable:$true] %s575_s20 }
  0x87   : > { %p7000_p5 = scmp.ne.s32.totalorder %s549_s25, %s6999_s30  ;;  %p7007_p10 = scmp.lt.s32.totalorder %s549_s25, %s549_s25 }
  0x88   : > { %p7008_p12 = scmp.lt.s32.totalorder %s6999_s30, %s6999_s30 }
  0x89   : > { %p7002_p8 = pnand %p7000_p5, %p7450_p7 }
  0x8a   : > { %6009 = dma.hbm_to_vmem [thread:$0]  (!%p7440_p6), %s8429_s28, 64, %s526_s19, [#allocation6]  }
  0x8b   : > { %p7003_p9 = pneg %p7002_p8  ;;  %p7009_p11 = por %p7008_p12, %p7007_p10 }
  0x8d   : > { %p7010_p4 = pnand %p7009_p11, %p7003_p9 }
  0x8f   : > { %7013 = shalt.err (!%p7010_p4)
}
  0x90   : > { %s8430_s27 = sld [smem:[#allocation40_spill]]  ;;  %s7025_s29 = scalar_lea.vmem %s576_s20, 64 }
  0x91   : > { %p7026_p0 = scmp.ne.s32.totalorder %s576_s20, %s7025_s29  ;;  %p7033_p5 = scmp.lt.s32.totalorder %s576_s20, %s576_s20 }
  0x92   : > { %p7034_p8 = scmp.lt.s32.totalorder %s7025_s29, %s7025_s29 }
  0x93   : > { %p7028_p2 = pnand %p7026_p0, %p7450_p7 }
  0x94   : > { %p7035_p10 = por %p7034_p8, %p7033_p5 }
  0x95   : > { %p7029_p13 = pneg %p7028_p2 }
  0x96   : > { %6015 = dma.hbm_to_vmem [thread:$0]  (!%p7440_p6), %s8430_s27, 8192, %s549_s25, [#allocation9], %s8426_s13, %s8426_s13, %s7272_s15  }
  0x97   : > { %p7036_p9 = pnand %p7035_p10, %p7029_p13 }
  0x99   : > { %7039 = shalt.err (!%p7036_p9)
}
  0x9a   : > { %s8431_s6 = sld [smem:[#allocation42_spill]]  ;;  %s7282_s17 = smov [#allocation16]  }
  0x9b   : > { %s598_s21 = sshll.u32 %s7282_s17, 4  ;;  %s7283_s25 = smov [#allocation19]   ;;  %s599_s21 = int_to_ptr.vmem [resolvable:$true] %s598_s21 }
  0x9c   : > { %s626_s19 = sshll.u32 %s7283_s25, 4  ;;  %s7051_s2 = scalar_lea.vmem %s599_s21, 8192  ;;  %s627_s19 = int_to_ptr.vmem [resolvable:$true] %s626_s19 }
  0x9d   : > { %p7052_p12 = scmp.ne.s32.totalorder %s599_s21, %s7051_s2  ;;  %p7059_p0 = scmp.lt.s32.totalorder %s599_s21, %s599_s21 }
  0x9e   : > { %p7060_p2 = scmp.lt.s32.totalorder %s7051_s2, %s7051_s2 }
  0x9f   : > { %p7054_p11 = pnand %p7052_p12, %p7450_p7 }
  0xa0   : > { %6021 = dma.hbm_to_vmem [thread:$0]  (!%p7440_p6), %s8431_s6, 64, %s576_s20, [#allocation12]  }
  0xa1   : > { %p7055_p4 = pneg %p7054_p11  ;;  %p7061_p13 = por %p7060_p2, %p7059_p0 }
  0xa3   : > { %p7062_p5 = pnand %p7061_p13, %p7055_p4 }
  0xa5   : > { %7065 = shalt.err (!%p7062_p5)
}
  0xa6   : > { %s8432_s8 = sld [smem:[#allocation44_spill]]  ;;  %s7077_s29 = scalar_lea.vmem %s627_s19, 16 }
  0xa7   : > { %p7078_p8 = scmp.ne.s32.totalorder %s627_s19, %s7077_s29  ;;  %s7084_s30 = scalar_lea.vmem %s627_s19, 32 }
  0xa8   : > { %p7085_p12 = scmp.lt.s32.totalorder %s627_s19, %s627_s19  ;;  %p7086_p11 = scmp.lt.s32.totalorder %s7084_s30, %s7077_s29 }
  0xa9   : > { %p7080_p10 = pnand %p7078_p8, %p7450_p7 }
  0xaa   : > { %p7087_p4 = por %p7086_p11, %p7085_p12 }
  0xab   : > { %p7081_p9 = pneg %p7080_p10 }
  0xac   : > { %6027 = dma.hbm_to_vmem [thread:$0]  (!%p7440_p6), %s8432_s8, 8192, %s599_s21, [#allocation15], %s8426_s13, %s8426_s13, %s7272_s15  }
  0xad   : > { %p7088_p0 = pnand %p7087_p4, %p7081_p9 }
  0xaf   : > { %7091 = shalt.err (!%p7088_p0)
}
  0xb0   : > { %s8433_s11 = sld [smem:[#allocation46_spill]]  ;;  %s7284_s25 = smov [#allocation22]  }
  0xb1   : > { %s652_s21 = sshll.u32 %s7284_s25, 4  ;;  %s7285_s2 = smov [#allocation25]   ;;  %s653_s21 = int_to_ptr.vmem [resolvable:$true] %s652_s21 }
  0xb2   : > { %s684_s20 = sshll.u32 %s7285_s2, 4  ;;  %s7103_s27 = scalar_lea.vmem %s653_s21, 256  ;;  %s685_s20 = int_to_ptr.vmem [resolvable:$true] %s684_s20 }
  0xb3   : > { %p7104_p2 = scmp.ne.s32.totalorder %s653_s21, %s7103_s27  ;;  %p7111_p8 = scmp.lt.s32.totalorder %s653_s21, %s653_s21 }
  0xb4   : > { %p7112_p10 = scmp.lt.s32.totalorder %s7103_s27, %s7103_s27 }
  0xb5   : > { %p7106_p13 = pnand %p7104_p2, %p7450_p7 }
  0xb6   : > { %6033 = dma.hbm_to_vmem [thread:$0]  (!%p7440_p6), %s8433_s11, 16, %s627_s19, [#allocation18]  }
  0xb7   : > { %p7107_p5 = pneg %p7106_p13  ;;  %p7113_p9 = por %p7112_p10, %p7111_p8 }
  0xb9   : > { %p7114_p12 = pnand %p7113_p9, %p7107_p5 }
  0xbb   : > { %7117 = shalt.err (!%p7114_p12)
}
  0xbc   : > { %s8434_s29 = smov 4   ;;  %s8435_s19 = smov 64  }
  0xbd   : > { %6039 = dma.hbm_to_vmem [thread:$0]  (!%p7440_p6), %s8387_s14, 256, %s653_s21, [#allocation21], %s8435_s19, %s8435_s19, %s8434_s29  }
  0xbe   : > { %s7129_s17 = scalar_lea.vmem %s685_s20, 1024  ;;  %p7137_p2 = scmp.lt.s32.totalorder %s685_s20, %s685_s20 }
  0xbf   : > { %p7130_p11 = scmp.ne.s32.totalorder %s685_s20, %s7129_s17  ;;  %p7138_p13 = scmp.lt.s32.totalorder %s7129_s17, %s7129_s17 }
  0xc1   : > { %p7132_p4 = pnand %p7130_p11, %p7450_p7  ;;  %p7139_p8 = por %p7138_p13, %p7137_p2 }
  0xc3   : > { %p7133_p0 = pneg %p7132_p4 }
  0xc5   : > { %p7140_p5 = pnand %p7139_p8, %p7133_p0 }
  0xc7   : > { %7143 = shalt.err (!%p7140_p5)
}
  0xc8   : > { %6045 = dma.hbm_to_vmem [thread:$0]  (!%p7440_p6), %s8391_s18, 1024, %s685_s20, [#allocation24], %s8426_s13, %s8426_s13, %s7272_s15  }
  0xc9   : > { %s5205_s4 = sadd.s32 4294967294, %s7264_s24   ;;  %s7584_s0 = sadd.s32 1, %s7264_s24  }
  0xca   : > { %s47_s21 = ssub.s32 %s7264_s24, %s7584_s0  ;;  %s50_s27 = sadd.s32 1, %s7260_s23 }
  0xcb   : > { %p48_p7 = scmp.eq.s32.totalorder %s47_s21, 0  ;;  %p57_p10 = scmp.ne.s32.totalorder %s7260_s23, %s7256_s22 }
  0xcc   : > { %p58_p9 = scmp.eq.s32.totalorder %s7264_s24, 0  ;;  %p63_p12 = scmp.ne.s32.totalorder %s7256_s22, %s7252_s1 }
  0xcd   : > { %s7595_s29 = scalar_select %p48_p7, %s7260_s23, %s50_s27  }
  0xce   : > { %p7597_p11 = por %p58_p9, %p57_p10  ;;  %p7603_p6 = por %p8400_p1, %p63_p12 }
  0xcf   : > { %p486_p4 = scmp.eq.s32.totalorder %s7426_s3, 1  ;;  %p492_p0 = scmp.eq.s32.totalorder %s5205_s4, 1 }
  0xd0   : > { %s8437_s15 = scalar_select %p7603_p6, 1, 0 }
  0xd1   : > { %p6068_p2 = scmp.lt.s32.totalorder %s7264_s24, 2  ;;  %s701_s13 = sand.u32 1, %s7260_s23  }
  0xd2   : > { %p7610_p13 = por %p486_p4, %p57_p10  ;;  %p7614_p8 = por %p492_p0, %p63_p12 }
  0xd3   : > { %s5222_s28 = sshll.u32 %s701_s13, 3  ;;  %s5223_s17 = sshll.u32 %s7264_s24, 7 }
  0xd4   : > { %s8438_s20 = scalar_select %p7610_p13, 1, 0 }
  0xd5   : > { %s8439_s30 = scalar_select %p7614_p8, 1, 0 }
  0xd6   : > { %s8440_s21 = sld [smem:[#allocation36_spill]]  ;;  %s705_s4 = scalar_lea.vmem [#allocation2], %s5222_s28 }
  0xd7   : > { %s712_s5 = sshll.u32 %s705_s4, 4  ;;  %p7626_p5 = pnand %p6068_p2, %p7597_p11  ;;  %s713_s5 = int_to_ptr.vmem [resolvable:$true] %s712_s5 }
  0xd8   : > { %s702_s7 = scalar_lea.sflag [#allocation3], %s701_s13 }
  0xd9   : > { %p7146_p10 = pneg %p7626_p5 }
  0xdc   : > { %s7622_s27 = scalar_lea.hbm %s8440_s21, %s5223_s17  ;;  %s7149_s2 = scalar_lea.hbm %s8440_s21, 256 }
  0xdd   : > { %s7144_s8 = scalar_lea.hbm %s7622_s27, 128  ;;  %p7150_p4 = scmp.lt.s32.totalorder %s7622_s27, %s8440_s21 }
  0xde   : > { %p7145_p7 = scmp.ne.s32.totalorder %s7622_s27, %s7144_s8  ;;  %p7151_p11 = scmp.lt.s32.totalorder %s7149_s2, %s7144_s8 }
  0xe0   : > { %p7147_p9 = pnand %p7146_p10, %p7145_p7  ;;  %p7152_p0 = por %p7151_p11, %p7150_p4 }
  0xe2   : > { %p7148_p12 = pneg %p7147_p9 }
  0xe4   : > { %p7153_p2 = pnand %p7152_p0, %p7148_p12 }
  0xe6   : > { %7156 = shalt.err (!%p7153_p2)
}
  0xe7   : > { %s7157_s19 = scalar_lea.vmem %s713_s5, 128  ;;  %s7286_s13 = smov [#allocation2]  }
  0xe8   : > { %p7158_p1 = scmp.ne.s32.totalorder %s713_s5, %s7157_s19  ;;  %s7162_s9 = sshll.u32 %s7286_s13, 4  ;;  %s7163_s9 = int_to_ptr.vmem [resolvable:$false] %s7162_s9 }
  0xe9   : > { %s7164_s11 = scalar_lea.vmem %s7163_s9, 256  ;;  %p7165_p7 = scmp.lt.s32.totalorder %s713_s5, %s7163_s9 }
  0xea   : > { %p7160_p8 = pnand %p7158_p1, %p7146_p10  ;;  %p7166_p9 = scmp.lt.s32.totalorder %s7164_s11, %s7157_s19 }
  0xec   : > { %p7161_p13 = pneg %p7160_p8  ;;  %p7167_p6 = por %p7166_p9, %p7165_p7 }
  0xee   : > { %p7168_p3 = pnand %p7167_p6, %p7161_p13 }
  0xf0   : > { %7171 = shalt.err (!%p7168_p3)
}
  0xf1   : > { %6049 = dma.hbm_to_vmem [thread:$0]  (!%p7626_p5), %s7622_s27, 128, %s713_s5, %s702_s7  }
  0xf2   : > { %p8442_p12 = scmp.ne.s32.totalorder %s8420_s26, 0 }
  0xf3   : > { %s7647_s8 = sand.u32 (!%p8442_p12), 1, %s7256_s22   ;;  %p8443_p1 = scmp.ne.s32.totalorder (!%p8442_p12), %s8437_s15, 0 }
  0xf4   : > { %721 = sbr.rel (%p8442_p12) target bundleno = 3648 (0xe40), region = 100  ;;  %s5225_s17 = sshll.u32 (!%p8442_p12), %s7647_s8, 3 }
  0xf5   : > { %s724_s9 = scalar_lea.sflag (!%p8442_p12), [#allocation3], %s7647_s8  ;;  %s7653_s11 = scalar_lea.vmem (!%p8442_p12), [#allocation2], %s5225_s17 }
  0xf9   : > { %7215 = dma.done.wait (%p8443_p1), %s724_s9, 128  }
  0xfa   : > { %7217 = vsyncadd (%p8443_p1), %s724_s9, 4294967168  ;;  %p8444_p3 = scmp.eq.s32.totalorder %s7426_s3, 0 }
  0xfc   : > { %7219 = dma.done.wait (%p8444_p3), [#allocation6], 1344   ;;  %p8445_p6 = pmov %p8444_p3 }
  0xfd   : > { %p8446_p13 = pmov %p8444_p3 }
  0xfe   : > { %7221 = vsyncadd (%p8445_p6), [#allocation6], 4294965952 }
  0xff   : > { %7223 = dma.done.wait (%p8446_p13), [#allocation9], 16384   ;;  %p8447_p8 = pmov %p8444_p3 }
 0x100   : > { %p8448_p5 = pmov %p8444_p3 }
 0x101   : > { %7225 = vsyncadd (%p8447_p8), [#allocation9], 4294950912 }
 0x102   : > { %7227 = dma.done.wait (%p8448_p5), [#allocation12], 8256   ;;  %p8449_p10 = pmov %p8444_p3 }
 0x103   : > { %p8450_p4 = pmov %p8444_p3 }
 0x104   : > { %7229 = vsyncadd (%p8449_p10), [#allocation12], 4294959040 }
 0x105   : > { %7231 = dma.done.wait (%p8450_p4), [#allocation15], 16384   ;;  %p8451_p11 = pmov %p8444_p3 }
 0x106   : > { %p8452_p0 = pmov %p8444_p3 }
 0x107   : > { %7233 = vsyncadd (%p8451_p11), [#allocation15], 4294950912 }
 0x108   : > { %7235 = dma.done.wait (%p8452_p0), [#allocation18], 48   ;;  %p8453_p2 = pmov %p8452_p0 }
 0x109   : > { %p8454_p7 = pmov %p8452_p0 }
 0x10a   : > { %7237 = vsyncadd (%p8453_p2), [#allocation18], 4294967248 }
 0x10b   : > { %7239 = dma.done.wait (%p8454_p7), [#allocation21], 512   ;;  %p8455_p9 = pmov %p8452_p0 }
 0x10c   : > { %p8456_p12 = pmov %p8452_p0 }
 0x10d   : > { %7241 = vsyncadd (%p8455_p9), [#allocation21], 4294966784 }
 0x10e   : > { %7243 = dma.done.wait (%p8456_p12), [#allocation24], 1280   ;;  %p8457_p1 = pmov %p8452_p0 }
 0x10f   : > { %v7287_v0 = vmov 0   ;;  %v851_v1 = vld [vmem:[#allocation5 + $0x40] sm:$0x33]  ;;  %vm929_vm0 = vcmask 1041408   ;;  %v852_v2 = vld [vmem:[#allocation5 + $0x48] sm:$0x33] }
 0x110   : > { %7245 = vsyncadd (%p8457_p1), [#allocation24], 4294966016  ;;  %974 = vmatprep.mubr.bf16.mxu0 %v7287_v0  ;;  %1015 = vmatprep.mubr.bf16.mxu1 %v7287_v0  ;;  %v5250_v3 = vcombine.high %v851_v1, %v851_v1  ;;  %v5252_v4 = vcombine.high %v852_v2, %v852_v2  ;;  %v5249_v5 = vcombine.low %v851_v1, %v851_v1  ;;  %v6152_v7 = vld [vmem:[#allocation5 + $0x24] ss:$16 sps:$4 sm:$0xff]   ;;  %v6154_v8 = vld [vmem:[#allocation5 + $0x2c] ss:$16 sps:$4 sm:$0xff]  }
 0x111   : > { %v5251_v6 = vcombine.low %v852_v2, %v852_v2  ;;  %v6156_v11 = vld [vmem:[#allocation5 + $0x20] ss:$16 sps:$4 sm:$0xff]   ;;  %v6157_v12 = vld [vmem:[#allocation5 + $0x28] ss:$16 sps:$4 sm:$0xff]   ;;  %v6158_v13 = vld [vmem:[#allocation5 + $0x4] ss:$16 sps:$4 sm:$0xff]  }
 0x112   : > { %5253 = vmatprep.subr.msk.bf16.mxu0 %vm929_vm0, %v5250_v3  ;;  %5255 = vmatprep.subr.msk.bf16.mxu1 %vm929_vm0, %v5252_v4  ;;  %v931_v9 = vsel %vm929_vm0, %v5249_v5, 0  ;;  %v6160_v14 = vld [vmem:[#allocation5 + $0xc] ss:$16 sps:$4 sm:$0xff]   ;;  %v6162_v15 = vld [vmem:[#allocation5] ss:$16 sps:$4 sm:$0xff]   ;;  %vm925_vm1 = vcmask 293888  }
 0x113   : > { %v937_v10 = vsel %vm929_vm0, %v5251_v6, 0  ;;  %953 = vmatpush1.bf16.msra.mxu0 %v931_v9  ;;  %v6163_v16 = vld [vmem:[#allocation5 + $0x8] ss:$16 sps:$4 sm:$0xff]   ;;  %v6164_v21 = vld [vmem:[#allocation8 + $0x70] ss:$8 sps:$4 sm:$0xff]   ;;  %s7288_s15 = smov 32  }
 0x114   : > { %994 = vmatpush1.bf16.msra.mxu1 %v937_v10  ;;  %954 = vmatprep.subr.bf16.mxu0 %v6152_v7  ;;  %v841_v17 = vld [vmem:[%s7653_s11] sm:$0xff]  ;;  %v6167_v22 = vld [vmem:[#allocation8 + $0x170] ss:$8 sps:$4 sm:$0xff]   ;;  %s7289_s27 = smov 96   ;;  %s7290_s25 = smov 64   ;;  %vm3459_vm2 = vcmask 261120  }
 0x115   : > { %995 = vmatprep.subr.bf16.mxu1 %v6154_v8  ;;  %v6166_v18 = vld [vmem:[#allocation8 + $0x74] ss:$8 sps:$4 sm:$0xff]   ;;  %v842_v20 = vpack.c.bf16 %v841_v17, %v841_v17  ;;  %v6172_v23 = vld [vmem:[#allocation8 + $0x64] ss:$8 sps:$4 sm:$0xff]   ;;  %v6170_v25 = vld [vmem:[#allocation8 + $0x60] ss:$8 sps:$4 sm:$0xff]  }
 0x116   : > { %v6169_v19 = vld [vmem:[#allocation8 + $0x174] ss:$8 sps:$4 sm:$0xff]   ;;  %v6175_v24 = vld [vmem:[#allocation8 + $0x164] ss:$8 sps:$4 sm:$0xff]   ;;  %v6173_v26 = vld [vmem:[#allocation8 + $0x160] ss:$8 sps:$4 sm:$0xff]  }
 0x117   : > { %955 = vmatpush1.bf16.msra.mxu0 %v6156_v11  ;;  %v6178_v27 = vld [vmem:[#allocation8 + $0x54] ss:$8 sps:$4 sm:$0xff]   ;;  %v6176_v29 = vld [vmem:[#allocation8 + $0x50] ss:$8 sps:$4 sm:$0xff]   ;;  %v6184_v31 = vld [vmem:[#allocation8 + $0x44] ss:$8 sps:$4 sm:$0xff]  }
 0x118   : > { %996 = vmatpush1.bf16.msra.mxu1 %v6157_v12  ;;  %956 = vmatprep.subr.bf16.mxu0 %v6158_v13  ;;  %v6181_v28 = vld [vmem:[#allocation8 + $0x154] ss:$8 sps:$4 sm:$0xff]   ;;  %v6179_v30 = vld [vmem:[#allocation8 + $0x150] ss:$8 sps:$4 sm:$0xff]   ;;  %v6187_v32 = vld [vmem:[#allocation8 + $0x144] ss:$8 sps:$4 sm:$0xff]  }
 0x119   : > { %997 = vmatprep.subr.bf16.mxu1 %v6160_v14  ;;  %v6182_v33 = vld [vmem:[#allocation8 + $0x40] ss:$8 sps:$4 sm:$0xff]   ;;  %v6190_v35 = vld [vmem:[#allocation8 + $0x34] ss:$8 sps:$4 sm:$0xff]   ;;  %v6188_v37 = vld [vmem:[#allocation8 + $0x30] ss:$8 sps:$4 sm:$0xff]  }
 0x11a   : > { %v6185_v34 = vld [vmem:[#allocation8 + $0x140] ss:$8 sps:$4 sm:$0xff]   ;;  %v6193_v36 = vld [vmem:[#allocation8 + $0x134] ss:$8 sps:$4 sm:$0xff]   ;;  %v6191_v38 = vld [vmem:[#allocation8 + $0x130] ss:$8 sps:$4 sm:$0xff]  }
 0x11b   : > { %957 = vmatpush1.bf16.msra.mxu0 %v6162_v15  ;;  %v6196_v39 = vld [vmem:[#allocation8 + $0x24] ss:$8 sps:$4 sm:$0xff]   ;;  %v6194_v41 = vld [vmem:[#allocation8 + $0x20] ss:$8 sps:$4 sm:$0xff]   ;;  %v6202_v43 = vld [vmem:[#allocation8 + $0x14] ss:$8 sps:$4 sm:$0xff]  }
 0x11c   : > { %998 = vmatpush1.bf16.msra.mxu1 %v6163_v16  ;;  %1416 = vmatprep.subr.bf16.mxu0 %v6166_v18  ;;  %v6199_v40 = vld [vmem:[#allocation8 + $0x124] ss:$8 sps:$4 sm:$0xff]   ;;  %v6197_v42 = vld [vmem:[#allocation8 + $0x120] ss:$8 sps:$4 sm:$0xff]   ;;  %v6205_v44 = vld [vmem:[#allocation8 + $0x114] ss:$8 sps:$4 sm:$0xff]  }
 0x11d   : > { %1457 = vmatprep.subr.bf16.mxu1 %v6169_v19  ;;  %v6200_v45 = vld [vmem:[#allocation8 + $0x10] ss:$8 sps:$4 sm:$0xff]   ;;  %v6208_v47 = vld [vmem:[#allocation8 + $0x4] ss:$8 sps:$4 sm:$0xff]   ;;  %v6206_v49 = vld [vmem:[#allocation8] ss:$8 sps:$4 sm:$0xff]  }
 0x11e   : > { %5254 = vmatmul.mubr.msk.bf16.vlgmr.msra.gmra.mxu0 %vm925_vm1, %v842_v20  ;;  %v6203_v46 = vld [vmem:[#allocation8 + $0x110] ss:$8 sps:$4 sm:$0xff]   ;;  %v6211_v48 = vld [vmem:[#allocation8 + $0x104] ss:$8 sps:$4 sm:$0xff]   ;;  %v6209_v50 = vld [vmem:[#allocation8 + $0x100] ss:$8 sps:$4 sm:$0xff]  }
 0x11f   : > { %5256 = vmatmul.mubr.msk.bf16.vlgmr.msra.gmra.mxu1 %vm925_vm1, %v842_v20  ;;  %1417 = vmatpush1.bf16.msra.mxu0 %v6164_v21  ;;  %v6214_v51 = vld [vmem:[#allocation8 + $0xf4] ss:$8 sps:$4 sm:$0xff]   ;;  %v6212_v53 = vld [vmem:[#allocation8 + $0xf0] ss:$8 sps:$4 sm:$0xff]   ;;  %v6220_v55 = vld [vmem:[#allocation8 + $0xe4] ss:$8 sps:$4 sm:$0xff]   ;;  %v855_v21 = vlaneseq }
 0x120   : > { %1458 = vmatpush1.bf16.msra.mxu1 %v6167_v22  ;;  %1418 = vmatprep.subr.bf16.mxu0 %v6172_v23  ;;  %v6217_v52 = vld [vmem:[#allocation8 + $0x1f4] ss:$8 sps:$4 sm:$0xff]   ;;  %v6215_v54 = vld [vmem:[#allocation8 + $0x1f0] ss:$8 sps:$4 sm:$0xff]   ;;  %v6223_v56 = vld [vmem:[#allocation8 + $0x1e4] ss:$8 sps:$4 sm:$0xff]  }
 0x121   : > { %1459 = vmatprep.subr.bf16.mxu1 %v6175_v24  ;;  %v6218_v57 = vld [vmem:[#allocation8 + $0xe0] ss:$8 sps:$4 sm:$0xff]   ;;  %v6226_v59 = vld [vmem:[#allocation8 + $0xd4] ss:$8 sps:$4 sm:$0xff]   ;;  %v6224_v61 = vld [vmem:[#allocation8 + $0xd0] ss:$8 sps:$4 sm:$0xff]  }
 0x122   : > { %v6221_v58 = vld [vmem:[#allocation8 + $0x1e0] ss:$8 sps:$4 sm:$0xff]   ;;  %v6229_v60 = vld [vmem:[#allocation8 + $0x1d4] ss:$8 sps:$4 sm:$0xff]   ;;  %v6227_v62 = vld [vmem:[#allocation8 + $0x1d0] ss:$8 sps:$4 sm:$0xff]  }
 0x123   : > { %1419 = vmatpush1.bf16.msra.mxu0 %v6170_v25  ;;  %v6232_v63 = vld [vmem:[#allocation8 + $0xc4] ss:$8 sps:$4 sm:$0xff]   ;;  %v6230_v1 = vld [vmem:[#allocation8 + $0xc0] ss:$8 sps:$4 sm:$0xff]   ;;  %v6238_v3 = vld [vmem:[#allocation8 + $0xb4] ss:$8 sps:$4 sm:$0xff]  }
 0x124   : > { %1460 = vmatpush1.bf16.msra.mxu1 %v6173_v26  ;;  %1420 = vmatprep.subr.bf16.mxu0 %v6178_v27  ;;  %v6235_v0 = vld [vmem:[#allocation8 + $0x1c4] ss:$8 sps:$4 sm:$0xff]   ;;  %v6233_v2 = vld [vmem:[#allocation8 + $0x1c0] ss:$8 sps:$4 sm:$0xff]   ;;  %v6241_v4 = vld [vmem:[#allocation8 + $0x1b4] ss:$8 sps:$4 sm:$0xff]  }
 0x125   : > { %1461 = vmatprep.subr.bf16.mxu1 %v6181_v28  ;;  %v6236_v5 = vld [vmem:[#allocation8 + $0xb0] ss:$8 sps:$4 sm:$0xff]   ;;  %v6244_v7 = vld [vmem:[#allocation8 + $0xa4] ss:$8 sps:$4 sm:$0xff]   ;;  %v6242_v9 = vld [vmem:[#allocation8 + $0xa0] ss:$8 sps:$4 sm:$0xff]  }
 0x126   : > { %v6239_v6 = vld [vmem:[#allocation8 + $0x1b0] ss:$8 sps:$4 sm:$0xff]   ;;  %v6247_v8 = vld [vmem:[#allocation8 + $0x1a4] ss:$8 sps:$4 sm:$0xff]   ;;  %v6245_v10 = vld [vmem:[#allocation8 + $0x1a0] ss:$8 sps:$4 sm:$0xff]  }
 0x127   : > { %1421 = vmatpush1.bf16.msra.mxu0 %v6176_v29  ;;  %v6250_v11 = vld [vmem:[#allocation8 + $0x94] ss:$8 sps:$4 sm:$0xff]   ;;  %v6248_v13 = vld [vmem:[#allocation8 + $0x90] ss:$8 sps:$4 sm:$0xff]   ;;  %v6256_v15 = vld [vmem:[#allocation8 + $0x84] ss:$8 sps:$4 sm:$0xff]  }
 0x128   : > { %1462 = vmatpush1.bf16.msra.mxu1 %v6179_v30  ;;  %1422 = vmatprep.subr.bf16.mxu0 %v6184_v31  ;;  %v6253_v12 = vld [vmem:[#allocation8 + $0x194] ss:$8 sps:$4 sm:$0xff]   ;;  %v6251_v14 = vld [vmem:[#allocation8 + $0x190] ss:$8 sps:$4 sm:$0xff]   ;;  %v6259_v16 = vld [vmem:[#allocation8 + $0x184] ss:$8 sps:$4 sm:$0xff]  }
 0x129   : > { %1463 = vmatprep.subr.bf16.mxu1 %v6187_v32  ;;  %v6254_v17 = vld [vmem:[#allocation8 + $0x80] ss:$8 sps:$4 sm:$0xff]   ;;  %v6262_v19 = vld [vmem:[#allocation10 + $0x74] ss:$8 sps:$4 sm:$0xff]   ;;  %v7688_v22 = vshrl.u32 %v855_v21, 7  ;;  %s8458_s4 = sld [smem:[#allocation47_spill]] }
 0x12a   : > { %v6257_v18 = vld [vmem:[#allocation8 + $0x180] ss:$8 sps:$4 sm:$0xff]   ;;  %v6265_v20 = vld [vmem:[#allocation10 + $0x174] ss:$8 sps:$4 sm:$0xff]   ;;  %v6311_v21 = vld [vmem:[#allocation10 + $0x1f0] ss:$8 sps:$4 sm:$0xff]  }
 0x12b   : > { %1423 = vmatpush1.bf16.msra.mxu0 %v6182_v33  ;;  %v7691_v23 = vsub.s32 0, %v7688_v22  ;;  %v865_v24 = vsub.s32 2, %v7688_v22  ;;  %v853_v25 = vld [vmem:[#allocation7] sm:$0xf]  ;;  %v7695_v26 = vsub.s32 1, %v7688_v22  ;;  %v869_v27 = vsub.s32 3, %v7688_v22 }
 0x12c   : > { %1464 = vmatpush1.bf16.msra.mxu1 %v6185_v34  ;;  %1424 = vmatprep.subr.bf16.mxu0 %v6190_v35  ;;  %v6548_v22 = vld [vmem:[#allocation16 + $0x70] ss:$8 sps:$4 sm:$0xff]   ;;  %vm3742_vm3 = vcmask 64512   ;;  %s7291_s19 = smov 120   ;;  %vm3832_vm4 = vcmask 523264   ;;  %s7292_s13 = smov 112  }
 0x12d   : > { %1465 = vmatprep.subr.bf16.mxu1 %v6193_v36  ;;  %v858_v28 = vrot.slane %v853_v25, %v7691_v23  ;;  %v866_v29 = vrot.slane %v853_v25, %v865_v24  ;;  %v862_v30 = vrot.slane %v853_v25, %v7695_v26  ;;  %v870_v31 = vrot.slane %v853_v25, %v869_v27  ;;  %v6316_v25 = vld [vmem:[#allocation10 + $0xe4] ss:$8 sps:$4 sm:$0xff]   ;;  %s8459_s5 = sld [smem:[#allocation48_spill]]  ;;  %s7298_s2 = smov 24  }
 0x12e   : > { %vm7294_vm5 = vmmov 0   ;;  %s8460_s26 = sld [smem:[#allocation50_spill]]  ;;  %vm4916_vm6 = vcmask 130048   ;;  %vm4918_vm7 = vcmask 195584   ;;  %s839_s9 = scalar_lea.vmem [#allocation26], %s5225_s17 }
 0x12f   : > { %1425 = vmatpush1.bf16.msra.mxu0 %v6188_v37  ;;  %s5002_s11 = sshll.u32 %s839_s9, 4  ;;  %s8462_s7 = sld [smem:[#allocation51_spill]]  ;;  %s8331_s11 = int_to_ptr.vmem [resolvable:$true] %s5002_s11 }
 0x130   : > { %1466 = vmatpush1.bf16.msra.mxu1 %v6191_v38  ;;  %1426 = vmatprep.subr.bf16.mxu0 %v6196_v39  ;;  %p8463_p6 = scmp.ne.s32.totalorder %s8438_s20, 0  ;;  %s7299_s17 = smov [#allocation26]  }
 0x131   : > { %1467 = vmatprep.subr.bf16.mxu1 %v6199_v40 }
 0x133   : > { %1427 = vmatpush1.bf16.msra.mxu0 %v6194_v41 }
 0x134   : > { %1468 = vmatpush1.bf16.msra.mxu1 %v6197_v42  ;;  %1428 = vmatprep.subr.bf16.mxu0 %v6202_v43 }
 0x135   : > { %1469 = vmatprep.subr.bf16.mxu1 %v6205_v44 }
 0x137   : > { %1429 = vmatpush1.bf16.msra.mxu0 %v6200_v45 }
 0x138   : > { %1470 = vmatpush1.bf16.msra.mxu1 %v6203_v46  ;;  %1430 = vmatprep.subr.bf16.mxu0 %v6208_v47 }
 0x139   : > { %1471 = vmatprep.subr.bf16.mxu1 %v6211_v48 }
 0x13b   : > { %1431 = vmatpush1.bf16.msra.mxu0 %v6206_v49 }
 0x13c   : > { %1472 = vmatpush1.bf16.msra.mxu1 %v6209_v50  ;;  %1432 = vmatprep.subr.bf16.mxu0 %v6214_v51  ;;  %v6260_v50 = vld [vmem:[#allocation10 + $0x70] ss:$8 sps:$4 sm:$0xff]  }
 0x13d   : > { %1473 = vmatprep.subr.bf16.mxu1 %v6217_v52  ;;  %v6263_v51 = vld [vmem:[#allocation10 + $0x170] ss:$8 sps:$4 sm:$0xff]  }
 0x13f   : > { %1433 = vmatpush2.bf16.msra.mxu0 %v6212_v53 }
 0x140   : > { %1474 = vmatpush2.bf16.msra.mxu1 %v6215_v54  ;;  %1434 = vmatprep.subr.bf16.mxu0 %v6220_v55  ;;  %v6268_v54 = vld [vmem:[#allocation10 + $0x64] ss:$8 sps:$4 sm:$0xff]  }
 0x141   : > { %1475 = vmatprep.subr.bf16.mxu1 %v6223_v56  ;;  %v6271_v55 = vld [vmem:[#allocation10 + $0x164] ss:$8 sps:$4 sm:$0xff]   ;;  %v6266_v56 = vld [vmem:[#allocation10 + $0x60] ss:$8 sps:$4 sm:$0xff]  }
 0x143   : > { %1435 = vmatpush2.bf16.msra.mxu0 %v6218_v57  ;;  %v6269_v57 = vld [vmem:[#allocation10 + $0x160] ss:$8 sps:$4 sm:$0xff]  }
 0x144   : > { %1476 = vmatpush2.bf16.msra.mxu1 %v6221_v58  ;;  %1436 = vmatprep.subr.bf16.mxu0 %v6226_v59  ;;  %v6274_v58 = vld [vmem:[#allocation10 + $0x54] ss:$8 sps:$4 sm:$0xff]  }
 0x145   : > { %1477 = vmatprep.subr.bf16.mxu1 %v6229_v60  ;;  %v6277_v59 = vld [vmem:[#allocation10 + $0x154] ss:$8 sps:$4 sm:$0xff]   ;;  %v6272_v60 = vld [vmem:[#allocation10 + $0x50] ss:$8 sps:$4 sm:$0xff]  }
 0x147   : > { %1437 = vmatpush2.bf16.msra.mxu0 %v6224_v61  ;;  %v6275_v61 = vld [vmem:[#allocation10 + $0x150] ss:$8 sps:$4 sm:$0xff]  }
 0x148   : > { %1478 = vmatpush2.bf16.msra.mxu1 %v6227_v62  ;;  %1438 = vmatprep.subr.bf16.mxu0 %v6232_v63  ;;  %v6280_v62 = vld [vmem:[#allocation10 + $0x44] ss:$8 sps:$4 sm:$0xff]  }
 0x149   : > { %1479 = vmatprep.subr.bf16.mxu1 %v6235_v0  ;;  %v6283_v63 = vld [vmem:[#allocation10 + $0x144] ss:$8 sps:$4 sm:$0xff]   ;;  %v6278_v0 = vld [vmem:[#allocation10 + $0x40] ss:$8 sps:$4 sm:$0xff]  }
 0x14b   : > { %1439 = vmatpush2.bf16.msra.mxu0 %v6230_v1  ;;  %v6281_v1 = vld [vmem:[#allocation10 + $0x140] ss:$8 sps:$4 sm:$0xff]  }
 0x14c   : > { %1480 = vmatpush2.bf16.msra.mxu1 %v6233_v2  ;;  %1440 = vmatprep.subr.bf16.mxu0 %v6238_v3  ;;  %v6286_v2 = vld [vmem:[#allocation10 + $0x34] ss:$8 sps:$4 sm:$0xff]  }
 0x14d   : > { %1481 = vmatprep.subr.bf16.mxu1 %v6241_v4  ;;  %v6289_v3 = vld [vmem:[#allocation10 + $0x134] ss:$8 sps:$4 sm:$0xff]   ;;  %v6284_v4 = vld [vmem:[#allocation10 + $0x30] ss:$8 sps:$4 sm:$0xff]  }
 0x14f   : > { %1441 = vmatpush2.bf16.msra.mxu0 %v6236_v5  ;;  %v6287_v5 = vld [vmem:[#allocation10 + $0x130] ss:$8 sps:$4 sm:$0xff]  }
 0x150   : > { %1482 = vmatpush2.bf16.msra.mxu1 %v6239_v6  ;;  %1442 = vmatprep.subr.bf16.mxu0 %v6244_v7  ;;  %v6292_v6 = vld [vmem:[#allocation10 + $0x24] ss:$8 sps:$4 sm:$0xff]  }
 0x151   : > { %1483 = vmatprep.subr.bf16.mxu1 %v6247_v8  ;;  %v6295_v7 = vld [vmem:[#allocation10 + $0x124] ss:$8 sps:$4 sm:$0xff]   ;;  %v6290_v8 = vld [vmem:[#allocation10 + $0x20] ss:$8 sps:$4 sm:$0xff]  }
 0x153   : > { %1443 = vmatpush2.bf16.msra.mxu0 %v6242_v9  ;;  %v6293_v9 = vld [vmem:[#allocation10 + $0x120] ss:$8 sps:$4 sm:$0xff]  }
 0x154   : > { %1484 = vmatpush2.bf16.msra.mxu1 %v6245_v10  ;;  %1444 = vmatprep.subr.bf16.mxu0 %v6250_v11  ;;  %v6298_v10 = vld [vmem:[#allocation10 + $0x14] ss:$8 sps:$4 sm:$0xff]  }
 0x155   : > { %1485 = vmatprep.subr.bf16.mxu1 %v6253_v12  ;;  %v6301_v11 = vld [vmem:[#allocation10 + $0x114] ss:$8 sps:$4 sm:$0xff]   ;;  %v6296_v12 = vld [vmem:[#allocation10 + $0x10] ss:$8 sps:$4 sm:$0xff]  }
 0x157   : > { %1445 = vmatpush2.bf16.msra.mxu0 %v6248_v13  ;;  %v6299_v13 = vld [vmem:[#allocation10 + $0x110] ss:$8 sps:$4 sm:$0xff]  }
 0x158   : > { %1486 = vmatpush2.bf16.msra.mxu1 %v6251_v14  ;;  %1446 = vmatprep.subr.bf16.mxu0 %v6256_v15  ;;  %v6304_v14 = vld [vmem:[#allocation10 + $0x4] ss:$8 sps:$4 sm:$0xff]  }
 0x159   : > { %1487 = vmatprep.subr.bf16.mxu1 %v6259_v16  ;;  %v6307_v15 = vld [vmem:[#allocation10 + $0x104] ss:$8 sps:$4 sm:$0xff]   ;;  %v6302_v16 = vld [vmem:[#allocation10] ss:$8 sps:$4 sm:$0xff]  }
 0x15b   : > { %1447 = vmatpush2.bf16.msra.mxu0 %v6254_v17  ;;  %v6305_v17 = vld [vmem:[#allocation10 + $0x100] ss:$8 sps:$4 sm:$0xff]  }
 0x15c   : > { %1488 = vmatpush2.bf16.msra.mxu1 %v6257_v18  ;;  %1882 = vmatprep.subr.bf16.mxu0 %v6262_v19  ;;  %v6310_v18 = vld [vmem:[#allocation10 + $0xf4] ss:$8 sps:$4 sm:$0xff]  }
 0x15d   : > { %1923 = vmatprep.subr.bf16.mxu1 %v6265_v20  ;;  %v6313_v19 = vld [vmem:[#allocation10 + $0x1f4] ss:$8 sps:$4 sm:$0xff]   ;;  %v6308_v20 = vld [vmem:[#allocation10 + $0xf0] ss:$8 sps:$4 sm:$0xff]  }
 0x1de   : > { %v976_v32 = vpop.f32.mrf.mxu0 }
 0x1df   : > { %v1017_v33 = vpop.f32.mrf.mxu1  ;;  %v977_v34 = vadd.f32 %v976_v32, %v858_v28  ;;  %v6319_v28 = vld [vmem:[#allocation10 + $0x1e4] ss:$8 sps:$4 sm:$0xff]   ;;  %v6325_v32 = vld [vmem:[#allocation10 + $0x1d4] ss:$8 sps:$4 sm:$0xff]  }
 0x1e0   : > { %v1018_v35 = vadd.f32 %v1017_v33, %v866_v29  ;;  %v978_v36 = vpop.f32.mrf.mxu0  ;;  %v6314_v29 = vld [vmem:[#allocation10 + $0xe0] ss:$8 sps:$4 sm:$0xff]   ;;  %v6320_v33 = vld [vmem:[#allocation10 + $0xd0] ss:$8 sps:$4 sm:$0xff]  }
 0x1e1   : > { %v1019_v37 = vpop.f32.mrf.mxu1  ;;  %v979_v38 = vadd.f32 %v978_v36, %v862_v30  ;;  %v1024_v40 = vmax.f32 %v977_v34, 0.0  ;;  %v6317_v30 = vld [vmem:[#allocation10 + $0x1e0] ss:$8 sps:$4 sm:$0xff]   ;;  %v6323_v34 = vld [vmem:[#allocation10 + $0x1d0] ss:$8 sps:$4 sm:$0xff]  }
 0x1e2   : > { %v1020_v39 = vadd.f32 %v1019_v37, %v870_v31  ;;  %v1026_v41 = vmax.f32 %v1018_v35, 0.0  ;;  %v980_v42 = vpop.f32.mrf.mxu0  ;;  %v6322_v31 = vld [vmem:[#allocation10 + $0xd4] ss:$8 sps:$4 sm:$0xff]   ;;  %v6328_v35 = vld [vmem:[#allocation10 + $0xc4] ss:$8 sps:$4 sm:$0xff]  }
 0x1e3   : > { %v1021_v43 = vpop.f32.mrf.mxu1  ;;  %v1025_v44 = vmax.f32 %v979_v38, 0.0  ;;  %v7704_v52 = vpack.c.bf16 %v1024_v40, %v1024_v40  ;;  %v6331_v36 = vld [vmem:[#allocation10 + $0x1c4] ss:$8 sps:$4 sm:$0xff]   ;;  %v6326_v37 = vld [vmem:[#allocation10 + $0xc0] ss:$8 sps:$4 sm:$0xff]  }
 0x1e4   : > { %v1027_v45 = vmax.f32 %v1020_v39, 0.0  ;;  %v981_v46 = vpop.f32.mrf.mxu0  ;;  %v7706_v53 = vpack.c.bf16 %v1026_v41, %v1026_v41  ;;  %v6329_v38 = vld [vmem:[#allocation10 + $0x1c0] ss:$8 sps:$4 sm:$0xff]   ;;  %v6334_v39 = vld [vmem:[#allocation10 + $0xb4] ss:$8 sps:$4 sm:$0xff]  }
 0x1e5   : > { %v1022_v47 = vpop.f32.mrf.mxu1  ;;  %v1029_v48 = vpack.c.bf16 %v1025_v44, %v1025_v44  ;;  %v6337_v40 = vld [vmem:[#allocation10 + $0x1b4] ss:$8 sps:$4 sm:$0xff]   ;;  %v6332_v41 = vld [vmem:[#allocation10 + $0xb0] ss:$8 sps:$4 sm:$0xff]   ;;  %v6340_v43 = vld [vmem:[#allocation10 + $0xa4] ss:$8 sps:$4 sm:$0xff]  }
 0x1e6   : > { %v1031_v49 = vpack.c.bf16 %v1027_v45, %v1027_v45  ;;  %v6335_v42 = vld [vmem:[#allocation10 + $0x1b0] ss:$8 sps:$4 sm:$0xff]   ;;  %v6343_v44 = vld [vmem:[#allocation10 + $0x1a4] ss:$8 sps:$4 sm:$0xff]   ;;  %v6338_v45 = vld [vmem:[#allocation10 + $0xa0] ss:$8 sps:$4 sm:$0xff]  }
 0x1e7   : > { %1448 = vmatprep.mubr.bf16.mxu0 %v1029_v48  ;;  %v6341_v46 = vld [vmem:[#allocation10 + $0x1a0] ss:$8 sps:$4 sm:$0xff]   ;;  %v6346_v47 = vld [vmem:[#allocation10 + $0x94] ss:$8 sps:$4 sm:$0xff]  }
 0x1e8   : > { %1489 = vmatprep.mubr.bf16.mxu1 %v1031_v49  ;;  %1449 = vmatmul.mubr.bf16.vlgmr.msra.gmra.mxu0 %v7704_v52 }
 0x1e9   : > { %1490 = vmatmul.mubr.bf16.vlgmr.msra.gmra.mxu1 %v7706_v53  ;;  %1883 = vmatpush1.bf16.msra.mxu0 %v6260_v50  ;;  %v6347_v50 = vld [vmem:[#allocation10 + $0x190] ss:$8 sps:$4 sm:$0xff]  }
 0x1ea   : > { %1924 = vmatpush1.bf16.msra.mxu1 %v6263_v51  ;;  %1914 = vmatprep.mubr.bf16.mxu0 %v1029_v48  ;;  %v6349_v48 = vld [vmem:[#allocation10 + $0x194] ss:$8 sps:$4 sm:$0xff]   ;;  %v6352_v51 = vld [vmem:[#allocation10 + $0x84] ss:$8 sps:$4 sm:$0xff]  }
 0x1eb   : > { %1955 = vmatprep.mubr.bf16.mxu1 %v1031_v49  ;;  %1884 = vmatprep.subr.bf16.mxu0 %v6268_v54  ;;  %v6344_v49 = vld [vmem:[#allocation10 + $0x90] ss:$8 sps:$4 sm:$0xff]   ;;  %v6355_v54 = vld [vmem:[#allocation10 + $0x184] ss:$8 sps:$4 sm:$0xff]  }
 0x1ec   : > { %1925 = vmatprep.subr.bf16.mxu1 %v6271_v55  ;;  %v6350_v55 = vld [vmem:[#allocation10 + $0x80] ss:$8 sps:$4 sm:$0xff]  }
 0x1ed   : > { %1885 = vmatpush1.bf16.msra.mxu0 %v6266_v56  ;;  %v6353_v56 = vld [vmem:[#allocation10 + $0x180] ss:$8 sps:$4 sm:$0xff]  }
 0x1ee   : > { %1926 = vmatpush1.bf16.msra.mxu1 %v6269_v57  ;;  %1886 = vmatprep.subr.bf16.mxu0 %v6274_v58  ;;  %v6356_v57 = vld [vmem:[#allocation11 + $0xe0] ss:$16 sps:$4 sm:$0xff]   ;;  %v6358_v58 = vld [vmem:[#allocation11 + $0xe4] ss:$16 sps:$4 sm:$0xff]  }
 0x1ef   : > { %1927 = vmatprep.subr.bf16.mxu1 %v6277_v59  ;;  %v6359_v59 = vld [vmem:[#allocation11 + $0xe8] ss:$16 sps:$4 sm:$0xff]  }
 0x1f1   : > { %1887 = vmatpush1.bf16.msra.mxu0 %v6272_v60  ;;  %v6361_v60 = vld [vmem:[#allocation11 + $0xec] ss:$16 sps:$4 sm:$0xff]  }
 0x1f2   : > { %1928 = vmatpush1.bf16.msra.mxu1 %v6275_v61  ;;  %1888 = vmatprep.subr.bf16.mxu0 %v6280_v62  ;;  %v6364_v61 = vld [vmem:[#allocation11 + $0xc4] ss:$16 sps:$4 sm:$0xff]   ;;  %v6367_v62 = vld [vmem:[#allocation11 + $0xcc] ss:$16 sps:$4 sm:$0xff]  }
 0x1f3   : > { %1929 = vmatprep.subr.bf16.mxu1 %v6283_v63  ;;  %v6362_v63 = vld [vmem:[#allocation11 + $0xc0] ss:$16 sps:$4 sm:$0xff]  }
 0x1f5   : > { %1889 = vmatpush1.bf16.msra.mxu0 %v6278_v0  ;;  %v6365_v0 = vld [vmem:[#allocation11 + $0xc8] ss:$16 sps:$4 sm:$0xff]  }
 0x1f6   : > { %1930 = vmatpush1.bf16.msra.mxu1 %v6281_v1  ;;  %1890 = vmatprep.subr.bf16.mxu0 %v6286_v2  ;;  %v6370_v1 = vld [vmem:[#allocation11 + $0xa4] ss:$16 sps:$4 sm:$0xff]   ;;  %v6373_v2 = vld [vmem:[#allocation11 + $0xac] ss:$16 sps:$4 sm:$0xff]  }
 0x1f7   : > { %1931 = vmatprep.subr.bf16.mxu1 %v6289_v3  ;;  %v6376_v3 = vld [vmem:[#allocation11 + $0x84] ss:$16 sps:$4 sm:$0xff]  }
 0x1f9   : > { %1891 = vmatpush1.bf16.msra.mxu0 %v6284_v4  ;;  %v6379_v4 = vld [vmem:[#allocation11 + $0x8c] ss:$16 sps:$4 sm:$0xff]  }
 0x1fa   : > { %1932 = vmatpush1.bf16.msra.mxu1 %v6287_v5  ;;  %1892 = vmatprep.subr.bf16.mxu0 %v6292_v6  ;;  %v6374_v5 = vld [vmem:[#allocation11 + $0x80] ss:$16 sps:$4 sm:$0xff]   ;;  %v6377_v6 = vld [vmem:[#allocation11 + $0x88] ss:$16 sps:$4 sm:$0xff]  }
 0x1fb   : > { %1933 = vmatprep.subr.bf16.mxu1 %v6295_v7  ;;  %v6382_v7 = vld [vmem:[#allocation11 + $0x64] ss:$16 sps:$4 sm:$0xff]  }
 0x1fd   : > { %1893 = vmatpush1.bf16.msra.mxu0 %v6290_v8  ;;  %v6385_v8 = vld [vmem:[#allocation11 + $0x6c] ss:$16 sps:$4 sm:$0xff]  }
 0x1fe   : > { %1934 = vmatpush1.bf16.msra.mxu1 %v6293_v9  ;;  %1894 = vmatprep.subr.bf16.mxu0 %v6298_v10  ;;  %v6380_v9 = vld [vmem:[#allocation11 + $0x60] ss:$16 sps:$4 sm:$0xff]   ;;  %v6383_v10 = vld [vmem:[#allocation11 + $0x68] ss:$16 sps:$4 sm:$0xff]  }
 0x1ff   : > { %1935 = vmatprep.subr.bf16.mxu1 %v6301_v11  ;;  %v6388_v11 = vld [vmem:[#allocation11 + $0x44] ss:$16 sps:$4 sm:$0xff]  }
 0x201   : > { %1895 = vmatpush1.bf16.msra.mxu0 %v6296_v12  ;;  %v6391_v12 = vld [vmem:[#allocation11 + $0x4c] ss:$16 sps:$4 sm:$0xff]  }
 0x202   : > { %1936 = vmatpush1.bf16.msra.mxu1 %v6299_v13  ;;  %1896 = vmatprep.subr.bf16.mxu0 %v6304_v14  ;;  %v6386_v13 = vld [vmem:[#allocation11 + $0x40] ss:$16 sps:$4 sm:$0xff]   ;;  %v6389_v14 = vld [vmem:[#allocation11 + $0x48] ss:$16 sps:$4 sm:$0xff]  }
 0x203   : > { %1937 = vmatprep.subr.bf16.mxu1 %v6307_v15  ;;  %v6394_v15 = vld [vmem:[#allocation11 + $0x24] ss:$16 sps:$4 sm:$0xff]  }
 0x205   : > { %1897 = vmatpush1.bf16.msra.mxu0 %v6302_v16  ;;  %v6397_v16 = vld [vmem:[#allocation11 + $0x2c] ss:$16 sps:$4 sm:$0xff]  }
 0x206   : > { %1938 = vmatpush1.bf16.msra.mxu1 %v6305_v17  ;;  %1898 = vmatprep.subr.bf16.mxu0 %v6310_v18  ;;  %v6392_v17 = vld [vmem:[#allocation11 + $0x20] ss:$16 sps:$4 sm:$0xff]   ;;  %v6395_v18 = vld [vmem:[#allocation11 + $0x28] ss:$16 sps:$4 sm:$0xff]  }
 0x207   : > { %1939 = vmatprep.subr.bf16.mxu1 %v6313_v19  ;;  %v6400_v19 = vld [vmem:[#allocation11 + $0x4] ss:$16 sps:$4 sm:$0xff]  }
 0x209   : > { %1899 = vmatpush2.bf16.msra.mxu0 %v6308_v20  ;;  %v6403_v20 = vld [vmem:[#allocation11 + $0xc] ss:$16 sps:$4 sm:$0xff]  }
 0x20a   : > { %1940 = vmatpush2.bf16.msra.mxu1 %v6311_v21  ;;  %1900 = vmatprep.subr.bf16.mxu0 %v6316_v25  ;;  %v6398_v21 = vld [vmem:[#allocation11] ss:$16 sps:$4 sm:$0xff]   ;;  %v6401_v25 = vld [vmem:[#allocation11 + $0x8] ss:$16 sps:$4 sm:$0xff]  }
 0x20b   : > { %1941 = vmatprep.subr.bf16.mxu1 %v6319_v28  ;;  %v6406_v28 = vld [vmem:[#allocation11 + $0x1e4] ss:$16 sps:$4 sm:$0xff]  }
 0x20d   : > { %1901 = vmatpush2.bf16.msra.mxu0 %v6314_v29  ;;  %v6409_v29 = vld [vmem:[#allocation11 + $0x1ec] ss:$16 sps:$4 sm:$0xff]  }
 0x20e   : > { %1942 = vmatpush2.bf16.msra.mxu1 %v6317_v30  ;;  %1902 = vmatprep.subr.bf16.mxu0 %v6322_v31  ;;  %v6404_v30 = vld [vmem:[#allocation11 + $0x1e0] ss:$16 sps:$4 sm:$0xff]   ;;  %v6407_v31 = vld [vmem:[#allocation11 + $0x1e8] ss:$16 sps:$4 sm:$0xff]  }
 0x20f   : > { %1943 = vmatprep.subr.bf16.mxu1 %v6325_v32  ;;  %v6412_v32 = vld [vmem:[#allocation11 + $0x1c4] ss:$16 sps:$4 sm:$0xff]  }
 0x211   : > { %1903 = vmatpush2.bf16.msra.mxu0 %v6320_v33  ;;  %v6415_v33 = vld [vmem:[#allocation11 + $0x1cc] ss:$16 sps:$4 sm:$0xff]  }
 0x212   : > { %1944 = vmatpush2.bf16.msra.mxu1 %v6323_v34  ;;  %1904 = vmatprep.subr.bf16.mxu0 %v6328_v35  ;;  %v6410_v34 = vld [vmem:[#allocation11 + $0x1c0] ss:$16 sps:$4 sm:$0xff]   ;;  %v6413_v35 = vld [vmem:[#allocation11 + $0x1c8] ss:$16 sps:$4 sm:$0xff]  }
 0x213   : > { %1945 = vmatprep.subr.bf16.mxu1 %v6331_v36  ;;  %v6418_v36 = vld [vmem:[#allocation11 + $0x1a4] ss:$16 sps:$4 sm:$0xff]  }
 0x215   : > { %1905 = vmatpush2.bf16.msra.mxu0 %v6326_v37  ;;  %v6421_v37 = vld [vmem:[#allocation11 + $0x1ac] ss:$16 sps:$4 sm:$0xff]  }
 0x216   : > { %1946 = vmatpush2.bf16.msra.mxu1 %v6329_v38  ;;  %1906 = vmatprep.subr.bf16.mxu0 %v6334_v39  ;;  %v6416_v38 = vld [vmem:[#allocation11 + $0x1a0] ss:$16 sps:$4 sm:$0xff]   ;;  %v6419_v39 = vld [vmem:[#allocation11 + $0x1a8] ss:$16 sps:$4 sm:$0xff]  }
 0x217   : > { %1947 = vmatprep.subr.bf16.mxu1 %v6337_v40  ;;  %v6424_v40 = vld [vmem:[#allocation11 + $0x184] ss:$16 sps:$4 sm:$0xff]  }
 0x219   : > { %1907 = vmatpush2.bf16.msra.mxu0 %v6332_v41  ;;  %v6427_v41 = vld [vmem:[#allocation11 + $0x18c] ss:$16 sps:$4 sm:$0xff]  }
 0x21a   : > { %1948 = vmatpush2.bf16.msra.mxu1 %v6335_v42  ;;  %1908 = vmatprep.subr.bf16.mxu0 %v6340_v43  ;;  %v6422_v42 = vld [vmem:[#allocation11 + $0x180] ss:$16 sps:$4 sm:$0xff]   ;;  %v6425_v43 = vld [vmem:[#allocation11 + $0x188] ss:$16 sps:$4 sm:$0xff]  }
 0x21b   : > { %1949 = vmatprep.subr.bf16.mxu1 %v6343_v44  ;;  %v6430_v44 = vld [vmem:[#allocation11 + $0x164] ss:$16 sps:$4 sm:$0xff]  }
 0x21d   : > { %1909 = vmatpush2.bf16.msra.mxu0 %v6338_v45  ;;  %v6433_v45 = vld [vmem:[#allocation11 + $0x16c] ss:$16 sps:$4 sm:$0xff]  }
 0x21e   : > { %1950 = vmatpush2.bf16.msra.mxu1 %v6341_v46  ;;  %1910 = vmatprep.subr.bf16.mxu0 %v6346_v47  ;;  %v6428_v46 = vld [vmem:[#allocation11 + $0x160] ss:$16 sps:$4 sm:$0xff]   ;;  %v6431_v47 = vld [vmem:[#allocation11 + $0x168] ss:$16 sps:$4 sm:$0xff]  }
 0x21f   : > { %1951 = vmatprep.subr.bf16.mxu1 %v6349_v48  ;;  %v6436_v48 = vld [vmem:[#allocation11 + $0x144] ss:$16 sps:$4 sm:$0xff]  }
 0x221   : > { %1911 = vmatpush2.bf16.msra.mxu0 %v6344_v49  ;;  %v6439_v49 = vld [vmem:[#allocation11 + $0x14c] ss:$16 sps:$4 sm:$0xff]  }
 0x222   : > { %1952 = vmatpush2.bf16.msra.mxu1 %v6347_v50  ;;  %1912 = vmatprep.subr.bf16.mxu0 %v6352_v51  ;;  %v6434_v50 = vld [vmem:[#allocation11 + $0x140] ss:$16 sps:$4 sm:$0xff]   ;;  %v6437_v51 = vld [vmem:[#allocation11 + $0x148] ss:$16 sps:$4 sm:$0xff]  }
 0x223   : > { %1953 = vmatprep.subr.bf16.mxu1 %v6355_v54  ;;  %v6442_v54 = vld [vmem:[#allocation11 + $0x124] ss:$16 sps:$4 sm:$0xff]  }
 0x225   : > { %1913 = vmatpush2.bf16.msra.mxu0 %v6350_v55  ;;  %v6445_v55 = vld [vmem:[#allocation11 + $0x12c] ss:$16 sps:$4 sm:$0xff]  }
 0x226   : > { %1954 = vmatpush2.bf16.msra.mxu1 %v6353_v56  ;;  %2374 = vmatprep.subr.bf16.mxu0 %v6358_v58  ;;  %v6440_v56 = vld [vmem:[#allocation11 + $0x120] ss:$16 sps:$4 sm:$0xff]   ;;  %v6448_v58 = vld [vmem:[#allocation11 + $0x104] ss:$16 sps:$4 sm:$0xff]  }
 0x227   : > { %2415 = vmatprep.subr.bf16.mxu1 %v6361_v60  ;;  %v6446_v60 = vld [vmem:[#allocation11 + $0x100] ss:$16 sps:$4 sm:$0xff]  }
 0x228   : > { %1915 = vmatmul.mubr.bf16.vlgmr.msra.gmra.mxu0 %v7704_v52  ;;  %v6368_v52 = vld [vmem:[#allocation11 + $0xa0] ss:$16 sps:$4 sm:$0xff]  }
 0x229   : > { %1956 = vmatmul.mubr.bf16.vlgmr.msra.gmra.mxu1 %v7706_v53  ;;  %2375 = vmatpush1.bf16.msra.mxu0 %v6356_v57  ;;  %v6371_v53 = vld [vmem:[#allocation11 + $0xa8] ss:$16 sps:$4 sm:$0xff]  }
 0x22a   : > { %2416 = vmatpush1.bf16.msra.mxu1 %v6359_v59  ;;  %2376 = vmatprep.subr.bf16.mxu0 %v6364_v61  ;;  %v6443_v57 = vld [vmem:[#allocation11 + $0x128] ss:$16 sps:$4 sm:$0xff]   ;;  %v6451_v59 = vld [vmem:[#allocation11 + $0x10c] ss:$16 sps:$4 sm:$0xff]  }
 0x22b   : > { %2417 = vmatprep.subr.bf16.mxu1 %v6367_v62  ;;  %v6449_v61 = vld [vmem:[#allocation11 + $0x108] ss:$16 sps:$4 sm:$0xff]  }
 0x22c   : > { %v6454_v62 = vld [vmem:[#allocation14 + $0x74] ss:$8 sps:$4 sm:$0xff]  }
 0x22d   : > { %2377 = vmatpush1.bf16.msra.mxu0 %v6362_v63  ;;  %v6457_v63 = vld [vmem:[#allocation14 + $0x174] ss:$8 sps:$4 sm:$0xff]  }
 0x22e   : > { %2418 = vmatpush1.bf16.msra.mxu1 %v6365_v0  ;;  %2378 = vmatprep.subr.bf16.mxu0 %v6370_v1 }
 0x22f   : > { %2419 = vmatprep.subr.bf16.mxu1 %v6373_v2 }
 0x231   : > { %2379 = vmatpush1.bf16.msra.mxu0 %v6368_v52 }
 0x232   : > { %2420 = vmatpush1.bf16.msra.mxu1 %v6371_v53  ;;  %2380 = vmatprep.subr.bf16.mxu0 %v6376_v3 }
 0x233   : > { %2421 = vmatprep.subr.bf16.mxu1 %v6379_v4 }
 0x235   : > { %2381 = vmatpush1.bf16.msra.mxu0 %v6374_v5 }
 0x236   : > { %2422 = vmatpush1.bf16.msra.mxu1 %v6377_v6  ;;  %2382 = vmatprep.subr.bf16.mxu0 %v6382_v7 }
 0x237   : > { %2423 = vmatprep.subr.bf16.mxu1 %v6385_v8 }
 0x239   : > { %2383 = vmatpush1.bf16.msra.mxu0 %v6380_v9 }
 0x23a   : > { %2424 = vmatpush1.bf16.msra.mxu1 %v6383_v10  ;;  %2384 = vmatprep.subr.bf16.mxu0 %v6388_v11 }
 0x23b   : > { %2425 = vmatprep.subr.bf16.mxu1 %v6391_v12 }
 0x23d   : > { %2385 = vmatpush1.bf16.msra.mxu0 %v6386_v13 }
 0x23e   : > { %2426 = vmatpush1.bf16.msra.mxu1 %v6389_v14  ;;  %2386 = vmatprep.subr.bf16.mxu0 %v6394_v15 }
 0x23f   : > { %2427 = vmatprep.subr.bf16.mxu1 %v6397_v16 }
 0x241   : > { %2387 = vmatpush1.bf16.msra.mxu0 %v6392_v17 }
 0x242   : > { %2428 = vmatpush1.bf16.msra.mxu1 %v6395_v18  ;;  %2388 = vmatprep.subr.bf16.mxu0 %v6400_v19 }
 0x243   : > { %2429 = vmatprep.subr.bf16.mxu1 %v6403_v20 }
 0x245   : > { %2389 = vmatpush1.bf16.msra.mxu0 %v6398_v21  ;;  %v6452_v21 = vld [vmem:[#allocation14 + $0x70] ss:$8 sps:$4 sm:$0xff]  }
 0x246   : > { %2430 = vmatpush1.bf16.msra.mxu1 %v6401_v25  ;;  %2390 = vmatprep.subr.bf16.mxu0 %v6406_v28  ;;  %v6455_v25 = vld [vmem:[#allocation14 + $0x170] ss:$8 sps:$4 sm:$0xff]  }
 0x247   : > { %2431 = vmatprep.subr.bf16.mxu1 %v6409_v29  ;;  %v6460_v29 = vld [vmem:[#allocation14 + $0x64] ss:$8 sps:$4 sm:$0xff]  }
 0x249   : > { %2391 = vmatpush2.bf16.msra.mxu0 %v6404_v30  ;;  %v6463_v30 = vld [vmem:[#allocation14 + $0x164] ss:$8 sps:$4 sm:$0xff]  }
 0x24a   : > { %2432 = vmatpush2.bf16.msra.mxu1 %v6407_v31  ;;  %2392 = vmatprep.subr.bf16.mxu0 %v6412_v32  ;;  %v6458_v31 = vld [vmem:[#allocation14 + $0x60] ss:$8 sps:$4 sm:$0xff]  }
 0x24b   : > { %2433 = vmatprep.subr.bf16.mxu1 %v6415_v33  ;;  %v6461_v32 = vld [vmem:[#allocation14 + $0x160] ss:$8 sps:$4 sm:$0xff]   ;;  %v6466_v33 = vld [vmem:[#allocation14 + $0x54] ss:$8 sps:$4 sm:$0xff]  }
 0x24d   : > { %2393 = vmatpush2.bf16.msra.mxu0 %v6410_v34  ;;  %v6469_v34 = vld [vmem:[#allocation14 + $0x154] ss:$8 sps:$4 sm:$0xff]  }
 0x24e   : > { %2434 = vmatpush2.bf16.msra.mxu1 %v6413_v35  ;;  %2394 = vmatprep.subr.bf16.mxu0 %v6418_v36  ;;  %v6464_v35 = vld [vmem:[#allocation14 + $0x50] ss:$8 sps:$4 sm:$0xff]  }
 0x24f   : > { %2435 = vmatprep.subr.bf16.mxu1 %v6421_v37  ;;  %v6467_v36 = vld [vmem:[#allocation14 + $0x150] ss:$8 sps:$4 sm:$0xff]   ;;  %v6472_v37 = vld [vmem:[#allocation14 + $0x44] ss:$8 sps:$4 sm:$0xff]  }
 0x251   : > { %2395 = vmatpush2.bf16.msra.mxu0 %v6416_v38  ;;  %v6475_v38 = vld [vmem:[#allocation14 + $0x144] ss:$8 sps:$4 sm:$0xff]  }
 0x252   : > { %2436 = vmatpush2.bf16.msra.mxu1 %v6419_v39  ;;  %2396 = vmatprep.subr.bf16.mxu0 %v6424_v40  ;;  %v6470_v39 = vld [vmem:[#allocation14 + $0x40] ss:$8 sps:$4 sm:$0xff]  }
 0x253   : > { %2437 = vmatprep.subr.bf16.mxu1 %v6427_v41  ;;  %v6473_v40 = vld [vmem:[#allocation14 + $0x140] ss:$8 sps:$4 sm:$0xff]   ;;  %v6478_v41 = vld [vmem:[#allocation14 + $0x34] ss:$8 sps:$4 sm:$0xff]  }
 0x255   : > { %2397 = vmatpush2.bf16.msra.mxu0 %v6422_v42  ;;  %v6481_v42 = vld [vmem:[#allocation14 + $0x134] ss:$8 sps:$4 sm:$0xff]  }
 0x256   : > { %2438 = vmatpush2.bf16.msra.mxu1 %v6425_v43  ;;  %2398 = vmatprep.subr.bf16.mxu0 %v6430_v44  ;;  %v6476_v43 = vld [vmem:[#allocation14 + $0x30] ss:$8 sps:$4 sm:$0xff]  }
 0x257   : > { %2439 = vmatprep.subr.bf16.mxu1 %v6433_v45  ;;  %v6479_v44 = vld [vmem:[#allocation14 + $0x130] ss:$8 sps:$4 sm:$0xff]   ;;  %v6484_v45 = vld [vmem:[#allocation14 + $0x24] ss:$8 sps:$4 sm:$0xff]  }
 0x259   : > { %2399 = vmatpush2.bf16.msra.mxu0 %v6428_v46  ;;  %v6487_v46 = vld [vmem:[#allocation14 + $0x124] ss:$8 sps:$4 sm:$0xff]  }
 0x25a   : > { %2440 = vmatpush2.bf16.msra.mxu1 %v6431_v47  ;;  %2400 = vmatprep.subr.bf16.mxu0 %v6436_v48  ;;  %v6482_v47 = vld [vmem:[#allocation14 + $0x20] ss:$8 sps:$4 sm:$0xff]  }
 0x25b   : > { %2441 = vmatprep.subr.bf16.mxu1 %v6439_v49  ;;  %v6485_v48 = vld [vmem:[#allocation14 + $0x120] ss:$8 sps:$4 sm:$0xff]   ;;  %v6490_v49 = vld [vmem:[#allocation14 + $0x14] ss:$8 sps:$4 sm:$0xff]  }
 0x25d   : > { %2401 = vmatpush2.bf16.msra.mxu0 %v6434_v50  ;;  %v6493_v50 = vld [vmem:[#allocation14 + $0x114] ss:$8 sps:$4 sm:$0xff]  }
 0x25e   : > { %2442 = vmatpush2.bf16.msra.mxu1 %v6437_v51  ;;  %2402 = vmatprep.subr.bf16.mxu0 %v6442_v54  ;;  %v6488_v51 = vld [vmem:[#allocation14 + $0x10] ss:$8 sps:$4 sm:$0xff]  }
 0x25f   : > { %2443 = vmatprep.subr.bf16.mxu1 %v6445_v55  ;;  %v6491_v54 = vld [vmem:[#allocation14 + $0x110] ss:$8 sps:$4 sm:$0xff]   ;;  %v6496_v55 = vld [vmem:[#allocation14 + $0x4] ss:$8 sps:$4 sm:$0xff]  }
 0x261   : > { %2403 = vmatpush2.bf16.msra.mxu0 %v6440_v56  ;;  %v6499_v56 = vld [vmem:[#allocation14 + $0x104] ss:$8 sps:$4 sm:$0xff]  }
 0x262   : > { %2444 = vmatpush2.bf16.msra.mxu1 %v6443_v57  ;;  %2404 = vmatprep.subr.bf16.mxu0 %v6448_v58  ;;  %v6494_v57 = vld [vmem:[#allocation14] ss:$8 sps:$4 sm:$0xff]  }
 0x263   : > { %2445 = vmatprep.subr.bf16.mxu1 %v6451_v59  ;;  %v6497_v58 = vld [vmem:[#allocation14 + $0x100] ss:$8 sps:$4 sm:$0xff]   ;;  %v6502_v59 = vld [vmem:[#allocation14 + $0xf4] ss:$8 sps:$4 sm:$0xff]  }
 0x265   : > { %2405 = vmatpush2.bf16.msra.mxu0 %v6446_v60  ;;  %v6505_v60 = vld [vmem:[#allocation14 + $0x1f4] ss:$8 sps:$4 sm:$0xff]  }
 0x266   : > { %2446 = vmatpush2.bf16.msra.mxu1 %v6449_v61  ;;  %2848 = vmatprep.subr.bf16.mxu0 %v6454_v62  ;;  %v6500_v61 = vld [vmem:[#allocation14 + $0xf0] ss:$8 sps:$4 sm:$0xff]  }
 0x267   : > { %2889 = vmatprep.subr.bf16.mxu1 %v6457_v63  ;;  %v6503_v62 = vld [vmem:[#allocation14 + $0x1f0] ss:$8 sps:$4 sm:$0xff]   ;;  %v6508_v63 = vld [vmem:[#allocation14 + $0xe4] ss:$8 sps:$4 sm:$0xff]  }
 0x2a8   : > { %v1450_v0 = vpop.f32.mrf.mxu0 }
 0x2a9   : > { %v1491_v1 = vpop.f32.mrf.mxu1 }
 0x2aa   : > { %v1492_v2 = vadd.f32 %v1491_v1, %v1450_v0  ;;  %v1452_v52 = vpop.f32.mrf.mxu0  ;;  %v6511_v0 = vld [vmem:[#allocation14 + $0x1e4] ss:$8 sps:$4 sm:$0xff]   ;;  %v6506_v1 = vld [vmem:[#allocation14 + $0xe0] ss:$8 sps:$4 sm:$0xff]  }
 0x2ab   : > { %v1493_v53 = vpop.f32.mrf.mxu1 }
 0x2ac   : > { %v1494_v3 = vadd.f32 %v1493_v53, %v1452_v52  ;;  %v1454_v4 = vpop.f32.mrf.mxu0  ;;  %v6514_v52 = vld [vmem:[#allocation14 + $0xd4] ss:$8 sps:$4 sm:$0xff]  }
 0x2ad   : > { %v1495_v5 = vpop.f32.mrf.mxu1  ;;  %v6517_v53 = vld [vmem:[#allocation14 + $0x1d4] ss:$8 sps:$4 sm:$0xff]   ;;  %v6515_v4 = vld [vmem:[#allocation14 + $0x1d0] ss:$8 sps:$4 sm:$0xff]  }
 0x2ae   : > { %v1455_v6 = vpop.f32.mrf.mxu0  ;;  %v6520_v5 = vld [vmem:[#allocation14 + $0xc4] ss:$8 sps:$4 sm:$0xff]  }
 0x2af   : > { %v1496_v7 = vpop.f32.mrf.mxu1  ;;  %v6523_v6 = vld [vmem:[#allocation14 + $0x1c4] ss:$8 sps:$4 sm:$0xff]  }
 0x2b0   : > { %v6518_v7 = vld [vmem:[#allocation14 + $0xc0] ss:$8 sps:$4 sm:$0xff]  }
 0x2e8   : > { %v1916_v8 = vpop.f32.mrf.mxu0 }
 0x2e9   : > { %v1957_v9 = vpop.f32.mrf.mxu1 }
 0x2ea   : > { %v1958_v10 = vadd.f32 %v1957_v9, %v1916_v8  ;;  %v1918_v11 = vpop.f32.mrf.mxu0  ;;  %v6521_v8 = vld [vmem:[#allocation14 + $0x1c0] ss:$8 sps:$4 sm:$0xff]   ;;  %v6526_v9 = vld [vmem:[#allocation14 + $0xb4] ss:$8 sps:$4 sm:$0xff]  }
 0x2eb   : > { %v1959_v12 = vpop.f32.mrf.mxu1 }
 0x2ec   : > { %v1960_v13 = vadd.f32 %v1959_v12, %v1918_v11  ;;  %v1964_v14 = vmax.f32 %v1492_v2, %v1958_v10  ;;  %v1920_v15 = vpop.f32.mrf.mxu0  ;;  %v6509_v2 = vld [vmem:[#allocation14 + $0x1e0] ss:$8 sps:$4 sm:$0xff]   ;;  %v6529_v10 = vld [vmem:[#allocation14 + $0x1b4] ss:$8 sps:$4 sm:$0xff]   ;;  %v6524_v11 = vld [vmem:[#allocation14 + $0xb0] ss:$8 sps:$4 sm:$0xff]  }
 0x2ed   : > { %v1961_v16 = vpop.f32.mrf.mxu1  ;;  %v6527_v12 = vld [vmem:[#allocation14 + $0x1b0] ss:$8 sps:$4 sm:$0xff]   ;;  %v6530_v15 = vld [vmem:[#allocation14 + $0xa0] ss:$8 sps:$4 sm:$0xff]  }
 0x2ee   : > { %v1965_v17 = vmax.f32 %v1494_v3, %v1960_v13  ;;  %v1921_v18 = vpop.f32.mrf.mxu0  ;;  %v1966_v28 = vpack.c.bf16 %v1964_v14, %v1964_v14  ;;  %v6512_v3 = vld [vmem:[#allocation14 + $0xd0] ss:$8 sps:$4 sm:$0xff]   ;;  %v6532_v13 = vld [vmem:[#allocation14 + $0xa4] ss:$8 sps:$4 sm:$0xff]   ;;  %v6533_v16 = vld [vmem:[#allocation14 + $0x1a0] ss:$8 sps:$4 sm:$0xff]  }
 0x2ef   : > { %v1962_v19 = vpop.f32.mrf.mxu1  ;;  %v6535_v14 = vld [vmem:[#allocation14 + $0x1a4] ss:$8 sps:$4 sm:$0xff]   ;;  %v6541_v18 = vld [vmem:[#allocation14 + $0x194] ss:$8 sps:$4 sm:$0xff]  }
 0x2f0   : > { %v1967_v20 = vpack.c.bf16 %v1965_v17, %v1965_v17  ;;  %v6538_v17 = vld [vmem:[#allocation14 + $0x94] ss:$8 sps:$4 sm:$0xff]   ;;  %v6536_v19 = vld [vmem:[#allocation14 + $0x90] ss:$8 sps:$4 sm:$0xff]  }
 0x2f2   : > { %2406 = vmatprep.mubr.bf16.mxu0 %v1967_v20  ;;  %2447 = vmatprep.mubr.bf16.mxu1 %v1967_v20  ;;  %v6539_v20 = vld [vmem:[#allocation14 + $0x190] ss:$8 sps:$4 sm:$0xff]  }
 0x2f3   : > { %2407 = vmatmul.mubr.bf16.vlgmr.msra.gmra.mxu0 %v1966_v28  ;;  %2448 = vmatmul.mubr.bf16.vlgmr.msra.gmra.mxu1 %v1966_v28  ;;  %v6542_v28 = vld [vmem:[#allocation14 + $0x80] ss:$8 sps:$4 sm:$0xff]  }
 0x2f4   : > { %2849 = vmatpush1.bf16.msra.mxu0 %v6452_v21  ;;  %2890 = vmatpush1.bf16.msra.mxu1 %v6455_v25  ;;  %v6544_v21 = vld [vmem:[#allocation14 + $0x84] ss:$8 sps:$4 sm:$0xff]  }
 0x2f5   : > { %2850 = vmatprep.subr.bf16.mxu0 %v6460_v29  ;;  %2891 = vmatprep.subr.bf16.mxu1 %v6463_v30  ;;  %v6547_v25 = vld [vmem:[#allocation14 + $0x184] ss:$8 sps:$4 sm:$0xff]   ;;  %v6545_v29 = vld [vmem:[#allocation14 + $0x180] ss:$8 sps:$4 sm:$0xff]   ;;  %v6550_v30 = vld [vmem:[#allocation16 + $0x74] ss:$8 sps:$4 sm:$0xff]  }
 0x2f8   : > { %2851 = vmatpush1.bf16.msra.mxu0 %v6458_v31  ;;  %2892 = vmatpush1.bf16.msra.mxu1 %v6461_v32  ;;  %v6553_v31 = vld [vmem:[#allocation16 + $0x174] ss:$8 sps:$4 sm:$0xff]  }
 0x2f9   : > { %2852 = vmatprep.subr.bf16.mxu0 %v6466_v33  ;;  %2893 = vmatprep.subr.bf16.mxu1 %v6469_v34  ;;  %v2032_v32 = vld [vmem:[#allocation13] sm:$0xf] }
 0x2fa   : > { %v2037_v33 = vrot.slane %v2032_v32, %v7691_v23  ;;  %v2045_v34 = vrot.slane %v2032_v32, %v865_v24 }
 0x2fc   : > { %2853 = vmatpush1.bf16.msra.mxu0 %v6464_v35  ;;  %2894 = vmatpush1.bf16.msra.mxu1 %v6467_v36  ;;  %v2041_v35 = vrot.slane %v2032_v32, %v7695_v26  ;;  %v2049_v36 = vrot.slane %v2032_v32, %v869_v27  ;;  %v6551_v27 = vld [vmem:[#allocation16 + $0x170] ss:$8 sps:$4 sm:$0xff]   ;;  %v6605_v32 = vld [vmem:[#allocation16 + $0x1e0] ss:$8 sps:$4 sm:$0xff]  }
 0x2fd   : > { %2854 = vmatprep.subr.bf16.mxu0 %v6472_v37  ;;  %2895 = vmatprep.subr.bf16.mxu1 %v6475_v38 }
 0x300   : > { %2855 = vmatpush1.bf16.msra.mxu0 %v6470_v39  ;;  %2896 = vmatpush1.bf16.msra.mxu1 %v6473_v40 }
 0x301   : > { %2856 = vmatprep.subr.bf16.mxu0 %v6478_v41  ;;  %2897 = vmatprep.subr.bf16.mxu1 %v6481_v42 }
 0x304   : > { %2857 = vmatpush1.bf16.msra.mxu0 %v6476_v43  ;;  %2898 = vmatpush1.bf16.msra.mxu1 %v6479_v44 }
 0x305   : > { %2858 = vmatprep.subr.bf16.mxu0 %v6484_v45  ;;  %2899 = vmatprep.subr.bf16.mxu1 %v6487_v46 }
 0x308   : > { %2859 = vmatpush1.bf16.msra.mxu0 %v6482_v47  ;;  %2900 = vmatpush1.bf16.msra.mxu1 %v6485_v48 }
 0x309   : > { %2860 = vmatprep.subr.bf16.mxu0 %v6490_v49  ;;  %2901 = vmatprep.subr.bf16.mxu1 %v6493_v50 }
 0x30c   : > { %2861 = vmatpush1.bf16.msra.mxu0 %v6488_v51  ;;  %2902 = vmatpush1.bf16.msra.mxu1 %v6491_v54 }
 0x30d   : > { %2862 = vmatprep.subr.bf16.mxu0 %v6496_v55  ;;  %2903 = vmatprep.subr.bf16.mxu1 %v6499_v56 }
 0x310   : > { %2863 = vmatpush1.bf16.msra.mxu0 %v6494_v57  ;;  %2904 = vmatpush1.bf16.msra.mxu1 %v6497_v58  ;;  %v6556_v58 = vld [vmem:[#allocation16 + $0x64] ss:$8 sps:$4 sm:$0xff]  }
 0x311   : > { %2864 = vmatprep.subr.bf16.mxu0 %v6502_v59  ;;  %2905 = vmatprep.subr.bf16.mxu1 %v6505_v60  ;;  %v6559_v59 = vld [vmem:[#allocation16 + $0x164] ss:$8 sps:$4 sm:$0xff]   ;;  %v6554_v60 = vld [vmem:[#allocation16 + $0x60] ss:$8 sps:$4 sm:$0xff]  }
 0x314   : > { %2865 = vmatpush2.bf16.msra.mxu0 %v6500_v61  ;;  %2906 = vmatpush2.bf16.msra.mxu1 %v6503_v62  ;;  %v6557_v61 = vld [vmem:[#allocation16 + $0x160] ss:$8 sps:$4 sm:$0xff]   ;;  %v6562_v62 = vld [vmem:[#allocation16 + $0x54] ss:$8 sps:$4 sm:$0xff]  }
 0x315   : > { %2866 = vmatprep.subr.bf16.mxu0 %v6508_v63  ;;  %2907 = vmatprep.subr.bf16.mxu1 %v6511_v0  ;;  %v6565_v63 = vld [vmem:[#allocation16 + $0x154] ss:$8 sps:$4 sm:$0xff]   ;;  %v6560_v0 = vld [vmem:[#allocation16 + $0x50] ss:$8 sps:$4 sm:$0xff]  }
 0x318   : > { %2867 = vmatpush2.bf16.msra.mxu0 %v6506_v1  ;;  %2908 = vmatpush2.bf16.msra.mxu1 %v6509_v2  ;;  %v6563_v1 = vld [vmem:[#allocation16 + $0x150] ss:$8 sps:$4 sm:$0xff]   ;;  %v6568_v2 = vld [vmem:[#allocation16 + $0x44] ss:$8 sps:$4 sm:$0xff]  }
 0x319   : > { %2868 = vmatprep.subr.bf16.mxu0 %v6514_v52  ;;  %2909 = vmatprep.subr.bf16.mxu1 %v6517_v53  ;;  %v6571_v52 = vld [vmem:[#allocation16 + $0x144] ss:$8 sps:$4 sm:$0xff]   ;;  %v6566_v53 = vld [vmem:[#allocation16 + $0x40] ss:$8 sps:$4 sm:$0xff]  }
 0x31c   : > { %2869 = vmatpush2.bf16.msra.mxu0 %v6512_v3  ;;  %2910 = vmatpush2.bf16.msra.mxu1 %v6515_v4  ;;  %v6569_v3 = vld [vmem:[#allocation16 + $0x140] ss:$8 sps:$4 sm:$0xff]   ;;  %v6574_v4 = vld [vmem:[#allocation16 + $0x34] ss:$8 sps:$4 sm:$0xff]  }
 0x31d   : > { %2870 = vmatprep.subr.bf16.mxu0 %v6520_v5  ;;  %2911 = vmatprep.subr.bf16.mxu1 %v6523_v6  ;;  %v6577_v5 = vld [vmem:[#allocation16 + $0x134] ss:$8 sps:$4 sm:$0xff]   ;;  %v6572_v6 = vld [vmem:[#allocation16 + $0x30] ss:$8 sps:$4 sm:$0xff]  }
 0x320   : > { %2871 = vmatpush2.bf16.msra.mxu0 %v6518_v7  ;;  %2912 = vmatpush2.bf16.msra.mxu1 %v6521_v8  ;;  %v6575_v7 = vld [vmem:[#allocation16 + $0x130] ss:$8 sps:$4 sm:$0xff]   ;;  %v6580_v8 = vld [vmem:[#allocation16 + $0x24] ss:$8 sps:$4 sm:$0xff]  }
 0x321   : > { %2872 = vmatprep.subr.bf16.mxu0 %v6526_v9  ;;  %2913 = vmatprep.subr.bf16.mxu1 %v6529_v10  ;;  %v6583_v9 = vld [vmem:[#allocation16 + $0x124] ss:$8 sps:$4 sm:$0xff]   ;;  %v6578_v10 = vld [vmem:[#allocation16 + $0x20] ss:$8 sps:$4 sm:$0xff]  }
 0x324   : > { %2873 = vmatpush2.bf16.msra.mxu0 %v6524_v11  ;;  %2914 = vmatpush2.bf16.msra.mxu1 %v6527_v12  ;;  %v6581_v11 = vld [vmem:[#allocation16 + $0x120] ss:$8 sps:$4 sm:$0xff]   ;;  %v6586_v12 = vld [vmem:[#allocation16 + $0x14] ss:$8 sps:$4 sm:$0xff]  }
 0x325   : > { %2874 = vmatprep.subr.bf16.mxu0 %v6532_v13  ;;  %2915 = vmatprep.subr.bf16.mxu1 %v6535_v14  ;;  %v6589_v13 = vld [vmem:[#allocation16 + $0x114] ss:$8 sps:$4 sm:$0xff]   ;;  %v6584_v14 = vld [vmem:[#allocation16 + $0x10] ss:$8 sps:$4 sm:$0xff]  }
 0x328   : > { %2875 = vmatpush2.bf16.msra.mxu0 %v6530_v15  ;;  %2916 = vmatpush2.bf16.msra.mxu1 %v6533_v16  ;;  %v6587_v15 = vld [vmem:[#allocation16 + $0x110] ss:$8 sps:$4 sm:$0xff]   ;;  %v6592_v16 = vld [vmem:[#allocation16 + $0x4] ss:$8 sps:$4 sm:$0xff]  }
 0x329   : > { %2876 = vmatprep.subr.bf16.mxu0 %v6538_v17  ;;  %2917 = vmatprep.subr.bf16.mxu1 %v6541_v18  ;;  %v6595_v17 = vld [vmem:[#allocation16 + $0x104] ss:$8 sps:$4 sm:$0xff]   ;;  %v6590_v18 = vld [vmem:[#allocation16] ss:$8 sps:$4 sm:$0xff]  }
 0x32c   : > { %2877 = vmatpush2.bf16.msra.mxu0 %v6536_v19  ;;  %2918 = vmatpush2.bf16.msra.mxu1 %v6539_v20  ;;  %v6593_v19 = vld [vmem:[#allocation16 + $0x100] ss:$8 sps:$4 sm:$0xff]   ;;  %v6598_v20 = vld [vmem:[#allocation16 + $0xf4] ss:$8 sps:$4 sm:$0xff]  }
 0x32d   : > { %2878 = vmatprep.subr.bf16.mxu0 %v6544_v21  ;;  %2919 = vmatprep.subr.bf16.mxu1 %v6547_v25  ;;  %v6601_v21 = vld [vmem:[#allocation16 + $0x1f4] ss:$8 sps:$4 sm:$0xff]   ;;  %v6596_v25 = vld [vmem:[#allocation16 + $0xf0] ss:$8 sps:$4 sm:$0xff]  }
 0x330   : > { %2879 = vmatpush2.bf16.msra.mxu0 %v6542_v28  ;;  %2920 = vmatpush2.bf16.msra.mxu1 %v6545_v29  ;;  %v6599_v28 = vld [vmem:[#allocation16 + $0x1f0] ss:$8 sps:$4 sm:$0xff]   ;;  %v6604_v29 = vld [vmem:[#allocation16 + $0xe4] ss:$8 sps:$4 sm:$0xff]  }
 0x331   : > { %3314 = vmatprep.subr.bf16.mxu0 %v6550_v30  ;;  %3355 = vmatprep.subr.bf16.mxu1 %v6553_v31  ;;  %v6607_v30 = vld [vmem:[#allocation16 + $0x1e4] ss:$8 sps:$4 sm:$0xff]   ;;  %v6602_v31 = vld [vmem:[#allocation16 + $0xe0] ss:$8 sps:$4 sm:$0xff]  }
 0x3b3   : > { %v2408_v37 = vpop.f32.mrf.mxu0  ;;  %v2449_v38 = vpop.f32.mrf.mxu1 }
 0x3b4   : > { %v2409_v39 = vadd.f32 %v2408_v37, %v2037_v33  ;;  %v2450_v40 = vadd.f32 %v2449_v38, %v2045_v34  ;;  %v6610_v33 = vld [vmem:[#allocation16 + $0xd4] ss:$8 sps:$4 sm:$0xff]   ;;  %v6616_v37 = vld [vmem:[#allocation16 + $0xc4] ss:$8 sps:$4 sm:$0xff]  }
 0x3b5   : > { %v2410_v41 = vpop.f32.mrf.mxu0  ;;  %v2451_v42 = vpop.f32.mrf.mxu1  ;;  %v6613_v34 = vld [vmem:[#allocation16 + $0x1d4] ss:$8 sps:$4 sm:$0xff]   ;;  %v6619_v38 = vld [vmem:[#allocation16 + $0x1c4] ss:$8 sps:$4 sm:$0xff]  }
 0x3b6   : > { %v2411_v43 = vadd.f32 %v2410_v41, %v2041_v35  ;;  %v2452_v44 = vadd.f32 %v2451_v42, %v2049_v36  ;;  %v2456_v45 = vmax.f32 %v2409_v39, 0.0  ;;  %v2458_v46 = vmax.f32 %v2450_v40, 0.0  ;;  %v6608_v35 = vld [vmem:[#allocation16 + $0xd0] ss:$8 sps:$4 sm:$0xff]   ;;  %v6614_v39 = vld [vmem:[#allocation16 + $0xc0] ss:$8 sps:$4 sm:$0xff]  }
 0x3b7   : > { %v2412_v47 = vpop.f32.mrf.mxu0  ;;  %v2453_v48 = vpop.f32.mrf.mxu1  ;;  %v6611_v36 = vld [vmem:[#allocation16 + $0x1d0] ss:$8 sps:$4 sm:$0xff]   ;;  %v6617_v40 = vld [vmem:[#allocation16 + $0x1c0] ss:$8 sps:$4 sm:$0xff]   ;;  %v6622_v41 = vld [vmem:[#allocation16 + $0xb4] ss:$8 sps:$4 sm:$0xff]  }
 0x3b8   : > { %v2457_v49 = vmax.f32 %v2411_v43, 0.0  ;;  %v2459_v50 = vmax.f32 %v2452_v44, 0.0  ;;  %v7718_v56 = vpack.c.bf16 %v2456_v45, %v2456_v45  ;;  %v7720_v57 = vpack.c.bf16 %v2458_v46, %v2458_v46  ;;  %v6625_v42 = vld [vmem:[#allocation16 + $0x1b4] ss:$8 sps:$4 sm:$0xff]   ;;  %v6620_v43 = vld [vmem:[#allocation16 + $0xb0] ss:$8 sps:$4 sm:$0xff]  }
 0x3b9   : > { %v2413_v24 = vpop.f32.mrf.mxu0  ;;  %v2454_v51 = vpop.f32.mrf.mxu1  ;;  %v6623_v44 = vld [vmem:[#allocation16 + $0x1b0] ss:$8 sps:$4 sm:$0xff]   ;;  %v6628_v45 = vld [vmem:[#allocation16 + $0xa4] ss:$8 sps:$4 sm:$0xff]   ;;  %v6626_v47 = vld [vmem:[#allocation16 + $0xa0] ss:$8 sps:$4 sm:$0xff]  }
 0x3ba   : > { %v2461_v54 = vpack.c.bf16 %v2457_v49, %v2457_v49  ;;  %v2463_v55 = vpack.c.bf16 %v2459_v50, %v2459_v50  ;;  %v6631_v46 = vld [vmem:[#allocation16 + $0x1a4] ss:$8 sps:$4 sm:$0xff]   ;;  %v6629_v48 = vld [vmem:[#allocation16 + $0x1a0] ss:$8 sps:$4 sm:$0xff]   ;;  %v6634_v49 = vld [vmem:[#allocation16 + $0x94] ss:$8 sps:$4 sm:$0xff]  }
 0x3bb   : > { %v6637_v50 = vld [vmem:[#allocation16 + $0x194] ss:$8 sps:$4 sm:$0xff]   ;;  %v6632_v24 = vld [vmem:[#allocation16 + $0x90] ss:$8 sps:$4 sm:$0xff]  }
 0x3bc   : > { %2880 = vmatprep.mubr.bf16.mxu0 %v2461_v54  ;;  %2921 = vmatprep.mubr.bf16.mxu1 %v2463_v55  ;;  %v6635_v51 = vld [vmem:[#allocation16 + $0x190] ss:$8 sps:$4 sm:$0xff]  }
 0x3bd   : > { %2881 = vmatmul.mubr.bf16.vlgmr.msra.gmra.mxu0 %v7718_v56  ;;  %2922 = vmatmul.mubr.bf16.vlgmr.msra.gmra.mxu1 %v7720_v57 }
 0x3be   : > { %3315 = vmatpush1.bf16.msra.mxu0 %v6548_v22  ;;  %3356 = vmatpush1.bf16.msra.mxu1 %v6551_v27  ;;  %v6638_v22 = vld [vmem:[#allocation16 + $0x80] ss:$8 sps:$4 sm:$0xff]  }
 0x3bf   : > { %3346 = vmatprep.mubr.bf16.mxu0 %v2461_v54  ;;  %3387 = vmatprep.mubr.bf16.mxu1 %v2463_v55  ;;  %v6640_v54 = vld [vmem:[#allocation16 + $0x84] ss:$8 sps:$4 sm:$0xff]   ;;  %v6641_v27 = vld [vmem:[#allocation16 + $0x180] ss:$8 sps:$4 sm:$0xff]  }
 0x3c0   : > { %3316 = vmatprep.subr.bf16.mxu0 %v6556_v58  ;;  %3357 = vmatprep.subr.bf16.mxu1 %v6559_v59  ;;  %v6643_v55 = vld [vmem:[#allocation16 + $0x184] ss:$8 sps:$4 sm:$0xff]  }
 0x3c1   : > { %v6644_v58 = vld [vmem:[#allocation20 + $0x8] sm:$0xff]   ;;  %v6645_v59 = vld [vmem:[%s8383_s10 + $0x8] sm:$0xff]  }
 0x3c2   : > { %3317 = vmatpush1.bf16.msra.mxu0 %v6554_v60  ;;  %3358 = vmatpush1.bf16.msra.mxu1 %v6557_v61 }
 0x3c3   : > { %3318 = vmatprep.subr.bf16.mxu0 %v6562_v62  ;;  %3359 = vmatprep.subr.bf16.mxu1 %v6565_v63 }
 0x3c6   : > { %3319 = vmatpush1.bf16.msra.mxu0 %v6560_v0  ;;  %3360 = vmatpush1.bf16.msra.mxu1 %v6563_v1 }
 0x3c7   : > { %3320 = vmatprep.subr.bf16.mxu0 %v6568_v2  ;;  %3361 = vmatprep.subr.bf16.mxu1 %v6571_v52 }
 0x3ca   : > { %3321 = vmatpush1.bf16.msra.mxu0 %v6566_v53  ;;  %3362 = vmatpush1.bf16.msra.mxu1 %v6569_v3  ;;  %v6647_v3 = vld [vmem:[%s8383_s10] sm:$0xff]  }
 0x3cb   : > { %3322 = vmatprep.subr.bf16.mxu0 %v6574_v4  ;;  %3363 = vmatprep.subr.bf16.mxu1 %v6577_v5  ;;  %v3398_v4 = vld [vmem:[#allocation17] sm:$0x3] }
 0x3ce   : > { %3323 = vmatpush1.bf16.msra.mxu0 %v6572_v6  ;;  %3364 = vmatpush1.bf16.msra.mxu1 %v6575_v7 }
 0x3cf   : > { %3324 = vmatprep.subr.bf16.mxu0 %v6580_v8  ;;  %3365 = vmatprep.subr.bf16.mxu1 %v6583_v9  ;;  %v3403_v8 = vrot.slane %v3398_v4, %v7691_v23 }
 0x3d2   : > { %3325 = vmatpush1.bf16.msra.mxu0 %v6578_v10  ;;  %3366 = vmatpush1.bf16.msra.mxu1 %v6581_v11 }
 0x3d3   : > { %3326 = vmatprep.subr.bf16.mxu0 %v6586_v12  ;;  %3367 = vmatprep.subr.bf16.mxu1 %v6589_v13 }
 0x3d6   : > { %3327 = vmatpush1.bf16.msra.mxu0 %v6584_v14  ;;  %3368 = vmatpush1.bf16.msra.mxu1 %v6587_v15 }
 0x3d7   : > { %3328 = vmatprep.subr.bf16.mxu0 %v6592_v16  ;;  %3369 = vmatprep.subr.bf16.mxu1 %v6595_v17  ;;  %v3407_v17 = vrot.slane %v3398_v4, %v7695_v26 }
 0x3da   : > { %3329 = vmatpush1.bf16.msra.mxu0 %v6590_v18  ;;  %3370 = vmatpush1.bf16.msra.mxu1 %v6593_v19 }
 0x3db   : > { %3330 = vmatprep.subr.bf16.mxu0 %v6598_v20  ;;  %3371 = vmatprep.subr.bf16.mxu1 %v6601_v21  ;;  %v6648_v20 = vld [vmem:[#allocation22 + $0x8] sm:$0xff]  }
 0x3de   : > { %3331 = vmatpush2.bf16.msra.mxu0 %v6596_v25  ;;  %3372 = vmatpush2.bf16.msra.mxu1 %v6599_v28 }
 0x3df   : > { %3332 = vmatprep.subr.bf16.mxu0 %v6604_v29  ;;  %3373 = vmatprep.subr.bf16.mxu1 %v6607_v30 }
 0x3e2   : > { %3333 = vmatpush2.bf16.msra.mxu0 %v6602_v31  ;;  %3374 = vmatpush2.bf16.msra.mxu1 %v6605_v32  ;;  %v6649_v32 = vld [vmem:[#allocation22] sm:$0xff]  }
 0x3e3   : > { %3334 = vmatprep.subr.bf16.mxu0 %v6610_v33  ;;  %3375 = vmatprep.subr.bf16.mxu1 %v6613_v34 }
 0x3e6   : > { %3335 = vmatpush2.bf16.msra.mxu0 %v6608_v35  ;;  %3376 = vmatpush2.bf16.msra.mxu1 %v6611_v36 }
 0x3e7   : > { %3336 = vmatprep.subr.bf16.mxu0 %v6616_v37  ;;  %3377 = vmatprep.subr.bf16.mxu1 %v6619_v38 }
 0x3ea   : > { %3337 = vmatpush2.bf16.msra.mxu0 %v6614_v39  ;;  %3378 = vmatpush2.bf16.msra.mxu1 %v6617_v40  ;;  %v5577_v40 = vld [vmem:[#allocation19] ss:$0 sm:$0xff] }
 0x3eb   : > { %3338 = vmatprep.subr.bf16.mxu0 %v6622_v41  ;;  %3379 = vmatprep.subr.bf16.mxu1 %v6625_v42 }
 0x3ee   : > { %3339 = vmatpush2.bf16.msra.mxu0 %v6620_v43  ;;  %3380 = vmatpush2.bf16.msra.mxu1 %v6623_v44 }
 0x3ef   : > { %3340 = vmatprep.subr.bf16.mxu0 %v6628_v45  ;;  %3381 = vmatprep.subr.bf16.mxu1 %v6631_v46 }
 0x3f2   : > { %3341 = vmatpush2.bf16.msra.mxu0 %v6626_v47  ;;  %3382 = vmatpush2.bf16.msra.mxu1 %v6629_v48 }
 0x3f3   : > { %3342 = vmatprep.subr.bf16.mxu0 %v6634_v49  ;;  %3383 = vmatprep.subr.bf16.mxu1 %v6637_v50 }
 0x3f6   : > { %3343 = vmatpush2.bf16.msra.mxu0 %v6632_v24  ;;  %3384 = vmatpush2.bf16.msra.mxu1 %v6635_v51 }
 0x3f7   : > { %3344 = vmatprep.subr.bf16.mxu0 %v6640_v54  ;;  %3385 = vmatprep.subr.bf16.mxu1 %v6643_v55  ;;  %v5584_v55 = vld [vmem:[%s8458_s4] ss:$0 sm:$0xff] }
 0x3fa   : > { %3345 = vmatpush2.bf16.msra.mxu0 %v6638_v22  ;;  %3386 = vmatpush2.bf16.msra.mxu1 %v6641_v27 }
 0x3fb   : > { %5735 = vmatprep.subr.bf16.mxu1 %v6644_v58  ;;  %5723 = vmatprep.subr.bf16.mxu0 %v6645_v59 }
 0x3fd   : > { %3347 = vmatmul.mubr.bf16.vlgmr.msra.gmra.mxu0 %v7718_v56  ;;  %3388 = vmatmul.mubr.bf16.vlgmr.msra.gmra.mxu1 %v7720_v57  ;;  %v6646_v57 = vld [vmem:[#allocation20] sm:$0xff]  }
 0x3fe   : > { %5736 = vmatpush3.bf16.msra.mxu1 %v6644_v58  ;;  %5724 = vmatpush3.bf16.msra.mxu0 %v6645_v59 }
 0x3ff   : > { %5737 = vmatprep.subr.bf16.mxu1 %v6646_v57  ;;  %5725 = vmatprep.subr.bf16.mxu0 %v6647_v3 }
 0x402   : > { %5738 = vmatpush3.bf16.msra.mxu1 %v6646_v57  ;;  %5726 = vmatpush3.bf16.msra.mxu0 %v6647_v3 }
 0x403   : > { %5747 = vmatprep.subr.bf16.mxu0 %v6648_v20 }
 0x47d   : > { %v2882_v60 = vpop.f32.mrf.mxu0  ;;  %v2923_v61 = vpop.f32.mrf.mxu1 }
 0x47e   : > { %v2924_v62 = vadd.f32 %v2923_v61, %v2882_v60 }
 0x47f   : > { %v2884_v63 = vpop.f32.mrf.mxu0  ;;  %v2925_v0 = vpop.f32.mrf.mxu1 }
 0x480   : > { %v2926_v1 = vadd.f32 %v2925_v0, %v2884_v63 }
 0x481   : > { %v2886_v2 = vpop.f32.mrf.mxu0  ;;  %v2927_v52 = vpop.f32.mrf.mxu1 }
 0x483   : > { %v2887_v56 = vpop.f32.mrf.mxu0  ;;  %v2928_v53 = vpop.f32.mrf.mxu1 }
 0x4bd   : > { %v3348_v5 = vpop.f32.mrf.mxu0  ;;  %v3389_v6 = vpop.f32.mrf.mxu1 }
 0x4be   : > { %v3390_v7 = vadd.f32 %v3389_v6, %v3348_v5 }
 0x4bf   : > { %v3350_v9 = vpop.f32.mrf.mxu0  ;;  %v3391_v10 = vpop.f32.mrf.mxu1 }
 0x4c0   : > { %v3396_v11 = vmax.f32 %v2924_v62, %v3390_v7  ;;  %v3392_v12 = vadd.f32 %v3391_v10, %v3350_v9 }
 0x4c1   : > { %v3352_v13 = vpop.f32.mrf.mxu0  ;;  %v3393_v14 = vpop.f32.mrf.mxu1 }
 0x4c2   : > { %v3410_v15 = vadd.f32 %v3403_v8, %v3396_v11  ;;  %v3397_v16 = vmax.f32 %v2926_v1, %v3392_v12 }
 0x4c3   : > { %v3353_v18 = vpop.f32.mrf.mxu0  ;;  %v3394_v19 = vpop.f32.mrf.mxu1 }
 0x4c4   : > { %3419 = vrot.lane.b32.xlu1 %v3410_v15, %s7288_s15  ;;  %3413 = vrot.lane.b32.xlu0 %v3410_v15, %s7289_s27  ;;  %v3411_v21 = vadd.f32 %v3407_v17, %v3397_v16 }
 0x4c8   : > { %3416 = vrot.lane.b32.xlu0 %v3410_v15, %s7290_s25  ;;  %3423 = vrot.lane.b32.xlu1 %v3411_v21, %s7289_s27  ;;  %s7296_s27 = smov 8  }
 0x4cc   : > { %3426 = vrot.lane.b32.xlu0 %v3411_v21, %s7290_s25  ;;  %3429 = vrot.lane.b32.xlu1 %v3411_v21, %s7288_s15  ;;  %s7295_s15 = smov 104   ;;  %s7297_s25 = smov 16  }
 0x536   : > { %v3420_v23 = vpop.permute.xlu1 %3419  ;;  %v3414_v25 = vpop.permute.xlu0 %3413 }
 0x537   : > { %v3432_v28 = vpack.c.bf16 %v3414_v25, %v3410_v15 }
 0x539   : > { %5727 = vmatprep.mubr.msk.bf16.mxu0 %vm3459_vm2, %v3432_v28  ;;  %5739 = vmatprep.mubr.msk.bf16.mxu1 %vm3459_vm2, %v3432_v28 }
 0x53a   : > { %v3417_v26 = vpop.permute.xlu0 %3416  ;;  %v3424_v29 = vpop.permute.xlu1 %3423 }
 0x53b   : > { %v3433_v30 = vpack.c.bf16 %v3420_v23, %v3417_v26  ;;  %v3434_v31 = vpack.c.bf16 %v3424_v29, %v3411_v21 }
 0x53d   : > { %5728 = vmatmul.mubr.msk.bf16.vlgmr.msra.gmra.mxu0 %vm3459_vm2, %v3433_v30  ;;  %5740 = vmatmul.mubr.msk.bf16.vlgmr.msra.gmra.mxu1 %vm3459_vm2, %v3433_v30 }
 0x53e   : > { %5731 = vmatprep.mubr.msk.bf16.mxu0 %vm3459_vm2, %v3434_v31  ;;  %5743 = vmatprep.mubr.msk.bf16.mxu1 %vm3459_vm2, %v3434_v31  ;;  %v3427_v33 = vpop.permute.xlu0 %3426  ;;  %v3430_v34 = vpop.permute.xlu1 %3429 }
 0x53f   : > { %5748 = vmatpush3.bf16.msra.mxu0 %v6648_v20  ;;  %v3435_v35 = vpack.c.bf16 %v3430_v34, %v3427_v33 }
 0x540   : > { %5749 = vmatprep.subr.bf16.mxu0 %v6649_v32 }
 0x543   : > { %5750 = vmatpush3.bf16.msra.mxu0 %v6649_v32 }
 0x545   : > { %5732 = vmatmul.mubr.msk.bf16.gmra.mxu0 %vm3459_vm2, %v3435_v35  ;;  %5744 = vmatmul.mubr.msk.bf16.gmra.mxu1 %vm3459_vm2, %v3435_v35 }
 0x546   : > { %5751 = vmatprep.mubr.msk.bf16.mxu0 %vm3459_vm2, %v3432_v28 }
 0x54d   : > { %5752 = vmatmul.mubr.msk.bf16.vlgmr.msra.gmra.mxu0 %vm3459_vm2, %v3433_v30 }
 0x54e   : > { %5755 = vmatprep.mubr.msk.bf16.mxu0 %vm3459_vm2, %v3434_v31 }
 0x555   : > { %5756 = vmatmul.mubr.msk.bf16.gmra.mxu0 %vm3459_vm2, %v3435_v35 }
 0x5fd   : > { %v5729_v36 = vpop.f32.mrf.mxu0  ;;  %v5741_v37 = vpop.f32.mrf.mxu1 }
 0x5fe   : > { %v3615_v1 = vadd.f32 %v5741_v37, %v5584_v55  ;;  %v3515_v57 = vadd.f32 %v5729_v36, %v5577_v40 }
 0x5ff   : > { %v3506_v38 = vpop.f32.mrf.mxu0  ;;  %v3606_v39 = vpop.f32.mrf.mxu1 }
 0x600   : > { %v3507_v43 = vadd.f32 %v5577_v40, %v3506_v38  ;;  %v3607_v4 = vadd.f32 %v5584_v55, %v3606_v39  ;;  %v3539_v11 = vmul.f32 0.35355338, %v3515_v57 }
 0x601   : > { %v5730_v41 = vpop.f32.mrf.mxu0  ;;  %v5742_v42 = vpop.f32.mrf.mxu1 }
 0x602   : > { %v3537_v49 = vmul.f32 0.35355338, %v3507_v43  ;;  %v3618_v61 = vadd.f32 %v5742_v42, %v5584_v55  ;;  %v3518_v52 = vadd.f32 %v5730_v41, %v5577_v40  ;;  %v7817_v42 = vld [vmem:[#allocation25 + $0x30] sm:$0xff] }
 0x603   : > { %v3509_v44 = vpop.f32.mrf.mxu0  ;;  %v3609_v45 = vpop.f32.mrf.mxu1 }
 0x604   : > { %v3510_v46 = vadd.f32 %v5577_v40, %v3509_v44  ;;  %v3610_v56 = vadd.f32 %v5584_v55, %v3609_v45  ;;  %v7763_v5 = vpack.c.bf16 %v3618_v61, %v3615_v1  ;;  %v3540_v7 = vmul.f32 0.35355338, %v3518_v52  ;;  %v7819_v44 = vld [vmem:[#allocation25 + $0x20] sm:$0xff] }
 0x605   : > { %v5733_v47 = vpop.f32.mrf.mxu0  ;;  %v5745_v48 = vpop.f32.mrf.mxu1  ;;  %v7835_v61 = vld [vmem:[#allocation25] sm:$0xff] }
 0x606   : > { %v3538_v50 = vmul.f32 0.35355338, %v3510_v46  ;;  %v3631_v58 = vadd.f32 %v5745_v48, %v5584_v55  ;;  %v7769_v8 = vpack.c.bf16 %v3610_v56, %v3607_v4  ;;  %v3531_v12 = vadd.f32 %v5733_v47, %v5577_v40  ;;  %v7822_v47 = vld [vmem:[#allocation25 + $0x38] sm:$0xff]  ;;  %v7843_v56 = vld [vmem:[#allocation25 + $0x8] sm:$0xff] }
 0x607   : > { %v3522_v24 = vpop.f32.mrf.mxu0  ;;  %v3622_v51 = vpop.f32.mrf.mxu1  ;;  %v7775_v14 = vpack.c.bf16 %v3540_v7, %v3539_v11  ;;  %v3759_v21 = vsel %vm3742_vm3, %v7763_v5, 0 }
 0x608   : > { %v7746_v54 = vpack.c.bf16 %v3538_v50, %v3537_v49  ;;  %v3623_v62 = vadd.f32 %v5584_v55, %v3622_v51  ;;  %v3523_v9 = vadd.f32 %v5577_v40, %v3522_v24  ;;  %v3543_v18 = vmul.f32 0.35355338, %v3531_v12  ;;  %v7826_v50 = vld [vmem:[#allocation25 + $0x10] sm:$0xff]  ;;  %v7828_v51 = vld [vmem:[#allocation25 + $0x28] sm:$0xff] }
 0x609   : > { %v5734_v22 = vpop.f32.mrf.mxu0  ;;  %v5746_v27 = vpop.f32.mrf.mxu1  ;;  %v3756_v23 = vsel %vm3742_vm3, %v7769_v8, 0 }
 0x60a   : > { %v3634_v59 = vadd.f32 %v5746_v27, %v5584_v55  ;;  %5767 = vmatprep.mubr.msk.bf16.mxu1 %vm3742_vm3, %v7746_v54  ;;  %v3534_v10 = vadd.f32 %v5734_v22, %v5577_v40  ;;  %v3541_v15 = vmul.f32 0.35355338, %v3523_v9 }
 0x60b   : > { %v3625_v60 = vpop.f32.mrf.mxu1  ;;  %v3525_v2 = vpop.f32.mrf.mxu0 }
 0x60c   : > { %v7753_v63 = vpack.c.bf16 %v3634_v59, %v3631_v58  ;;  %v3626_v0 = vadd.f32 %v5584_v55, %v3625_v60  ;;  %v3526_v6 = vadd.f32 %v5577_v40, %v3525_v2  ;;  %v3544_v16 = vmul.f32 0.35355338, %v3534_v10 }
 0x60e   : > { %v7755_v53 = vpack.c.bf16 %v3626_v0, %v3623_v62  ;;  %4034 = vrot.lane.b32.xlu0 %v7753_v63, %s7291_s19  ;;  %5927 = vmatprep.subr.msk.bf16.mxu1 %vm3742_vm3, %v7753_v63  ;;  %v3765_v3 = vsel %vm3742_vm3, %v7753_v63, 0  ;;  %v3542_v13 = vmul.f32 0.35355338, %v3526_v6  ;;  %v7787_v20 = vpack.c.bf16 %v3544_v16, %v3543_v18  ;;  %v7837_v62 = vld [vmem:[#allocation25 + $0x18] sm:$0xff] }
 0x60f   : > { %5760 = vmatpush3.bf16.xpose.msra.mxu1 %v3765_v3 }
 0x610   : > { %4032 = vrot.lane.b32.xlu1 %v7755_v53, %s7291_s19  ;;  %5928 = vmatprep.subr.msk.bf16.mxu1 %vm3742_vm3, %v7755_v53  ;;  %v3762_v17 = vsel %vm3742_vm3, %v7755_v53, 0  ;;  %v7781_v19 = vpack.c.bf16 %v3542_v13, %v3541_v15 }
 0x612   : > { %4030 = vrot.lane.b32.xlu0 %v7763_v5, %s7291_s19 }
 0x614   : > { %4028 = vrot.lane.b32.xlu1 %v7769_v8, %s7291_s19 }
 0x616   : > { %4016 = vrot.lane.b32.xlu0 %v7746_v54, %s7291_s19 }
 0x617   : > { %5762 = vmatpush3.bf16.xpose.msra.mxu1 %v3762_v17 }
 0x618   : > { %4018 = vrot.lane.b32.xlu1 %v7775_v14, %s7291_s19  ;;  %5929 = vmatprep.subr.msk.bf16.mxu1 %vm3742_vm3, %v7763_v5 }
 0x61a   : > { %4020 = vrot.lane.b32.xlu0 %v7781_v19, %s7291_s19 }
 0x61c   : > { %4022 = vrot.lane.b32.xlu1 %v7787_v20, %s7291_s19 }
 0x61f   : > { %5764 = vmatpush3.bf16.xpose.msra.mxu1 %v3759_v21 }
 0x620   : > { %5930 = vmatprep.subr.msk.bf16.mxu1 %vm3742_vm3, %v7769_v8 }
 0x627   : > { %5766 = vmatpush3.bf16.xpose.msra.mxu1 %v3756_v23 }
 0x62e   : > { %5768 = vmatmul.mubr.msk.bf16.vlgmr.msra.gmra.mxu1 %vm3742_vm3, %v7775_v14 }
 0x62f   : > { %5771 = vmatprep.mubr.msk.bf16.mxu1 %vm3742_vm3, %v7781_v19 }
 0x636   : > { %5772 = vmatmul.mubr.msk.bf16.gmra.mxu1 %vm3742_vm3, %v7787_v20 }
 0x680   : > { %v4035_v25 = vpop.permute.xlu0 %4034 }
 0x681   : > { %5931 = vmatprep.subr.msk.bf16.mxu1 %vm3742_vm3, %v4035_v25  ;;  %v4058_v28 = vsel %vm3742_vm3, %v4035_v25, 0 }
 0x682   : > { %v4033_v26 = vpop.permute.xlu1 %4032  ;;  %5800 = vmatpush3.bf16.xpose.msra.mxu1 %v4058_v28 }
 0x683   : > { %5932 = vmatprep.subr.msk.bf16.mxu1 %vm3742_vm3, %v4033_v26  ;;  %v4055_v31 = vsel %vm3742_vm3, %v4033_v26, 0 }
 0x684   : > { %v4031_v29 = vpop.permute.xlu0 %4030 }
 0x685   : > { %v4052_v32 = vsel %vm3742_vm3, %v4031_v29, 0 }
 0x686   : > { %v4029_v33 = vpop.permute.xlu1 %4028 }
 0x687   : > { %v4049_v34 = vsel %vm3742_vm3, %v4029_v33, 0 }
 0x688   : > { %v4017_v30 = vpop.permute.xlu0 %4016 }
 0x689   : > { %5807 = vmatprep.mubr.msk.bf16.mxu1 %vm3742_vm3, %v4017_v30 }
 0x68a   : > { %5802 = vmatpush3.bf16.xpose.msra.mxu1 %v4055_v31  ;;  %v4019_v35 = vpop.permute.xlu1 %4018 }
 0x68b   : > { %5933 = vmatprep.subr.msk.bf16.mxu1 %vm3742_vm3, %v4031_v29 }
 0x68c   : > { %v4021_v36 = vpop.permute.xlu0 %4020 }
 0x68e   : > { %v4023_v37 = vpop.permute.xlu1 %4022 }
 0x692   : > { %5804 = vmatpush3.bf16.xpose.msra.mxu1 %v4052_v32 }
 0x693   : > { %5934 = vmatprep.subr.msk.bf16.mxu1 %vm3742_vm3, %v4029_v33 }
 0x69a   : > { %5806 = vmatpush3.bf16.xpose.msra.mxu1 %v4049_v34 }
 0x6a1   : > { %5808 = vmatmul.mubr.msk.bf16.vlgmr.msra.gmra.mxu1 %vm3742_vm3, %v4019_v35 }
 0x6a2   : > { %5811 = vmatprep.mubr.msk.bf16.mxu1 %vm3742_vm3, %v4021_v36 }
 0x6a9   : > { %5812 = vmatmul.mubr.msk.bf16.gmra.mxu1 %vm3742_vm3, %v4023_v37 }
 0x6ee   : > { %v5769_v38 = vpop.f32.mrf.mxu1 }
 0x6ef   : > { %v3810_v27 = vadd.f32 %v5769_v38, %v7826_v50 }
 0x6f0   : > { %v3801_v39 = vpop.f32.mrf.mxu1 }
 0x6f1   : > { %v3802_v0 = vadd.f32 %v3801_v39, %v7835_v61  ;;  %v3839_v2 = vsel %vm3832_vm4, %v3810_v27, -inf }
 0x6f2   : > { %v5770_v40 = vpop.f32.mrf.mxu1 }
 0x6f3   : > { %v3813_v1 = vadd.f32 %v5770_v40, %v7837_v62  ;;  %v3833_v4 = vsel %vm3832_vm4, %v3802_v0, -inf }
 0x6f4   : > { %v3804_v41 = vpop.f32.mrf.mxu1 }
 0x6f5   : > { %v3805_v57 = vadd.f32 %v3804_v41, %v7843_v56  ;;  %v3842_v3 = vsel %vm3832_vm4, %v3813_v1, -inf }
 0x6f6   : > { %v5773_v43 = vpop.f32.mrf.mxu1 }
 0x6f7   : > { %v3826_v45 = vadd.f32 %v5773_v43, %v7817_v42  ;;  %v3836_v6 = vsel %vm3832_vm4, %v3805_v57, -inf }
 0x6f8   : > { %v3817_v46 = vpop.f32.mrf.mxu1 }
 0x6f9   : > { %v3818_v48 = vadd.f32 %v3817_v46, %v7819_v44  ;;  %v3851_v49 = vsel %vm3832_vm4, %v3826_v45, -inf }
 0x6fa   : > { %3852 = vmax.xlane.f32.xlu0 %v3851_v49  ;;  %v5774_v24 = vpop.f32.mrf.mxu1 }
 0x6fb   : > { %v3829_v55 = vadd.f32 %v5774_v24, %v7822_v47  ;;  %v3845_v60 = vsel %vm3832_vm4, %v3818_v48, -inf }
 0x6fc   : > { %v3820_v22 = vpop.f32.mrf.mxu1 }
 0x6fd   : > { %v3821_v58 = vadd.f32 %v3820_v22, %v7828_v51  ;;  %v3854_v59 = vsel %vm3832_vm4, %v3829_v55, -inf }
 0x6fe   : > { %3855 = vmax.xlane.f32.xlu1 %v3854_v59  ;;  %3846 = vmax.xlane.f32.xlu0 %v3845_v60 }
 0x6ff   : > { %v3848_v52 = vsel %vm3832_vm4, %v3821_v58, -inf }
 0x702   : > { %3840 = vmax.xlane.f32.xlu1 %v3839_v2  ;;  %3849 = vmax.xlane.f32.xlu0 %v3848_v52 }
 0x706   : > { %3843 = vmax.xlane.f32.xlu0 %v3842_v3  ;;  %3834 = vmax.xlane.f32.xlu1 %v3833_v4 }
 0x70a   : > { %3837 = vmax.xlane.f32.xlu0 %v3836_v6 }
 0x783   : > { %v3853_v7 = vpop.xlane.xlu0 %3852 }
 0x784   : > { %v3863_v12 = vsub.f32 %v3826_v45, %v3853_v7 }
 0x786   : > { %v3877_v21 = vmul.f32 1.442695, %v3863_v12 }
 0x787   : > { %v3856_v9 = vpop.xlane.xlu1 %3855  ;;  %v3847_v10 = vpop.xlane.xlu0 %3846 }
 0x788   : > { %v3864_v11 = vsub.f32 %v3829_v55, %v3856_v9  ;;  %v3861_v23 = vsub.f32 %v3818_v48, %v3847_v10 }
 0x78a   : > { %v3879_v13 = vmul.f32 1.442695, %v3864_v11  ;;  %v3873_v31 = vmul.f32 1.442695, %v3861_v23 }
 0x78b   : > { %v3841_v15 = vpop.xlane.xlu1 %3840  ;;  %v3850_v16 = vpop.xlane.xlu0 %3849 }
 0x78c   : > { %6652 = vpow2.f32 %v3879_v13  ;;  %v3859_v17 = vsub.f32 %v3810_v27, %v3841_v15  ;;  %v3862_v18 = vsub.f32 %v3821_v58, %v3850_v16 }
 0x78e   : > { %v3869_v25 = vmul.f32 1.442695, %v3859_v17  ;;  %v3875_v28 = vmul.f32 1.442695, %v3862_v18 }
 0x78f   : > { %v3844_v26 = vpop.xlane.xlu0 %3843  ;;  %v3835_v29 = vpop.xlane.xlu1 %3834 }
 0x790   : > { %6654 = vpow2.f32 %v3869_v25  ;;  %v3860_v30 = vsub.f32 %v3813_v1, %v3844_v26  ;;  %v3857_v33 = vsub.f32 %v3802_v0, %v3835_v29  ;;  %v7293_v0 = vmov 0.0   ;;  %v5809_v1 = vpop.f32.mrf.mxu1 }
 0x791   : > { %6656 = vpow2.f32 %v3875_v28  ;;  %5775 = vmatprep.subr.bf16.mxu0 %v7293_v0  ;;  %5783 = vmatprep.mubr.msk.bf16.mxu0 %vm7294_vm5, %v7293_v0  ;;  %v7922_v18 = vadd.f32 %v5809_v1, %v7826_v50 }
 0x792   : > { %6658 = vpow2.f32 %v3877_v21  ;;  %v3871_v32 = vmul.f32 1.442695, %v3860_v30  ;;  %v3865_v36 = vmul.f32 1.442695, %v3857_v33  ;;  %v4094_v2 = vpop.f32.mrf.mxu1 }
 0x793   : > { %v3838_v34 = vpop.xlane.xlu0 %3837  ;;  %v7932_v28 = vadd.f32 %v4094_v2, %v7835_v61  ;;  %v4131_v26 = vsel %vm3832_vm4, %v7922_v18, -inf }
 0x794   : > { %6660 = vpow2.f32 %v3871_v32  ;;  %v3858_v35 = vsub.f32 %v3805_v57, %v3838_v34  ;;  %v5810_v52 = vpop.f32.mrf.mxu1 }
 0x795   : > { %6662 = vpow2.f32 %v3873_v31  ;;  %v7917_v16 = vadd.f32 %v5810_v52, %v7837_v62  ;;  %v4125_v30 = vsel %vm3832_vm4, %v7932_v28, -inf }
 0x796   : > { %v3867_v37 = vmul.f32 1.442695, %v3858_v35  ;;  %v4097_v57 = vpop.f32.mrf.mxu1 }
 0x797   : > { %v7927_v23 = vadd.f32 %v4097_v57, %v7843_v56  ;;  %v4134_v25 = vsel %vm3832_vm4, %v7917_v16, -inf }
 0x798   : > { %6664 = vpow2.f32 %v3867_v37  ;;  %v5813_v3 = vpop.f32.mrf.mxu1 }
 0x799   : > { %v7849_v38 = vpop.eup %6652  ;;  %6666 = vpow2.f32 %v3865_v36  ;;  %v7901_v6 = vadd.f32 %v5813_v3, %v7817_v42  ;;  %v4128_v29 = vsel %vm3832_vm4, %v7927_v23, -inf  ;;  %v7940_v36 = vpop.f32.mrf.mxu0 }
 0x79a   : > { %v3902_v39 = vsel %vm3832_vm4, %v7849_v38, 0.0  ;;  %v4110_v4 = vpop.f32.mrf.mxu1 }
 0x79b   : > { %3903 = vadd.xlane.f32.xlu0 %v3902_v39  ;;  %v7904_v9 = vadd.f32 %v4110_v4, %v7819_v44  ;;  %v4143_v10 = vsel %vm3832_vm4, %v7901_v6, -inf }
 0x79c   : > { %v5814_v7 = vpop.f32.mrf.mxu1 }
 0x79d   : > { %v7853_v40 = vpop.eup %6654  ;;  %v4137_v13 = vsel %vm3832_vm4, %v7904_v9, -inf  ;;  %v7914_v15 = vadd.f32 %v5814_v7, %v7822_v47 }
 0x79e   : > { %v7855_v41 = vpop.eup %6656  ;;  %v3887_v43 = vsel %vm3832_vm4, %v7853_v40, 0.0  ;;  %v4113_v11 = vpop.f32.mrf.mxu1 }
 0x79f   : > { %v7859_v45 = vpop.eup %6658  ;;  %v3896_v46 = vsel %vm3832_vm4, %v7855_v41, 0.0  ;;  %3888 = vadd.xlane.f32.xlu1 %v3887_v43  ;;  %v7909_v12 = vadd.f32 %v4113_v11, %v7828_v51  ;;  %v4146_v21 = vsel %vm3832_vm4, %v7914_v15, -inf  ;;  %v7942_v43 = vpop.f32.mrf.mxu0 }
 0x7a0   : > { %3897 = vadd.xlane.f32.xlu0 %v3896_v46  ;;  %v3899_v24 = vsel %vm3832_vm4, %v7859_v45, 0.0 }
 0x7a1   : > { %v7863_v48 = vpop.eup %6660  ;;  %v4140_v17 = vsel %vm3832_vm4, %v7909_v12, -inf }
 0x7a2   : > { %v3890_v49 = vsel %vm3832_vm4, %v7863_v48, 0.0  ;;  %v7869_v55 = vpop.eup %6662 }
 0x7a3   : > { %3900 = vadd.xlane.f32.xlu1 %v3899_v24  ;;  %v3893_v58 = vsel %vm3832_vm4, %v7869_v55, 0.0  ;;  %v5754_v24 = vpop.f32.mrf.mxu0 }
 0x7a4   : > { %3891 = vadd.xlane.f32.xlu0 %v3890_v49 }
 0x7a5   : > { %v7871_v22 = vpop.eup %6664  ;;  %v3701_v52 = vpop.f32.mrf.mxu0 }
 0x7a6   : > { %v3884_v27 = vsel %vm3832_vm4, %v7871_v22, 0.0  ;;  %v7877_v59 = vpop.eup %6666 }
 0x7a7   : > { %3894 = vadd.xlane.f32.xlu1 %v3893_v58  ;;  %v3881_v60 = vsel %vm3832_vm4, %v7877_v59, 0.0 }
 0x7a8   : > { %3885 = vadd.xlane.f32.xlu0 %v3884_v27 }
 0x7ab   : > { %3882 = vadd.xlane.f32.xlu1 %v3881_v60 }
 0x7bc   : > { %4331 = vrot.lane.b32.xlu1 %v7753_v63, %s7292_s13 }
 0x7be   : > { %4329 = vrot.lane.b32.xlu0 %v7755_v53, %s7292_s13 }
 0x7c0   : > { %4327 = vrot.lane.b32.xlu1 %v7763_v5, %s7292_s13 }
 0x7c2   : > { %4317 = vrot.lane.b32.xlu0 %v7746_v54, %s7292_s13 }
 0x7c4   : > { %4325 = vrot.lane.b32.xlu1 %v7769_v8, %s7292_s13 }
 0x7c6   : > { %4321 = vrot.lane.b32.xlu0 %v7781_v19, %s7292_s13 }
 0x7c8   : > { %4319 = vrot.lane.b32.xlu1 %v7775_v14, %s7292_s13 }
 0x7cc   : > { %4323 = vrot.lane.b32.xlu1 %v7787_v20, %s7292_s13 }
 0x7e5   : > { %4144 = vmax.xlane.f32.xlu0 %v4143_v10 }
 0x7e9   : > { %4138 = vmax.xlane.f32.xlu0 %v4137_v13  ;;  %v5757_v13 = vpop.f32.mrf.mxu0 }
 0x7ed   : > { %4141 = vmax.xlane.f32.xlu0 %v4140_v17 }
 0x7f0   : > { %4147 = vmax.xlane.f32.xlu1 %v4146_v21 }
 0x7f1   : > { %4135 = vmax.xlane.f32.xlu0 %v4134_v25 }
 0x7f4   : > { %4132 = vmax.xlane.f32.xlu1 %v4131_v26 }
 0x7f5   : > { %4129 = vmax.xlane.f32.xlu0 %v4128_v29 }
 0x7f8   : > { %4126 = vmax.xlane.f32.xlu1 %v4125_v30 }
 0x824   : > { %v3904_v31 = vpop.xlane.xlu0 %3903 }
 0x825   : > { %6668 = vrcp.f32 %v3904_v31 }
 0x828   : > { %v3889_v32 = vpop.xlane.xlu1 %3888 }
 0x829   : > { %v3898_v33 = vpop.xlane.xlu0 %3897 }
 0x82c   : > { %v3901_v34 = vpop.xlane.xlu1 %3900 }
 0x82d   : > { %v3892_v35 = vpop.xlane.xlu0 %3891  ;;  %6670 = vrcp.f32 %v3901_v34 }
 0x82e   : > { %6672 = vrcp.f32 %v3898_v33 }
 0x82f   : > { %6674 = vrcp.f32 %v3892_v35 }
 0x830   : > { %v3895_v37 = vpop.xlane.xlu1 %3894 }
 0x831   : > { %v3886_v39 = vpop.xlane.xlu0 %3885  ;;  %6676 = vrcp.f32 %v3895_v37 }
 0x832   : > { %6678 = vrcp.f32 %v3889_v32  ;;  %v6669_v27 = vpop.eup %6668 }
 0x833   : > { %v3920_v3 = vmul.f32 %v6669_v27, %v7849_v38  ;;  %v3714_v38 = vpop.f32.mrf.mxu0 }
 0x834   : > { %v3883_v46 = vpop.xlane.xlu1 %3882 }
 0x835   : > { %v4330_v49 = vpop.permute.xlu0 %4329  ;;  %6680 = vrcp.f32 %v3883_v46  ;;  %v5758_v34 = vpop.f32.mrf.mxu0 }
 0x836   : > { %6682 = vrcp.f32 %v3886_v39  ;;  %v4352_v26 = vsel %vm3742_vm3, %v4330_v49, 0 }
 0x837   : > { %v3717_v46 = vpop.f32.mrf.mxu0 }
 0x838   : > { %v4332_v58 = vpop.permute.xlu1 %4331 }
 0x839   : > { %v4318_v60 = vpop.permute.xlu0 %4317  ;;  %v4355_v1 = vsel %vm3742_vm3, %v4332_v58, 0  ;;  %5935 = vmatprep.subr.msk.bf16.mxu1 %vm3742_vm3, %v4332_v58 }
 0x83a   : > { %v6671_v2 = vpop.eup %6670  ;;  %5847 = vmatprep.mubr.msk.bf16.mxu1 %vm3742_vm3, %v4318_v60  ;;  %5840 = vmatpush3.bf16.xpose.msra.mxu1 %v4355_v1 }
 0x83b   : > { %5936 = vmatprep.subr.msk.bf16.mxu1 %vm3742_vm3, %v4330_v49  ;;  %v3919_v57 = vmul.f32 %v6671_v2, %v7859_v45  ;;  %v6673_v4 = vpop.eup %6672 }
 0x83c   : > { %v6675_v7 = vpop.eup %6674  ;;  %v3918_v21 = vmul.f32 %v6673_v4, %v7855_v41  ;;  %v4328_v31 = vpop.permute.xlu1 %4327 }
 0x83d   : > { %v3924_v10 = vpack.c.bf16 %v3920_v3, %v3919_v57  ;;  %v3916_v45 = vmul.f32 %v6675_v7, %v7863_v48  ;;  %v5591_v48 = vld [vmem:[%s8459_s5] ss:$0 sm:$0xff]  ;;  %v4349_v39 = vsel %vm3742_vm3, %v4328_v31, 0 }
 0x83e   : > { %v6677_v11 = vpop.eup %6676  ;;  %v3726_v37 = vadd.f32 %v5758_v34, %v5591_v48  ;;  %v3723_v27 = vadd.f32 %v5757_v13, %v5591_v48  ;;  %v3718_v58 = vadd.f32 %v5591_v48, %v3717_v46  ;;  %v3715_v60 = vadd.f32 %v5591_v48, %v3714_v38  ;;  %v4322_v13 = vpop.permute.xlu0 %4321 }
 0x83f   : > { %5776 = vmatpush3.bf16.msra.mxu0 %v3924_v10  ;;  %v3917_v17 = vmul.f32 %v6677_v11, %v7869_v55  ;;  %v6679_v25 = vpop.eup %6678  ;;  %v3710_v1 = vadd.f32 %v5754_v24, %v5591_v48  ;;  %v3707_v3 = vadd.f32 %v7940_v36, %v5591_v48  ;;  %v3702_v7 = vadd.f32 %v5591_v48, %v3701_v52 }
 0x840   : > { %5777 = vmatprep.subr.bf16.mxu0 %v7293_v0  ;;  %v3915_v32 = vmul.f32 %v6679_v25, %v7853_v40  ;;  %v4326_v49 = vpop.permute.xlu1 %4325  ;;  %v7980_v2 = vpack.c.bf16 %v3718_v58, %v3715_v60  ;;  %v3699_v10 = vadd.f32 %v5591_v48, %v7942_v43 }
 0x841   : > { %v3923_v29 = vpack.c.bf16 %v3918_v21, %v3917_v17  ;;  %v4346_v57 = vsel %vm3742_vm3, %v4326_v49, 0  ;;  %v7986_v4 = vpack.c.bf16 %v3710_v1, %v3707_v3 }
 0x842   : > { %v6681_v30 = vpop.eup %6680  ;;  %5842 = vmatpush3.bf16.xpose.msra.mxu1 %v4352_v26  ;;  %v3922_v41 = vpack.c.bf16 %v3916_v45, %v3915_v32  ;;  %v7991_v24 = vpack.c.bf16 %v3702_v7, %v3699_v10 }
 0x843   : > { %5778 = vmatpush3.bf16.msra.mxu0 %v3923_v29  ;;  %5937 = vmatprep.subr.msk.bf16.mxu1 %vm3742_vm3, %v4328_v31  ;;  %v6683_v55 = vpop.eup %6682  ;;  %v3913_v33 = vmul.f32 %v6681_v30, %v7877_v59  ;;  %v7972_v59 = vpack.c.bf16 %v3726_v37, %v3723_v27 }
 0x844   : > { %5779 = vmatprep.subr.bf16.mxu0 %v7293_v0  ;;  %v3914_v35 = vmul.f32 %v6683_v55, %v7871_v22  ;;  %v7969_v22 = vld [vmem:[%s8460_s26] sm:$0xf]  ;;  %v4320_v11 = vpop.permute.xlu1 %4319 }
 0x846   : > { %v3921_v40 = vpack.c.bf16 %v3914_v35, %v3913_v33 }
 0x847   : > { %5780 = vmatpush3.bf16.msra.mxu0 %v3922_v41 }
 0x848   : > { %5781 = vmatprep.subr.bf16.mxu0 %v7293_v0  ;;  %v4324_v36 = vpop.permute.xlu1 %4323 }
 0x84a   : > { %5844 = vmatpush3.bf16.xpose.msra.mxu1 %v4349_v39 }
 0x84b   : > { %5782 = vmatpush3.bf16.msra.mxu0 %v3921_v40  ;;  %5938 = vmatprep.subr.msk.bf16.mxu1 %vm3742_vm3, %v4326_v49 }
 0x84c   : > { %5787 = vmatprep.subr.bf16.mxu0 %v7293_v0 }
 0x84e   : > { %5784 = vmatmul.mubr.msk.bf16.vlgmr.msra.gmra.mxu0 %vm3832_vm4, %v7969_v22 }
 0x84f   : > { %5788 = vmatpush3.bf16.msra.mxu0 %v7972_v59  ;;  %5795 = vmatprep.mubr.msk.bf16.mxu0 %vm7294_vm5, %v7293_v0 }
 0x850   : > { %5789 = vmatprep.subr.bf16.mxu0 %v7293_v0 }
 0x852   : > { %5846 = vmatpush3.bf16.xpose.msra.mxu1 %v4346_v57 }
 0x853   : > { %5790 = vmatpush3.bf16.msra.mxu0 %v7980_v2 }
 0x854   : > { %5791 = vmatprep.subr.bf16.mxu0 %v7293_v0 }
 0x857   : > { %5792 = vmatpush3.bf16.msra.mxu0 %v7986_v4 }
 0x858   : > { %5793 = vmatprep.subr.bf16.mxu0 %v7293_v0 }
 0x859   : > { %5848 = vmatmul.mubr.msk.bf16.vlgmr.msra.gmra.mxu1 %vm3742_vm3, %v4320_v11 }
 0x85a   : > { %5851 = vmatprep.mubr.msk.bf16.mxu1 %vm3742_vm3, %v4322_v13 }
 0x85b   : > { %5794 = vmatpush3.bf16.msra.mxu0 %v7991_v24 }
 0x85c   : > { %5815 = vmatprep.subr.bf16.mxu0 %v7293_v0 }
 0x861   : > { %5852 = vmatmul.mubr.msk.bf16.gmra.mxu1 %vm3742_vm3, %v4324_v36 }
 0x86e   : > { %v4145_v43 = vpop.xlane.xlu0 %4144 }
 0x86f   : > { %v4155_v45 = vsub.f32 %v7901_v6, %v4145_v43 }
 0x871   : > { %v4169_v33 = vmul.f32 1.442695, %v4155_v45 }
 0x872   : > { %v4139_v52 = vpop.xlane.xlu0 %4138 }
 0x873   : > { %v4153_v34 = vsub.f32 %v7904_v9, %v4139_v52 }
 0x875   : > { %v4165_v6 = vmul.f32 1.442695, %v4153_v34 }
 0x876   : > { %v4142_v17 = vpop.xlane.xlu0 %4141 }
 0x877   : > { %v4154_v21 = vsub.f32 %v7909_v12, %v4142_v17 }
 0x879   : > { %v4148_v25 = vpop.xlane.xlu1 %4147  ;;  %v4167_v30 = vmul.f32 1.442695, %v4154_v21 }
 0x87a   : > { %v4136_v26 = vpop.xlane.xlu0 %4135  ;;  %v4156_v29 = vsub.f32 %v7914_v15, %v4148_v25 }
 0x87b   : > { %v4152_v38 = vsub.f32 %v7917_v16, %v4136_v26 }
 0x87c   : > { %v4171_v31 = vmul.f32 1.442695, %v4156_v29 }
 0x87d   : > { %v4133_v32 = vpop.xlane.xlu1 %4132  ;;  %v4163_v12 = vmul.f32 1.442695, %v4152_v38 }
 0x87e   : > { %6684 = vpow2.f32 %v4171_v31  ;;  %v4130_v55 = vpop.xlane.xlu0 %4129  ;;  %v4151_v41 = vsub.f32 %v7922_v18, %v4133_v32 }
 0x87f   : > { %6686 = vpow2.f32 %v4167_v30  ;;  %v4150_v35 = vsub.f32 %v7927_v23, %v4130_v55 }
 0x880   : > { %v4161_v48 = vmul.f32 1.442695, %v4151_v41 }
 0x881   : > { %v4127_v15 = vpop.xlane.xlu1 %4126  ;;  %v4159_v16 = vmul.f32 1.442695, %v4150_v35 }
 0x882   : > { %6688 = vpow2.f32 %v4161_v48  ;;  %v4149_v37 = vsub.f32 %v7932_v28, %v4127_v15 }
 0x883   : > { %6690 = vpow2.f32 %v4169_v33 }
 0x884   : > { %6692 = vpow2.f32 %v4163_v12  ;;  %v4157_v39 = vmul.f32 1.442695, %v4149_v37 }
 0x885   : > { %6694 = vpow2.f32 %v4165_v6 }
 0x886   : > { %6696 = vpow2.f32 %v4159_v16 }
 0x887   : > { %6698 = vpow2.f32 %v4157_v39 }
 0x88b   : > { %v8006_v18 = vpop.eup %6684 }
 0x88c   : > { %v4194_v9 = vsel %vm3832_vm4, %v8006_v18, 0.0  ;;  %v8010_v40 = vpop.eup %6686 }
 0x88d   : > { %4195 = vadd.xlane.f32.xlu0 %v4194_v9  ;;  %v4188_v49 = vsel %vm3832_vm4, %v8010_v40, 0.0 }
 0x88f   : > { %v8012_v23 = vpop.eup %6688 }
 0x890   : > { %v8014_v46 = vpop.eup %6690  ;;  %v4179_v28 = vsel %vm3832_vm4, %v8012_v23, 0.0 }
 0x891   : > { %v8020_v27 = vpop.eup %6692  ;;  %4189 = vadd.xlane.f32.xlu0 %v4188_v49  ;;  %4180 = vadd.xlane.f32.xlu1 %v4179_v28  ;;  %v4191_v1 = vsel %vm3832_vm4, %v8014_v46, 0.0 }
 0x892   : > { %v8022_v58 = vpop.eup %6694  ;;  %v4182_v60 = vsel %vm3832_vm4, %v8020_v27, 0.0 }
 0x893   : > { %v8028_v57 = vpop.eup %6696  ;;  %v4185_v7 = vsel %vm3832_vm4, %v8022_v58, 0.0 }
 0x894   : > { %v4176_v3 = vsel %vm3832_vm4, %v8028_v57, 0.0  ;;  %v8034_v10 = vpop.eup %6698 }
 0x895   : > { %4183 = vadd.xlane.f32.xlu0 %v4182_v60  ;;  %4192 = vadd.xlane.f32.xlu1 %v4191_v1  ;;  %v4173_v11 = vsel %vm3832_vm4, %v8034_v10, 0.0 }
 0x899   : > { %4177 = vadd.xlane.f32.xlu0 %v4176_v3  ;;  %4186 = vadd.xlane.f32.xlu1 %v4185_v7 }
 0x89d   : > { %4174 = vadd.xlane.f32.xlu1 %v4173_v11 }
 0x8ae   : > { %4624 = vrot.lane.b32.xlu1 %v7753_v63, %s7295_s15 }
 0x8af   : > { %4622 = vrot.lane.b32.xlu0 %v7755_v53, %s7295_s15 }
 0x8b2   : > { %4620 = vrot.lane.b32.xlu1 %v7763_v5, %s7295_s15 }
 0x8b3   : > { %4610 = vrot.lane.b32.xlu0 %v7746_v54, %s7295_s15 }
 0x8b6   : > { %4618 = vrot.lane.b32.xlu1 %v7769_v8, %s7295_s15 }
 0x8b7   : > { %4614 = vrot.lane.b32.xlu0 %v7781_v19, %s7295_s15 }
 0x8ba   : > { %4612 = vrot.lane.b32.xlu1 %v7775_v14, %s7295_s15 }
 0x8be   : > { %4616 = vrot.lane.b32.xlu1 %v7787_v20, %s7295_s15 }
 0x90e   : > { %v3962_v63 = vpop.f32.mrf.mxu0 }
 0x90f   : > { %v3968_v53 = vpack.c.bf16 %v3962_v63, %v3962_v63 }
 0x910   : > { %v5785_v13 = vpop.f32.mrf.mxu0 }
 0x911   : > { %5796 = vmatmul.mubr.msk.bf16.vlgmr.msra.gmra.mxu0 %vm3832_vm4, %v3968_v53 }
 0x912   : > { %5823 = vmatprep.mubr.msk.bf16.mxu0 %vm7294_vm5, %v7293_v0  ;;  %v3965_v54 = vpop.f32.mrf.mxu0 }
 0x914   : > { %v5786_v5 = vpop.f32.mrf.mxu0 }
 0x916   : > { %v4196_v8 = vpop.xlane.xlu0 %4195 }
 0x917   : > { %6700 = vrcp.f32 %v4196_v8 }
 0x919   : > { %v5849_v36 = vpop.f32.mrf.mxu1 }
 0x91a   : > { %v4190_v43 = vpop.xlane.xlu0 %4189  ;;  %v4181_v19 = vpop.xlane.xlu1 %4180  ;;  %v8069_v34 = vadd.f32 %v5849_v36, %v7826_v50 }
 0x91b   : > { %v4391_v52 = vpop.f32.mrf.mxu1 }
 0x91c   : > { %v8082_v9 = vadd.f32 %v4391_v52, %v7835_v61  ;;  %v4428_v60 = vsel %vm3832_vm4, %v8069_v34, -inf }
 0x91d   : > { %v5850_v17 = vpop.f32.mrf.mxu1 }
 0x91e   : > { %v4184_v14 = vpop.xlane.xlu0 %4183  ;;  %v4193_v21 = vpop.xlane.xlu1 %4192  ;;  %v8085_v49 = vadd.f32 %v5850_v17, %v7837_v62  ;;  %v4422_v54 = vsel %vm3832_vm4, %v8082_v9, -inf }
 0x91f   : > { %v4394_v20 = vpop.f32.mrf.mxu1  ;;  %6702 = vrcp.f32 %v4193_v21 }
 0x920   : > { %6704 = vrcp.f32 %v4190_v43  ;;  %v8095_v53 = vadd.f32 %v4394_v20, %v7843_v56  ;;  %v4431_v13 = vsel %vm3832_vm4, %v8085_v49, -inf }
 0x921   : > { %v5853_v25 = vpop.f32.mrf.mxu1  ;;  %6706 = vrcp.f32 %v4184_v14 }
 0x922   : > { %v8058_v26 = vadd.f32 %v5853_v25, %v7817_v42  ;;  %v4178_v29 = vpop.xlane.xlu0 %4177  ;;  %v4187_v45 = vpop.xlane.xlu1 %4186  ;;  %v4425_v52 = vsel %vm3832_vm4, %v8095_v53, -inf }
 0x923   : > { %v4407_v30 = vpop.f32.mrf.mxu1  ;;  %6708 = vrcp.f32 %v4187_v45 }
 0x924   : > { %v8061_v38 = vadd.f32 %v4407_v30, %v7819_v44  ;;  %v4440_v31 = vsel %vm3832_vm4, %v8058_v26, -inf  ;;  %6710 = vrcp.f32 %v4181_v19  ;;  %v6701_v37 = vpop.eup %6700 }
 0x925   : > { %v5854_v32 = vpop.f32.mrf.mxu1  ;;  %4441 = vmax.xlane.f32.xlu0 %v4440_v31  ;;  %v4212_v7 = vmul.f32 %v6701_v37, %v8006_v18 }
 0x926   : > { %v8066_v55 = vadd.f32 %v5854_v32, %v7822_v47  ;;  %v4623_v41 = vpop.permute.xlu0 %4622  ;;  %v4175_v33 = vpop.xlane.xlu1 %4174  ;;  %v4434_v48 = vsel %vm3832_vm4, %v8061_v38, -inf }
 0x927   : > { %v4410_v12 = vpop.f32.mrf.mxu1  ;;  %6712 = vrcp.f32 %v4175_v33  ;;  %v4645_v43 = vsel %vm3742_vm3, %v4623_v41, 0 }
 0x928   : > { %v8072_v35 = vadd.f32 %v4410_v12, %v7828_v51  ;;  %v4443_v15 = vsel %vm3832_vm4, %v8066_v55, -inf  ;;  %6714 = vrcp.f32 %v4178_v29 }
 0x929   : > { %4435 = vmax.xlane.f32.xlu0 %v4434_v48  ;;  %4444 = vmax.xlane.f32.xlu1 %v4443_v15 }
 0x92a   : > { %v4611_v6 = vpop.permute.xlu0 %4610  ;;  %v4625_v16 = vpop.permute.xlu1 %4624  ;;  %v4437_v28 = vsel %vm3832_vm4, %v8072_v35, -inf }
 0x92b   : > { %v4648_v39 = vsel %vm3742_vm3, %v4625_v16, 0  ;;  %5939 = vmatprep.subr.msk.bf16.mxu1 %vm3742_vm3, %v4625_v16  ;;  %5887 = vmatprep.mubr.msk.bf16.mxu1 %vm3742_vm3, %v4611_v6 }
 0x92c   : > { %5880 = vmatpush3.bf16.xpose.msra.mxu1 %v4648_v39  ;;  %v6703_v1 = vpop.eup %6702 }
 0x92d   : > { %4438 = vmax.xlane.f32.xlu0 %v4437_v28  ;;  %4429 = vmax.xlane.f32.xlu1 %v4428_v60  ;;  %v4211_v3 = vmul.f32 %v6703_v1, %v8014_v46  ;;  %v6705_v11 = vpop.eup %6704 }
 0x92e   : > { %5940 = vmatprep.subr.msk.bf16.mxu1 %vm3742_vm3, %v4623_v41  ;;  %v6707_v63 = vpop.eup %6706  ;;  %v4210_v18 = vmul.f32 %v6705_v11, %v8010_v40  ;;  %v4621_v19 = vpop.permute.xlu1 %4620 }
 0x92f   : > { %v4216_v5 = vpack.c.bf16 %v4212_v7, %v4211_v3  ;;  %v4208_v14 = vmul.f32 %v6707_v63, %v8020_v27  ;;  %v4642_v45 = vsel %vm3742_vm3, %v4621_v19, 0 }
 0x930   : > { %v6709_v8 = vpop.eup %6708 }
 0x931   : > { %4432 = vmax.xlane.f32.xlu0 %v4431_v13  ;;  %4423 = vmax.xlane.f32.xlu1 %v4422_v54  ;;  %v4209_v46 = vmul.f32 %v6709_v8, %v8022_v58  ;;  %v6711_v36 = vpop.eup %6710 }
 0x932   : > { %5816 = vmatpush3.bf16.msra.mxu0 %v4216_v5  ;;  %v4207_v40 = vmul.f32 %v6711_v36, %v8012_v23  ;;  %v4619_v27 = vpop.permute.xlu1 %4618 }
 0x933   : > { %5817 = vmatprep.subr.bf16.mxu0 %v7293_v0  ;;  %v4215_v17 = vpack.c.bf16 %v4210_v18, %v4209_v46  ;;  %v4639_v23 = vsel %vm3742_vm3, %v4619_v27, 0 }
 0x934   : > { %5882 = vmatpush3.bf16.xpose.msra.mxu1 %v4645_v43  ;;  %v6713_v21 = vpop.eup %6712  ;;  %v4214_v20 = vpack.c.bf16 %v4208_v14, %v4207_v40 }
 0x935   : > { %4426 = vmax.xlane.f32.xlu0 %v4425_v52  ;;  %5941 = vmatprep.subr.msk.bf16.mxu1 %vm3742_vm3, %v4621_v19  ;;  %v6715_v58 = vpop.eup %6714  ;;  %v4205_v25 = vmul.f32 %v6713_v21, %v8034_v10  ;;  %v4615_v10 = vpop.permute.xlu0 %4614 }
 0x936   : > { %5818 = vmatpush3.bf16.msra.mxu0 %v4215_v17  ;;  %v4206_v29 = vmul.f32 %v6715_v58, %v8028_v57  ;;  %v4613_v57 = vpop.permute.xlu1 %4612 }
 0x937   : > { %5819 = vmatprep.subr.bf16.mxu0 %v7293_v0 }
 0x938   : > { %v4213_v30 = vpack.c.bf16 %v4206_v29, %v4205_v25 }
 0x93a   : > { %5820 = vmatpush3.bf16.msra.mxu0 %v4214_v20  ;;  %v4617_v31 = vpop.permute.xlu1 %4616 }
 0x93b   : > { %5821 = vmatprep.subr.bf16.mxu0 %v7293_v0 }
 0x93c   : > { %5884 = vmatpush3.bf16.xpose.msra.mxu1 %v4642_v45 }
 0x93d   : > { %5942 = vmatprep.subr.msk.bf16.mxu1 %vm3742_vm3, %v4619_v27 }
 0x93e   : > { %5822 = vmatpush3.bf16.msra.mxu0 %v4213_v30 }
 0x93f   : > { %5827 = vmatprep.subr.bf16.mxu0 %v7293_v0 }
 0x941   : > { %5824 = vmatmul.mubr.msk.bf16.vlgmr.msra.gmra.mxu0 %vm3832_vm4, %v7969_v22 }
 0x942   : > { %4268 = vrot.lane.b32.xlu1 %v7972_v59, %s7291_s19  ;;  %5835 = vmatprep.mubr.msk.bf16.mxu0 %vm7294_vm5, %v7293_v0 }
 0x944   : > { %5886 = vmatpush3.bf16.xpose.msra.mxu1 %v4639_v23 }
 0x945   : > { %5919 = vmatprep.subr.bf16.mxu1 %v7293_v0 }
 0x94b   : > { %5888 = vmatmul.mubr.msk.bf16.vlgmr.msra.gmra.mxu1 %vm3742_vm3, %v4613_v57 }
 0x94c   : > { %5891 = vmatprep.mubr.msk.bf16.mxu1 %vm3742_vm3, %v4615_v10 }
 0x953   : > { %5892 = vmatmul.mubr.msk.bf16.gmra.mxu1 %vm3742_vm3, %v4617_v31 }
 0x954   : > { %5923 = vmatprep.mubr.msk.bf16.mxu1 %vm7294_vm5, %v7293_v0 }
 0x9ae   : > { %v4442_v32 = vpop.xlane.xlu0 %4441 }
 0x9af   : > { %v4452_v16 = vsub.f32 %v8058_v26, %v4442_v32 }
 0x9b1   : > { %v4466_v11 = vmul.f32 1.442695, %v4452_v16 }
 0x9b2   : > { %v4436_v41 = vpop.xlane.xlu0 %4435  ;;  %v4445_v33 = vpop.xlane.xlu1 %4444 }
 0x9b3   : > { %v4453_v1 = vsub.f32 %v8066_v55, %v4445_v33  ;;  %v4450_v63 = vsub.f32 %v8061_v38, %v4436_v41 }
 0x9b5   : > { %v4468_v26 = vmul.f32 1.442695, %v4453_v1  ;;  %v4462_v55 = vmul.f32 1.442695, %v4450_v63 }
 0x9b6   : > { %v4439_v12 = vpop.xlane.xlu0 %4438  ;;  %v4430_v48 = vpop.xlane.xlu1 %4429 }
 0x9b7   : > { %v4448_v15 = vsub.f32 %v8069_v34, %v4430_v48 }
 0x9b9   : > { %v4458_v6 = vmul.f32 1.442695, %v4448_v15 }
 0x9ba   : > { %v4433_v37 = vpop.xlane.xlu0 %4432  ;;  %v4424_v39 = vpop.xlane.xlu1 %4423 }
 0x9bb   : > { %v4449_v28 = vsub.f32 %v8085_v49, %v4433_v37  ;;  %v4446_v60 = vsub.f32 %v8082_v9, %v4424_v39  ;;  %6716 = vpow2.f32 %v4458_v6  ;;  %v4451_v9 = vsub.f32 %v8072_v35, %v4439_v12 }
 0x9bd   : > { %v4460_v3 = vmul.f32 1.442695, %v4449_v28  ;;  %v4454_v7 = vmul.f32 1.442695, %v4446_v60  ;;  %v4464_v5 = vmul.f32 1.442695, %v4451_v9 }
 0x9be   : > { %v4427_v13 = vpop.xlane.xlu0 %4426  ;;  %v4269_v54 = vpop.permute.xlu1 %4268 }
 0x9bf   : > { %6718 = vpow2.f32 %v4460_v3  ;;  %v4447_v34 = vsub.f32 %v8095_v53, %v4427_v13  ;;  %5828 = vmatpush3.bf16.msra.mxu0 %v4269_v54 }
 0x9c0   : > { %6720 = vpow2.f32 %v4454_v7  ;;  %5829 = vmatprep.subr.bf16.mxu0 %v7293_v0 }
 0x9c1   : > { %v4456_v49 = vmul.f32 1.442695, %v4447_v34  ;;  %6722 = vpow2.f32 %v4466_v11 }
 0x9c3   : > { %6724 = vpow2.f32 %v4456_v49 }
 0x9c4   : > { %6726 = vpow2.f32 %v4468_v26 }
 0x9c5   : > { %6728 = vpow2.f32 %v4462_v55 }
 0x9c6   : > { %6730 = vpow2.f32 %v4464_v5 }
 0x9c8   : > { %v8139_v38 = vpop.eup %6716 }
 0x9c9   : > { %v4476_v53 = vsel %vm3832_vm4, %v8139_v38, 0.0 }
 0x9ca   : > { %4477 = vadd.xlane.f32.xlu1 %v4476_v53 }
 0x9cc   : > { %v8143_v8 = vpop.eup %6718 }
 0x9cd   : > { %v8145_v46 = vpop.eup %6720  ;;  %v4479_v35 = vsel %vm3832_vm4, %v8143_v8, 0.0 }
 0x9ce   : > { %4480 = vadd.xlane.f32.xlu0 %v4479_v35  ;;  %v4470_v18 = vsel %vm3832_vm4, %v8145_v46, 0.0  ;;  %v8151_v36 = vpop.eup %6722 }
 0x9cf   : > { %4471 = vadd.xlane.f32.xlu1 %v4470_v18  ;;  %v4488_v17 = vsel %vm3832_vm4, %v8151_v36, 0.0 }
 0x9d0   : > { %v8153_v43 = vpop.eup %6724 }
 0x9d1   : > { %v4473_v19 = vsel %vm3832_vm4, %v8153_v43, 0.0  ;;  %v8157_v52 = vpop.eup %6726  ;;  %v8173_v25 = vpop.f32.mrf.mxu0 }
 0x9d2   : > { %4474 = vadd.xlane.f32.xlu0 %v4473_v19  ;;  %v8161_v14 = vpop.eup %6728  ;;  %v4491_v21 = vsel %vm3832_vm4, %v8157_v52, 0.0 }
 0x9d3   : > { %4489 = vadd.xlane.f32.xlu1 %v4488_v17  ;;  %v8165_v40 = vpop.eup %6730  ;;  %v4482_v58 = vsel %vm3832_vm4, %v8161_v14, 0.0  ;;  %v5797_v29 = vpop.f32.mrf.mxu0 }
 0x9d4   : > { %v4485_v20 = vsel %vm3832_vm4, %v8165_v40, 0.0 }
 0x9d5   : > { %v4009_v45 = vpop.f32.mrf.mxu0 }
 0x9d6   : > { %4492 = vadd.xlane.f32.xlu0 %v4491_v21 }
 0x9d7   : > { %4483 = vadd.xlane.f32.xlu1 %v4482_v58  ;;  %v5798_v27 = vpop.f32.mrf.mxu0 }
 0x9da   : > { %4486 = vadd.xlane.f32.xlu0 %v4485_v20 }
 0x9e8   : > { %4264 = vrot.lane.b32.xlu1 %v7986_v4, %s7291_s19 }
 0x9ec   : > { %4262 = vrot.lane.b32.xlu1 %v7991_v24, %s7291_s19 }
 0x9f0   : > { %4266 = vrot.lane.b32.xlu0 %v7980_v2, %s7291_s19  ;;  %s8461_s19 = sld [smem:[#allocation49_spill]] }
 0xa01   : > { %v8179_v30 = vpop.f32.mrf.mxu0 }
 0xa02   : > { %v4257_v17 = vpack.c.bf16 %v8179_v30, %v8179_v30 }
 0xa03   : > { %v5825_v23 = vpop.f32.mrf.mxu0 }
 0xa05   : > { %v4254_v57 = vpop.f32.mrf.mxu0 }
 0xa07   : > { %v5826_v10 = vpop.f32.mrf.mxu0 }
 0xa0b   : > { %v5889_v31 = vpop.f32.mrf.mxu1 }
 0xa0c   : > { %v8193_v60 = vadd.f32 %v5889_v31, %v7826_v50 }
 0xa0d   : > { %v4684_v32 = vpop.f32.mrf.mxu1 }
 0xa0e   : > { %v8203_v3 = vadd.f32 %v4684_v32, %v7835_v61 }
 0xa0f   : > { %v5890_v41 = vpop.f32.mrf.mxu1 }
 0xa10   : > { %v4715_v61 = vsel %vm3832_vm4, %v8203_v3, -inf }
 0xa11   : > { %v4687_v33 = vpop.f32.mrf.mxu1 }
 0xa12   : > { %v8213_v7 = vadd.f32 %v4687_v33, %v7843_v56 }
 0xa13   : > { %v5893_v12 = vpop.f32.mrf.mxu1 }
 0xa14   : > { %v8182_v48 = vadd.f32 %v5893_v12, %v7817_v42 }
 0xa15   : > { %v4700_v15 = vpop.f32.mrf.mxu1 }
 0xa16   : > { %v8185_v6 = vadd.f32 %v4700_v15, %v7819_v44  ;;  %v4733_v16 = vsel %vm3832_vm4, %v8182_v48, -inf }
 0xa17   : > { %v5894_v37 = vpop.f32.mrf.mxu1  ;;  %4734 = vmax.xlane.f32.xlu0 %v4733_v16 }
 0xa18   : > { %v8190_v39 = vadd.f32 %v5894_v37, %v7822_v47  ;;  %v4727_v42 = vsel %vm3832_vm4, %v8185_v6, -inf  ;;  %v8206_v47 = vadd.f32 %v5890_v41, %v7837_v62  ;;  %v4718_v62 = vsel %vm3832_vm4, %v8213_v7, -inf }
 0xa19   : > { %v4703_v28 = vpop.f32.mrf.mxu1 }
 0xa1a   : > { %v8196_v1 = vadd.f32 %v4703_v28, %v7828_v51  ;;  %v4736_v44 = vsel %vm3832_vm4, %v8190_v39, -inf  ;;  %v4721_v51 = vsel %vm3832_vm4, %v8193_v60, -inf  ;;  %v4724_v11 = vsel %vm3832_vm4, %v8206_v47, -inf }
 0xa1b   : > { %4728 = vmax.xlane.f32.xlu0 %v4727_v42  ;;  %4737 = vmax.xlane.f32.xlu1 %v4736_v44 }
 0xa1c   : > { %v4730_v50 = vsel %vm3832_vm4, %v8196_v1, -inf }
 0xa1f   : > { %4731 = vmax.xlane.f32.xlu0 %v4730_v50  ;;  %4722 = vmax.xlane.f32.xlu1 %v4721_v51 }
 0xa23   : > { %4725 = vmax.xlane.f32.xlu0 %v4724_v11  ;;  %4716 = vmax.xlane.f32.xlu1 %v4715_v61 }
 0xa27   : > { %4719 = vmax.xlane.f32.xlu0 %v4718_v62 }
 0xa34   : > { %4561 = vrot.lane.b32.xlu1 %v7972_v59, %s7292_s13 }
 0xa53   : > { %v4478_v63 = vpop.xlane.xlu1 %4477 }
 0xa57   : > { %v4481_v13 = vpop.xlane.xlu0 %4480 }
 0xa58   : > { %v4472_v54 = vpop.xlane.xlu1 %4471 }
 0xa5b   : > { %v4475_v56 = vpop.xlane.xlu0 %4474 }
 0xa5c   : > { %v4490_v34 = vpop.xlane.xlu1 %4489 }
 0xa5d   : > { %6732 = vrcp.f32 %v4490_v34 }
 0xa5f   : > { %v4493_v26 = vpop.xlane.xlu0 %4492 }
 0xa60   : > { %6734 = vrcp.f32 %v4493_v26  ;;  %v4484_v9 = vpop.xlane.xlu1 %4483 }
 0xa61   : > { %6736 = vrcp.f32 %v4484_v9 }
 0xa63   : > { %v4487_v49 = vpop.xlane.xlu0 %4486 }
 0xa64   : > { %6738 = vrcp.f32 %v4487_v49  ;;  %v4265_v5 = vpop.permute.xlu1 %4264 }
 0xa65   : > { %6740 = vrcp.f32 %v4481_v13 }
 0xa66   : > { %6742 = vrcp.f32 %v4478_v63 }
 0xa67   : > { %v4267_v55 = vpop.permute.xlu0 %4266  ;;  %6744 = vrcp.f32 %v4475_v56 }
 0xa68   : > { %5830 = vmatpush3.bf16.msra.mxu0 %v4267_v55  ;;  %6746 = vrcp.f32 %v4472_v54  ;;  %v4263_v19 = vpop.permute.xlu1 %4262 }
 0xa69   : > { %5831 = vmatprep.subr.bf16.mxu0 %v7293_v0 }
 0xa6a   : > { %v6733_v53 = vpop.eup %6732 }
 0xa6b   : > { %v4508_v58 = vmul.f32 %v6733_v53, %v8151_v36 }
 0xa6c   : > { %5832 = vmatpush3.bf16.msra.mxu0 %v4265_v5 }
 0xa6d   : > { %v6735_v35 = vpop.eup %6734  ;;  %5833 = vmatprep.subr.bf16.mxu0 %v7293_v0 }
 0xa6e   : > { %v4509_v18 = vmul.f32 %v6735_v35, %v8157_v52  ;;  %v6737_v21 = vpop.eup %6736 }
 0xa6f   : > { %v4506_v52 = vmul.f32 %v6737_v21, %v8161_v14 }
 0xa70   : > { %5834 = vmatpush3.bf16.msra.mxu0 %v4263_v19  ;;  %v4513_v29 = vpack.c.bf16 %v4509_v18, %v4508_v58 }
 0xa71   : > { %v6739_v20 = vpop.eup %6738  ;;  %5855 = vmatprep.subr.bf16.mxu0 %v7293_v0 }
 0xa72   : > { %v4507_v45 = vmul.f32 %v6739_v20, %v8165_v40  ;;  %v6741_v27 = vpop.eup %6740 }
 0xa73   : > { %5836 = vmatmul.mubr.msk.bf16.vlgmr.msra.gmra.mxu0 %vm3832_vm4, %v4257_v17  ;;  %v6743_v30 = vpop.eup %6742  ;;  %v4505_v36 = vmul.f32 %v6741_v27, %v8143_v8 }
 0xa74   : > { %5856 = vmatpush3.bf16.msra.mxu0 %v4513_v29  ;;  %5863 = vmatprep.mubr.msk.bf16.mxu0 %vm7294_vm5, %v7293_v0  ;;  %v4512_v23 = vpack.c.bf16 %v4507_v45, %v4506_v52  ;;  %v6745_v57 = vpop.eup %6744  ;;  %v4504_v10 = vmul.f32 %v6743_v30, %v8139_v38 }
 0xa75   : > { %5857 = vmatprep.subr.bf16.mxu0 %v7293_v0  ;;  %v6747_v40 = vpop.eup %6746  ;;  %v4503_v32 = vmul.f32 %v6745_v57, %v8153_v43 }
 0xa76   : > { %v4511_v31 = vpack.c.bf16 %v4505_v36, %v4504_v10  ;;  %v4502_v14 = vmul.f32 %v6747_v40, %v8145_v46 }
 0xa78   : > { %5858 = vmatpush3.bf16.msra.mxu0 %v4512_v23  ;;  %v4510_v41 = vpack.c.bf16 %v4503_v32, %v4502_v14 }
 0xa79   : > { %5859 = vmatprep.subr.bf16.mxu0 %v7293_v0 }
 0xa7c   : > { %5860 = vmatpush3.bf16.msra.mxu0 %v4511_v31 }
 0xa7d   : > { %5861 = vmatprep.subr.bf16.mxu0 %v7293_v0 }
 0xa80   : > { %5862 = vmatpush3.bf16.msra.mxu0 %v4510_v41 }
 0xa81   : > { %5867 = vmatprep.subr.bf16.mxu0 %v7293_v0 }
 0xa83   : > { %5864 = vmatmul.mubr.msk.bf16.vlgmr.msra.gmra.mxu0 %vm3832_vm4, %v7969_v22 }
 0xa84   : > { %5875 = vmatprep.mubr.msk.bf16.mxu0 %vm7294_vm5, %v7293_v0 }
 0xaa0   : > { %v4735_v38 = vpop.xlane.xlu0 %4734 }
 0xaa1   : > { %v4745_v16 = vsub.f32 %v8182_v48, %v4735_v38 }
 0xaa3   : > { %v4759_v61 = vmul.f32 1.442695, %v4745_v16 }
 0xaa4   : > { %v4729_v8 = vpop.xlane.xlu0 %4728  ;;  %v4738_v33 = vpop.xlane.xlu1 %4737 }
 0xaa5   : > { %v4746_v50 = vsub.f32 %v8190_v39, %v4738_v33  ;;  %v4743_v62 = vsub.f32 %v8185_v6, %v4729_v8 }
 0xaa7   : > { %v4761_v48 = vmul.f32 1.442695, %v4746_v50  ;;  %v4755_v39 = vmul.f32 1.442695, %v4743_v62 }
 0xaa8   : > { %v4732_v12 = vpop.xlane.xlu0 %4731  ;;  %v4723_v43 = vpop.xlane.xlu1 %4722 }
 0xaa9   : > { %v4741_v15 = vsub.f32 %v8193_v60, %v4723_v43 }
 0xaab   : > { %v4751_v46 = vmul.f32 1.442695, %v4741_v15 }
 0xaac   : > { %v4726_v37 = vpop.xlane.xlu0 %4725  ;;  %v4717_v28 = vpop.xlane.xlu1 %4716 }
 0xaad   : > { %v4742_v42 = vsub.f32 %v8206_v47, %v4726_v37  ;;  %v4739_v44 = vsub.f32 %v8203_v3, %v4717_v28  ;;  %6748 = vpow2.f32 %v4751_v46  ;;  %v4744_v3 = vsub.f32 %v8196_v1, %v4732_v12 }
 0xaaf   : > { %v4753_v51 = vmul.f32 1.442695, %v4742_v42  ;;  %v4747_v11 = vmul.f32 1.442695, %v4739_v44  ;;  %v4757_v54 = vmul.f32 1.442695, %v4744_v3 }
 0xab0   : > { %v4720_v63 = vpop.xlane.xlu0 %4719  ;;  %v4562_v13 = vpop.permute.xlu1 %4561 }
 0xab1   : > { %6750 = vpow2.f32 %v4753_v51  ;;  %v4740_v60 = vsub.f32 %v8213_v7, %v4720_v63  ;;  %5868 = vmatpush3.bf16.msra.mxu0 %v4562_v13 }
 0xab2   : > { %6752 = vpow2.f32 %v4747_v11  ;;  %5869 = vmatprep.subr.bf16.mxu0 %v7293_v0 }
 0xab3   : > { %v4749_v47 = vmul.f32 1.442695, %v4740_v60  ;;  %6754 = vpow2.f32 %v4759_v61 }
 0xab5   : > { %6756 = vpow2.f32 %v4749_v47 }
 0xab6   : > { %6758 = vpow2.f32 %v4761_v48 }
 0xab7   : > { %6760 = vpow2.f32 %v4755_v39 }
 0xab8   : > { %6762 = vpow2.f32 %v4757_v54 }
 0xaba   : > { %v8256_v6 = vpop.eup %6748 }
 0xabb   : > { %v4769_v7 = vsel %vm3832_vm4, %v8256_v6, 0.0 }
 0xabc   : > { %4770 = vadd.xlane.f32.xlu1 %v4769_v7 }
 0xabe   : > { %v8260_v56 = vpop.eup %6750 }
 0xabf   : > { %v8262_v34 = vpop.eup %6752  ;;  %v4772_v1 = vsel %vm3832_vm4, %v8260_v56, 0.0 }
 0xac0   : > { %4773 = vadd.xlane.f32.xlu0 %v4772_v1  ;;  %v4763_v26 = vsel %vm3832_vm4, %v8262_v34, 0.0  ;;  %v6755_v9 = vpop.eup %6754 }
 0xac1   : > { %4764 = vadd.xlane.f32.xlu1 %v4763_v26  ;;  %v4781_v53 = vsel %vm3832_vm4, %v6755_v9, 0.0 }
 0xac2   : > { %v8268_v49 = vpop.eup %6756 }
 0xac3   : > { %v4766_v55 = vsel %vm3832_vm4, %v8268_v49, 0.0  ;;  %v6759_v5 = vpop.eup %6758 }
 0xac4   : > { %4767 = vadd.xlane.f32.xlu0 %v4766_v55  ;;  %v8273_v35 = vpop.eup %6760  ;;  %v4784_v18 = vsel %vm3832_vm4, %v6759_v5, 0.0  ;;  %v6651_v55 = vld [vmem:[#allocation23] sm:$0xff]  }
 0xac5   : > { %4782 = vadd.xlane.f32.xlu1 %v4781_v53  ;;  %v6763_v19 = vpop.eup %6762  ;;  %v4775_v17 = vsel %vm3832_vm4, %v8273_v35, 0.0 }
 0xac6   : > { %v4778_v21 = vsel %vm3832_vm4, %v6763_v19, 0.0 }
 0xac8   : > { %4785 = vadd.xlane.f32.xlu0 %v4784_v18 }
 0xac9   : > { %4776 = vadd.xlane.f32.xlu1 %v4775_v17 }
 0xacc   : > { %4779 = vadd.xlane.f32.xlu0 %v4778_v21 }
 0xada   : > { %4557 = vrot.lane.b32.xlu1 %v7986_v4, %s7292_s13 }
 0xade   : > { %4555 = vrot.lane.b32.xlu1 %v7991_v24, %s7292_s13 }
 0xae2   : > { %4852 = vrot.lane.b32.xlu1 %v7980_v2, %s7295_s15  ;;  %4559 = vrot.lane.b32.xlu0 %v7980_v2, %s7292_s13  ;;  %s5627_s13 = sshll.u32 %s7426_s3, 7  ;;  %s4989_s3 = scalar_lea.sflag [#allocation4], %s7647_s8 }
 0xae3   : > { %s8329_s26 = scalar_lea.hbm %s8462_s7, %s5627_s13 }
 0xae6   : > { %4848 = vrot.lane.b32.xlu1 %v7991_v24, %s7295_s15  ;;  %4854 = vrot.lane.b32.xlu0 %v7972_v59, %s7295_s15 }
 0xaea   : > { %4850 = vrot.lane.b32.xlu0 %v7986_v4, %s7295_s15  ;;  %s7172_s15 = scalar_lea.vmem %s8331_s11, 128 }
 0xaeb   : > { %p7173_p3 = scmp.ne.s32.totalorder %s8331_s11, %s7172_s15 }
 0xaed   : > { %p7174_p13 = pnand %p7173_p3, %p8463_p6 }
 0xaef   : > { %p7175_p8 = pneg %p7174_p13 }
 0xb33   : > { %v4311_v58 = vpop.f32.mrf.mxu0 }
 0xb34   : > { %4904 = vrot.lane.b32.xlu0 %v4311_v58, %s7296_s27  ;;  %s7176_s27 = sshll.u32 %s7299_s17, 4  ;;  %s7177_s27 = int_to_ptr.vmem [resolvable:$false] %s7176_s27 }
 0xb35   : > { %v5837_v20 = vpop.f32.mrf.mxu0  ;;  %p7179_p5 = scmp.lt.s32.totalorder %s8331_s11, %s7177_s27 }
 0xb37   : > { %v4314_v29 = vpop.f32.mrf.mxu0 }
 0xb39   : > { %v5838_v45 = vpop.f32.mrf.mxu0 }
 0xb3a   : > { %v5622_v45 = vld [vmem:[%s8461_s19] ss:$0 sm:$0xff] }
 0xb43   : > { %v4548_v27 = vpop.f32.mrf.mxu0 }
 0xb44   : > { %v4554_v33 = vpack.c.bf16 %v4548_v27, %v4548_v27 }
 0xb45   : > { %v5865_v52 = vpop.f32.mrf.mxu0  ;;  %v4771_v30 = vpop.xlane.xlu1 %4770 }
 0xb47   : > { %v4551_v23 = vpop.f32.mrf.mxu0 }
 0xb49   : > { %v4774_v2 = vpop.xlane.xlu0 %4773  ;;  %v5866_v36 = vpop.f32.mrf.mxu0 }
 0xb4a   : > { %v4765_v57 = vpop.xlane.xlu1 %4764 }
 0xb4d   : > { %v4768_v24 = vpop.xlane.xlu0 %4767 }
 0xb4e   : > { %v4783_v10 = vpop.xlane.xlu1 %4782 }
 0xb4f   : > { %6764 = vrcp.f32 %v4783_v10 }
 0xb51   : > { %v4786_v59 = vpop.xlane.xlu0 %4785 }
 0xb52   : > { %6766 = vrcp.f32 %v4786_v59  ;;  %v4777_v40 = vpop.xlane.xlu1 %4776 }
 0xb53   : > { %6768 = vrcp.f32 %v4777_v40 }
 0xb55   : > { %v4780_v4 = vpop.xlane.xlu0 %4779 }
 0xb56   : > { %6770 = vrcp.f32 %v4780_v4  ;;  %v4558_v32 = vpop.permute.xlu1 %4557 }
 0xb57   : > { %6772 = vrcp.f32 %v4774_v2 }
 0xb58   : > { %6774 = vrcp.f32 %v4771_v30 }
 0xb59   : > { %v4560_v31 = vpop.permute.xlu0 %4559  ;;  %6776 = vrcp.f32 %v4768_v24 }
 0xb5a   : > { %5870 = vmatpush3.bf16.msra.mxu0 %v4560_v31  ;;  %6778 = vrcp.f32 %v4765_v57  ;;  %v4556_v8 = vpop.permute.xlu1 %4555 }
 0xb5b   : > { %5871 = vmatprep.subr.bf16.mxu0 %v7293_v0 }
 0xb5c   : > { %v6765_v14 = vpop.eup %6764 }
 0xb5d   : > { %v4801_v43 = vmul.f32 %v6765_v14, %v6755_v9  ;;  %v4855_v48 = vpop.permute.xlu0 %4854 }
 0xb5e   : > { %5872 = vmatpush3.bf16.msra.mxu0 %v4558_v32  ;;  %v4853_v3 = vpop.permute.xlu1 %4852 }
 0xb5f   : > { %v6767_v41 = vpop.eup %6766  ;;  %5873 = vmatprep.subr.bf16.mxu0 %v7293_v0 }
 0xb60   : > { %v4802_v38 = vmul.f32 %v6767_v41, %v6759_v5  ;;  %v6769_v12 = vpop.eup %6768 }
 0xb61   : > { %v4799_v28 = vmul.f32 %v6769_v12, %v8273_v35  ;;  %v4851_v47 = vpop.permute.xlu0 %4850 }
 0xb62   : > { %5874 = vmatpush3.bf16.msra.mxu0 %v4556_v8  ;;  %v4806_v46 = vpack.c.bf16 %v4802_v38, %v4801_v43  ;;  %v4849_v39 = vpop.permute.xlu1 %4848 }
 0xb63   : > { %v6771_v15 = vpop.eup %6770  ;;  %5895 = vmatprep.subr.bf16.mxu0 %v7293_v0 }
 0xb64   : > { %v4800_v16 = vmul.f32 %v6771_v15, %v6763_v19  ;;  %v6773_v37 = vpop.eup %6772 }
 0xb65   : > { %5876 = vmatmul.mubr.msk.bf16.vlgmr.msra.gmra.mxu0 %vm3832_vm4, %v4554_v33  ;;  %v6775_v42 = vpop.eup %6774  ;;  %v4798_v50 = vmul.f32 %v6773_v37, %v8260_v56 }
 0xb66   : > { %5896 = vmatpush3.bf16.msra.mxu0 %v4806_v46  ;;  %5903 = vmatprep.mubr.msk.bf16.mxu0 %vm7294_vm5, %v7293_v0  ;;  %v4805_v44 = vpack.c.bf16 %v4800_v16, %v4799_v28  ;;  %v6777_v51 = vpop.eup %6776  ;;  %v4797_v11 = vmul.f32 %v6775_v42, %v8256_v6 }
 0xb67   : > { %5897 = vmatprep.subr.bf16.mxu0 %v7293_v0  ;;  %v6779_v61 = vpop.eup %6778  ;;  %v4796_v63 = vmul.f32 %v6777_v51, %v8268_v49  ;;  %v6650_v49 = vld [vmem:[#allocation23 + $0x8] sm:$0xff]  }
 0xb68   : > { %v4804_v62 = vpack.c.bf16 %v4798_v50, %v4797_v11  ;;  %v4795_v13 = vmul.f32 %v6779_v61, %v8262_v34  ;;  %5920 = vmatpush3.bf16.msra.mxu1 %v6650_v49 }
 0xb69   : > { %5921 = vmatprep.subr.bf16.mxu1 %v7293_v0 }
 0xb6a   : > { %5898 = vmatpush3.bf16.msra.mxu0 %v4805_v44  ;;  %v4803_v60 = vpack.c.bf16 %v4796_v63, %v4795_v13 }
 0xb6b   : > { %5899 = vmatprep.subr.bf16.mxu0 %v7293_v0 }
 0xb6c   : > { %5922 = vmatpush3.bf16.msra.mxu1 %v6651_v55 }
 0xb6e   : > { %5900 = vmatpush3.bf16.msra.mxu0 %v4804_v62 }
 0xb6f   : > { %5901 = vmatprep.subr.bf16.mxu0 %v7293_v0 }
 0xb72   : > { %5902 = vmatpush3.bf16.msra.mxu0 %v4803_v60 }
 0xb73   : > { %5907 = vmatprep.subr.bf16.mxu0 %v7293_v0 }
 0xb75   : > { %5904 = vmatmul.mubr.msk.bf16.vlgmr.msra.gmra.mxu0 %vm3832_vm4, %v7969_v22 }
 0xb76   : > { %5908 = vmatpush3.bf16.msra.mxu0 %v4855_v48  ;;  %5915 = vmatprep.mubr.msk.bf16.mxu0 %vm7294_vm5, %v7293_v0 }
 0xb77   : > { %5909 = vmatprep.subr.bf16.mxu0 %v7293_v0 }
 0xb7a   : > { %5910 = vmatpush3.bf16.msra.mxu0 %v4853_v3 }
 0xb7b   : > { %5911 = vmatprep.subr.bf16.mxu0 %v7293_v0 }
 0xb7e   : > { %5912 = vmatpush3.bf16.msra.mxu0 %v4851_v47 }
 0xb7f   : > { %5913 = vmatprep.subr.bf16.mxu0 %v7293_v0 }
 0xb82   : > { %5914 = vmatpush3.bf16.msra.mxu0 %v4849_v39 }
 0xba6   : > { %v4905_v19 = vpop.permute.xlu0 %4904 }
 0xba7   : > { %v4915_v21 = vsel %vm3742_vm3, %v8173_v25, %v4905_v19 }
 0xc25   : > { %v4604_v54 = vpop.f32.mrf.mxu0 }
 0xc26   : > { %4908 = vrot.lane.b32.xlu1 %v4604_v54, %s7297_s25  ;;  %s7178_s25 = scalar_lea.vmem %s7177_s27, 256 }
 0xc27   : > { %v5877_v22 = vpop.f32.mrf.mxu0  ;;  %p7180_p10 = scmp.lt.s32.totalorder %s7178_s25, %s7172_s15 }
 0xc29   : > { %v4607_v6 = vpop.f32.mrf.mxu0  ;;  %p7181_p4 = por %p7180_p10, %p7179_p5 }
 0xc2b   : > { %v5878_v7 = vpop.f32.mrf.mxu0  ;;  %p7182_p11 = pnand %p7181_p4, %p7175_p8 }
 0xc35   : > { %v4841_v56 = vpop.f32.mrf.mxu0 }
 0xc36   : > { %v4847_v34 = vpack.c.bf16 %v4841_v56, %v4841_v56 }
 0xc37   : > { %v5905_v1 = vpop.f32.mrf.mxu0 }
 0xc38   : > { %5916 = vmatmul.mubr.msk.bf16.vlgmr.msra.gmra.mxu0 %vm3832_vm4, %v4847_v34 }
 0xc39   : > { %v4844_v26 = vpop.f32.mrf.mxu0 }
 0xc3b   : > { %v5906_v9 = vpop.f32.mrf.mxu0 }
 0xc98   : > { %v4909_v17 = vpop.permute.xlu1 %4908 }
 0xc99   : > { %v4917_v58 = vsel %vm4916_vm6, %v4915_v21, %v4909_v17 }
 0xcf8   : > { %v4897_v5 = vpop.f32.mrf.mxu0 }
 0xcf9   : > { %4912 = vrot.lane.b32.xlu0 %v4897_v5, %s7298_s2 }
 0xcfa   : > { %v5917_v53 = vpop.f32.mrf.mxu0 }
 0xcfc   : > { %v4900_v35 = vpop.f32.mrf.mxu0 }
 0xcfe   : > { %v5918_v18 = vpop.f32.mrf.mxu0 }
 0xd6b   : > { %v4913_v20 = vpop.permute.xlu0 %4912 }
 0xd6c   : > { %v4919_v0 = vsel %vm4918_vm7, %v4917_v58, %v4913_v20 }
 0xd6d   : > { %v4920_v29 = vpack.c.bf16 %v4919_v0, %v4919_v0 }
 0xd6f   : > { %5924 = vmatmul.mubr.msk.bf16.vlgmr.msra.gmra.mxu1 %vm3459_vm2, %v4920_v29 }
 0xe2f   : > { %v4981_v27 = vpop.f32.mrf.mxu1 }
 0xe30   : > { %v4982_v52 = vadd.f32 %v5622_v45, %v4981_v27 }
 0xe31   : > { %v5925_v25 = vpop.f32.mrf.mxu1 }
 0xe32   : > { %4987 = vst.msk [vmem:[%s839_s9] sm:$0xff] %vm3459_vm2, %v4982_v52 }
 0xe33   : > { %v4984_v30 = vpop.f32.mrf.mxu1 }
 0xe34   : > { %7185 = shalt.err (!%p7182_p11)
}
 0xe35   : > { %s7186_s2 = scalar_lea.hbm %s8329_s26, 128  ;;  %s7190_s4 = scalar_lea.hbm %s8462_s7, 256 }
 0xe36   : > { %p7187_p0 = scmp.ne.s32.totalorder %s8329_s26, %s7186_s2  ;;  %p7191_p9 = scmp.lt.s32.totalorder %s8329_s26, %s8462_s7 }
 0xe37   : > { %p7192_p12 = scmp.lt.s32.totalorder %s7190_s4, %s7186_s2 }
 0xe38   : > { %p7188_p2 = pnand %p7187_p0, %p8463_p6 }
 0xe39   : > { %p7193_p1 = por %p7192_p12, %p7191_p9 }
 0xe3a   : > { %p7189_p7 = pneg %p7188_p2 }
 0xe3c   : > { %p7194_p3 = pnand %p7193_p1, %p7189_p7 }
 0xe3e   : > { %7197 = shalt.err (!%p7194_p3)
}
 0xe3f   : > { %6001 = dma.vmem_to_hbm [thread:$0]  (%p8463_p6), %s8331_s11, 128, %s8329_s26, %s4989_s3   ;;  %v5926_v23 = vpop.f32.mrf.mxu1 }
 0xe40 PF: > { %s5014_s9 = sand.u32 1, %s7252_s1   ;;  %p8464_p13 = scmp.ne.s32.totalorder %s8439_s30, 0 }
 0xe41   : > { %p8465_p8 = scmp.ge.s32.totalorder %s7264_s24, 2  ;;  %s5015_s5 = scalar_lea.sflag [#allocation4], %s5014_s9 }
 0xe43   : > { %p6051_p5 = pnand %p8465_p8, %p8464_p13 }
 0xe45   : > { %p6052_p10 = pneg %p6051_p5 }
 0xe47   : > { %7247 = dma.done.wait (%p6052_p10), %s5015_s5, 128  }
 0xe48   : > { %7249 = vsyncadd (%p6052_p10), %s5015_s5, 4294967168  ;;  %p40_p4 = scmp.ge.s32.totalorder %s7584_s0, 4   ;;  %s8466_s1 = smov %s7256_s22 }
 0xe49   : > { %s8467_s22 = smov %s7260_s23  ;;  %s8468_s23 = smov %s7595_s29 }
 0xe4a   : > { %s8469_s24 = smov %s7584_s0  ;;  %42 = sbr.rel (!%p40_p4) target bundleno = 29 (0x1d), region = 201 }
 0xe4f   :  { %5020 = vsyncpa [#allocation3], 1 }
 0xe50   :  { %5022 = vsyncpa [#allocation3 + $0x1], 1 }
 0xe51   :  { %5023 = vsyncpa [#allocation6], 1 }
 0xe52   :  { %5024 = vsyncpa [#allocation9], 1 }
 0xe53   :  { %5025 = vsyncpa [#allocation12], 1 }
 0xe54   :  { %5026 = vsyncpa [#allocation15], 1 }
 0xe55   :  { %5027 = vsyncpa [#allocation18], 1 }
 0xe56   :  { %5028 = vsyncpa [#allocation21], 1 }
 0xe57   :  { %5029 = vsyncpa [#allocation24], 1 }
 0xe58   :  { %5030 = vsyncpa [#allocation4], 1 }
 0xe59   :  { %5032 = vsyncpa [#allocation4 + $0x1], 1 }

</bundles_post_ra>
